<compile_context>
chip_gen: v7x
topology: tpu7x:2x2x1
jax: 0.10.0
libtpu: 0.0.40
codegen_flags: <defaults>
</compile_context>

<pallas_src>
import jax
import jax.numpy as jnp
from jax.experimental import pallas as pl
from jax.experimental.pallas import tpu as pltpu

LANE = 128
SUBLANE = 8


def _round_up(n, m):
    return (n + m - 1) // m * m


def _pad_to(a, shape):
    pads = [(0, t - s) for s, t in zip(a.shape, shape)]
    return jnp.pad(a, pads)


def mlp_kernel(x_ref,
               w1_ref, b1_ref,
               w2_ref, b2_ref,
               w3_ref, b3_ref,
               w4_ref, b4_ref,
               w5_ref, b5_ref,
               out_ref):
    # bf16 operands, f32 accumulation on the MXU; ReLU in f32, re-cast to bf16 for the next matmul.
    h = jnp.dot(x_ref[...], w1_ref[...], preferred_element_type=jnp.float32) + b1_ref[...]
    h = jnp.maximum(h, 0.0).astype(jnp.bfloat16)

    h = jnp.dot(h, w2_ref[...], preferred_element_type=jnp.float32) + b2_ref[...]
    h = jnp.maximum(h, 0.0).astype(jnp.bfloat16)

    h = jnp.dot(h, w3_ref[...], preferred_element_type=jnp.float32) + b3_ref[...]
    h = jnp.maximum(h, 0.0).astype(jnp.bfloat16)

    h = jnp.dot(h, w4_ref[...], preferred_element_type=jnp.float32) + b4_ref[...]
    h = jnp.maximum(h, 0.0).astype(jnp.bfloat16)

    # self.dropout is False in the reference module -> dropout branch is never taken.
    # TODO(synk): if dropout were enabled, use pltpu.prng_seed/prng_random_bits for the Bernoulli mask.

    out_ref[...] = (jnp.dot(h, w5_ref[...], preferred_element_type=jnp.float32)
                    + b5_ref[...])


def mlp_forward(x_nchw, params, block_b=256):
    # Glue: flatten NCHW image batch to (batch, 784), exactly like x.view(-1, 784).
    batch = x_nchw.shape[0]
    x2d = x_nchw.reshape(batch, -1).astype(jnp.float32)
    in_features = x2d.shape[1]
    assert in_features == 784

    # Lane-aligned (multiple-of-128) padded feature dims: [896, 1024, 256, 128, 128, 128].
    dims = [in_features] + [w.shape[1] for (w, _) in params]
    pdims = [_round_up(d, LANE) for d in dims]

    # Batch tiling: sublane-aligned block, batch padded to a multiple of the block.
    tb = min(block_b, _round_up(batch, SUBLANE))
    batch_p = _round_up(batch, tb)
    grid = (batch_p // tb,)

    # Pad + cast operands (zero padding is numerically a no-op through ReLU / zero bias columns).
    x_p = _pad_to(x2d, (batch_p, pdims[0])).astype(jnp.bfloat16)
    flat_params = []
    for li, (w, b) in enumerate(params):
        flat_params.append(_pad_to(w, (pdims[li], pdims[li + 1])).astype(jnp.bfloat16))
        flat_params.append(_pad_to(b, (1, pdims[li + 1])).astype(jnp.float32))

    in_specs = [pl.BlockSpec((tb, pdims[0]), lambda i: (i, 0))]
    for a in flat_params:
        # Whole-array weight/bias blocks with a constant index map: fetched once, VMEM-resident.
        in_specs.append(pl.BlockSpec(a.shape, lambda i: (0, 0)))
    out_spec = pl.BlockSpec((tb, pdims[-1]), lambda i: (i, 0))

    out_padded = pl.pallas_call(
        mlp_kernel,
        out_shape=jax.ShapeDtypeStruct((batch_p, pdims[-1]), jnp.float32),
        grid=grid,
        in_specs=in_specs,
        out_specs=out_spec,
        compiler_params=pltpu.CompilerParams(
            dimension_semantics=("parallel",),
            vmem_limit_bytes=32 << 20,
        ),
    )(x_p, *flat_params)

    # Strip batch/lane padding back to the real logits.
    return out_padded[:batch, :dims[-1]]


def init_linear(key, in_features, out_features):
    # Deterministic PyTorch-style init: U(-1/sqrt(in), 1/sqrt(in)).
    kw, kb = jax.random.split(key)
    bound = 1.0 / jnp.sqrt(jnp.float32(in_features))
    # Stored already transposed to (in, out) so the kernel does x @ W.
    w = jax.random.uniform(kw, (in_features, out_features), jnp.float32,
                           minval=-bound, maxval=bound)
    b = jax.random.uniform(kb, (1, out_features), jnp.float32,
                           minval=-bound, maxval=bound)
    return w, b


def init_params(seed=0):
    key = jax.random.PRNGKey(seed)
    dims = [(784, 1000), (1000, 256), (256, 64), (64, 128), (128, 10)]
    keys = jax.random.split(key, len(dims))
    return [init_linear(k, i, o) for k, (i, o) in zip(keys, dims)]


def mlp_reference_bf16(x_nchw, params):
    # Plain-JAX reference mirroring the kernel's bf16-operand / f32-accumulate math.
    h = x_nchw.reshape(x_nchw.shape[0], -1).astype(jnp.bfloat16)
    for idx, (w, b) in enumerate(params):
        h = (jnp.dot(h, w.astype(jnp.bfloat16), preferred_element_type=jnp.float32)
             + b.astype(jnp.float32))
        if idx < len(params) - 1:
            h = jnp.maximum(h, 0.0).astype(jnp.bfloat16)
    return h


def mlp_reference_f32(x_nchw, params):
    h = x_nchw.reshape(x_nchw.shape[0], -1).astype(jnp.float32)
    for idx, (w, b) in enumerate(params):
        h = h @ w + b
        if idx < len(params) - 1:
            h = jnp.maximum(h, 0.0)
    return h


if __name__ == "__main__":
    params = init_params(seed=0)

    # Small MNIST-like batch: (batch=4, channels=1, 28, 28) -> 784 flattened features.
    key = jax.random.PRNGKey(0)
    x = jax.random.normal(key, (4, 1, 28, 28), dtype=jnp.float32)

    out = mlp_forward(x, params)
    out = jax.block_until_ready(out)
    assert out.shape == (4, 10)

    ref_bf16 = mlp_reference_bf16(x, params)
    assert jnp.allclose(out, ref_bf16, atol=2e-2, rtol=2e-2), "mismatch vs bf16 reference"

    ref_f32 = mlp_reference_f32(x, params)
    assert jnp.allclose(out, ref_f32, atol=1e-1, rtol=1e-1), "mismatch vs f32 reference"

    print("KERNEL_OK")
</pallas_src>

<mosaic_0001>
module attributes {stable_mosaic.version = 11 : i64} {
  func.func @mlp_kernel(%arg0: i32, %arg1: memref<8x896xbf16, #tpu.memory_space<vmem>>, %arg2: memref<896x1024xbf16, #tpu.memory_space<vmem>>, %arg3: memref<1x1024xf32, #tpu.memory_space<vmem>>, %arg4: memref<1024x256xbf16, #tpu.memory_space<vmem>>, %arg5: memref<1x256xf32, #tpu.memory_space<vmem>>, %arg6: memref<256x128xbf16, #tpu.memory_space<vmem>>, %arg7: memref<1x128xf32, #tpu.memory_space<vmem>>, %arg8: memref<128x128xbf16, #tpu.memory_space<vmem>>, %arg9: memref<1x128xf32, #tpu.memory_space<vmem>>, %arg10: memref<128x128xbf16, #tpu.memory_space<vmem>>, %arg11: memref<1x128xf32, #tpu.memory_space<vmem>>, %arg12: memref<8x128xf32, #tpu.memory_space<vmem>>) attributes {dimension_semantics = [#tpu.dimension_semantics<parallel>], iteration_bounds = array<i64: 1>, scalar_prefetch = 0 : i64, scratch_operands = 0 : i64, tpu.core_type = #tpu.core_type<tc>, window_params = [{transform_indices = @transform_0, window_bounds = array<i64: 8, 896>}, {pipeline_mode = #tpu.pipeline_mode<synchronous>, transform_indices = @transform_1, window_bounds = array<i64: 896, 1024>}, {pipeline_mode = #tpu.pipeline_mode<synchronous>, transform_indices = @transform_2, window_bounds = array<i64: 1, 1024>}, {pipeline_mode = #tpu.pipeline_mode<synchronous>, transform_indices = @transform_3, window_bounds = array<i64: 1024, 256>}, {pipeline_mode = #tpu.pipeline_mode<synchronous>, transform_indices = @transform_4, window_bounds = array<i64: 1, 256>}, {pipeline_mode = #tpu.pipeline_mode<synchronous>, transform_indices = @transform_5, window_bounds = array<i64: 256, 128>}, {pipeline_mode = #tpu.pipeline_mode<synchronous>, transform_indices = @transform_6, window_bounds = array<i64: 1, 128>}, {pipeline_mode = #tpu.pipeline_mode<synchronous>, transform_indices = @transform_7, window_bounds = array<i64: 128, 128>}, {pipeline_mode = #tpu.pipeline_mode<synchronous>, transform_indices = @transform_8, window_bounds = array<i64: 1, 128>}, {pipeline_mode = #tpu.pipeline_mode<synchronous>, transform_indices = @transform_9, window_bounds = array<i64: 128, 128>}, {pipeline_mode = #tpu.pipeline_mode<synchronous>, transform_indices = @transform_10, window_bounds = array<i64: 1, 128>}, {transform_indices = @transform_11, window_bounds = array<i64: 8, 128>}]} {
    %c0 = arith.constant 0 : index
    %c0_0 = arith.constant 0 : index
    %0 = vector.load %arg1[%c0, %c0_0] : memref<8x896xbf16, #tpu.memory_space<vmem>>, vector<8x896xbf16>
    %c0_1 = arith.constant 0 : index
    %c0_2 = arith.constant 0 : index
    %1 = vector.load %arg2[%c0_1, %c0_2] : memref<896x1024xbf16, #tpu.memory_space<vmem>>, vector<896x1024xbf16>
    %cst = arith.constant dense<0.000000e+00> : vector<8x1024xf32>
    %2 = tpu.matmul %0, %1, %cst {dimension_numbers = #tpu.dot_dimension_numbers<[1], [0], [0], [1], [0, 0, 1, 1], [], []>} : vector<8x896xbf16>, vector<896x1024xbf16>, vector<8x1024xf32> -> vector<8x1024xf32>
    %c0_3 = arith.constant 0 : index
    %c0_4 = arith.constant 0 : index
    %3 = vector.load %arg3[%c0_3, %c0_4] : memref<1x1024xf32, #tpu.memory_space<vmem>>, vector<1x1024xf32>
    %4 = vector.broadcast %3 : vector<1x1024xf32> to vector<8x1024xf32>
    %5 = arith.addf %2, %4 : vector<8x1024xf32>
    %cst_5 = arith.constant 0.000000e+00 : f32
    %6 = vector.broadcast %cst_5 : f32 to vector<8x1024xf32>
    %7 = arith.maximumf %5, %6 : vector<8x1024xf32>
    %8 = arith.truncf %7 : vector<8x1024xf32> to vector<8x1024xbf16>
    %c0_6 = arith.constant 0 : index
    %c0_7 = arith.constant 0 : index
    %9 = vector.load %arg4[%c0_6, %c0_7] : memref<1024x256xbf16, #tpu.memory_space<vmem>>, vector<1024x256xbf16>
    %cst_8 = arith.constant dense<0.000000e+00> : vector<8x256xf32>
    %10 = tpu.matmul %8, %9, %cst_8 {dimension_numbers = #tpu.dot_dimension_numbers<[1], [0], [0], [1], [0, 0, 1, 1], [], []>} : vector<8x1024xbf16>, vector<1024x256xbf16>, vector<8x256xf32> -> vector<8x256xf32>
    %c0_9 = arith.constant 0 : index
    %c0_10 = arith.constant 0 : index
    %11 = vector.load %arg5[%c0_9, %c0_10] : memref<1x256xf32, #tpu.memory_space<vmem>>, vector<1x256xf32>
    %12 = vector.broadcast %11 : vector<1x256xf32> to vector<8x256xf32>
    %13 = arith.addf %10, %12 : vector<8x256xf32>
    %cst_11 = arith.constant 0.000000e+00 : f32
    %14 = vector.broadcast %cst_11 : f32 to vector<8x256xf32>
    %15 = arith.maximumf %13, %14 : vector<8x256xf32>
    %16 = arith.truncf %15 : vector<8x256xf32> to vector<8x256xbf16>
    %c0_12 = arith.constant 0 : index
    %c0_13 = arith.constant 0 : index
    %17 = vector.load %arg6[%c0_12, %c0_13] : memref<256x128xbf16, #tpu.memory_space<vmem>>, vector<256x128xbf16>
    %cst_14 = arith.constant dense<0.000000e+00> : vector<8x128xf32>
    %18 = tpu.matmul %16, %17, %cst_14 {dimension_numbers = #tpu.dot_dimension_numbers<[1], [0], [0], [1], [0, 0, 1, 1], [], []>} : vector<8x256xbf16>, vector<256x128xbf16>, vector<8x128xf32> -> vector<8x128xf32>
    %c0_15 = arith.constant 0 : index
    %c0_16 = arith.constant 0 : index
    %19 = vector.load %arg7[%c0_15, %c0_16] : memref<1x128xf32, #tpu.memory_space<vmem>>, vector<1x128xf32>
    %20 = vector.broadcast %19 : vector<1x128xf32> to vector<8x128xf32>
    %21 = arith.addf %18, %20 : vector<8x128xf32>
    %cst_17 = arith.constant 0.000000e+00 : f32
    %22 = vector.broadcast %cst_17 : f32 to vector<8x128xf32>
    %23 = arith.maximumf %21, %22 : vector<8x128xf32>
    %24 = arith.truncf %23 : vector<8x128xf32> to vector<8x128xbf16>
    %c0_18 = arith.constant 0 : index
    %c0_19 = arith.constant 0 : index
    %25 = vector.load %arg8[%c0_18, %c0_19] : memref<128x128xbf16, #tpu.memory_space<vmem>>, vector<128x128xbf16>
    %cst_20 = arith.constant dense<0.000000e+00> : vector<8x128xf32>
    %26 = tpu.matmul %24, %25, %cst_20 {dimension_numbers = #tpu.dot_dimension_numbers<[1], [0], [0], [1], [0, 0, 1, 1], [], []>} : vector<8x128xbf16>, vector<128x128xbf16>, vector<8x128xf32> -> vector<8x128xf32>
    %c0_21 = arith.constant 0 : index
    %c0_22 = arith.constant 0 : index
    %27 = vector.load %arg9[%c0_21, %c0_22] : memref<1x128xf32, #tpu.memory_space<vmem>>, vector<1x128xf32>
    %28 = vector.broadcast %27 : vector<1x128xf32> to vector<8x128xf32>
    %29 = arith.addf %26, %28 : vector<8x128xf32>
    %cst_23 = arith.constant 0.000000e+00 : f32
    %30 = vector.broadcast %cst_23 : f32 to vector<8x128xf32>
    %31 = arith.maximumf %29, %30 : vector<8x128xf32>
    %32 = arith.truncf %31 : vector<8x128xf32> to vector<8x128xbf16>
    %c0_24 = arith.constant 0 : index
    %c0_25 = arith.constant 0 : index
    %33 = vector.load %arg10[%c0_24, %c0_25] : memref<128x128xbf16, #tpu.memory_space<vmem>>, vector<128x128xbf16>
    %cst_26 = arith.constant dense<0.000000e+00> : vector<8x128xf32>
    %34 = tpu.matmul %32, %33, %cst_26 {dimension_numbers = #tpu.dot_dimension_numbers<[1], [0], [0], [1], [0, 0, 1, 1], [], []>} : vector<8x128xbf16>, vector<128x128xbf16>, vector<8x128xf32> -> vector<8x128xf32>
    %c0_27 = arith.constant 0 : index
    %c0_28 = arith.constant 0 : index
    %35 = vector.load %arg11[%c0_27, %c0_28] : memref<1x128xf32, #tpu.memory_space<vmem>>, vector<1x128xf32>
    %36 = vector.broadcast %35 : vector<1x128xf32> to vector<8x128xf32>
    %37 = arith.addf %34, %36 : vector<8x128xf32>
    %c0_29 = arith.constant 0 : index
    %c0_30 = arith.constant 0 : index
    %38 = vector.load %arg12[%c0_29, %c0_30] : memref<8x128xf32, #tpu.memory_space<vmem>>, vector<8x128xf32>
    tpu.vector_store %arg12[%c0_29, %c0_30], %37 {strides = array<i32>} : memref<8x128xf32, #tpu.memory_space<vmem>>, vector<8x128xf32>,
    return
  }
  func.func @transform_0(%arg0: i32) -> (i32, i32) {
    %c0_i32 = arith.constant 0 : i32
    %c0_i32_0 = arith.constant 0 : i32
    return %arg0, %c0_i32 : i32, i32
  }
  func.func @transform_1(%arg0: i32) -> (i32, i32) {
    %c0_i32 = arith.constant 0 : i32
    %c0_i32_0 = arith.constant 0 : i32
    %c0_i32_1 = arith.constant 0 : i32
    return %c0_i32, %c0_i32_0 : i32, i32
  }
  func.func @transform_2(%arg0: i32) -> (i32, i32) {
    %c0_i32 = arith.constant 0 : i32
    %c0_i32_0 = arith.constant 0 : i32
    %c0_i32_1 = arith.constant 0 : i32
    return %c0_i32, %c0_i32_0 : i32, i32
  }
  func.func @transform_3(%arg0: i32) -> (i32, i32) {
    %c0_i32 = arith.constant 0 : i32
    %c0_i32_0 = arith.constant 0 : i32
    %c0_i32_1 = arith.constant 0 : i32
    return %c0_i32, %c0_i32_0 : i32, i32
  }
  func.func @transform_4(%arg0: i32) -> (i32, i32) {
    %c0_i32 = arith.constant 0 : i32
    %c0_i32_0 = arith.constant 0 : i32
    %c0_i32_1 = arith.constant 0 : i32
    return %c0_i32, %c0_i32_0 : i32, i32
  }
  func.func @transform_5(%arg0: i32) -> (i32, i32) {
    %c0_i32 = arith.constant 0 : i32
    %c0_i32_0 = arith.constant 0 : i32
    %c0_i32_1 = arith.constant 0 : i32
    return %c0_i32, %c0_i32_0 : i32, i32
  }
  func.func @transform_6(%arg0: i32) -> (i32, i32) {
    %c0_i32 = arith.constant 0 : i32
    %c0_i32_0 = arith.constant 0 : i32
    %c0_i32_1 = arith.constant 0 : i32
    return %c0_i32, %c0_i32_0 : i32, i32
  }
  func.func @transform_7(%arg0: i32) -> (i32, i32) {
    %c0_i32 = arith.constant 0 : i32
    %c0_i32_0 = arith.constant 0 : i32
    %c0_i32_1 = arith.constant 0 : i32
    return %c0_i32, %c0_i32_0 : i32, i32
  }
  func.func @transform_8(%arg0: i32) -> (i32, i32) {
    %c0_i32 = arith.constant 0 : i32
    %c0_i32_0 = arith.constant 0 : i32
    %c0_i32_1 = arith.constant 0 : i32
    return %c0_i32, %c0_i32_0 : i32, i32
  }
  func.func @transform_9(%arg0: i32) -> (i32, i32) {
    %c0_i32 = arith.constant 0 : i32
    %c0_i32_0 = arith.constant 0 : i32
    %c0_i32_1 = arith.constant 0 : i32
    return %c0_i32, %c0_i32_0 : i32, i32
  }
  func.func @transform_10(%arg0: i32) -> (i32, i32) {
    %c0_i32 = arith.constant 0 : i32
    %c0_i32_0 = arith.constant 0 : i32
    %c0_i32_1 = arith.constant 0 : i32
    return %c0_i32, %c0_i32_0 : i32, i32
  }
  func.func @transform_11(%arg0: i32) -> (i32, i32) {
    %c0_i32 = arith.constant 0 : i32
    %c0_i32_0 = arith.constant 0 : i32
    return %arg0, %c0_i32 : i32, i32
  }
}

</mosaic_0001>

<bundles_post_ra>
// kernel: tpu_custom_call.1
= control target key start
LH: loop header
LB: loop body
LE: loop exit
PB: predicated region body
PF: predicated region fallthrough
CT: control target
= control target key end

     0   :  { %16 = vsyncpa [#allocation3], 0  ;;  %s6631_s0 = inlined_call_operand.hbm [shape: bf16[8,896], index: 0, kind: input, shape index: {}]   ;;  %s6632_s1 = inlined_call_operand.hbm [shape: bf16[896,1024], index: 1, kind: input, shape index: {}]   ;;  %s6633_s2 = inlined_call_operand.hbm [shape: f32[1,1024], index: 2, kind: input, shape index: {}]   ;;  %s6634_s3 = inlined_call_operand.hbm [shape: bf16[1024,256], index: 3, kind: input, shape index: {}]   ;;  %s6635_s4 = inlined_call_operand.hbm [shape: f32[1,256], index: 4, kind: input, shape index: {}]   ;;  %s6636_s5 = inlined_call_operand.hbm [shape: bf16[256,128], index: 5, kind: input, shape index: {}]   ;;  %s6637_s6 = inlined_call_operand.hbm [shape: f32[1,128], index: 6, kind: input, shape index: {}]   ;;  %s6638_s7 = inlined_call_operand.hbm [shape: bf16[128,128], index: 7, kind: input, shape index: {}]   ;;  %s6639_s8 = inlined_call_operand.hbm [shape: f32[1,128], index: 8, kind: input, shape index: {}]   ;;  %s6640_s9 = inlined_call_operand.hbm [shape: bf16[128,128], index: 9, kind: input, shape index: {}]   ;;  %s6641_s10 = inlined_call_operand.hbm [shape: f32[1,128], index: 10, kind: input, shape index: {}]   ;;  %s6642_s11 = inlined_call_operand.hbm [shape: f32[8,128], index: 11, kind: output, shape index: {}]  }
   0x1   :  { %17 = vsyncpa [#allocation6], 0 }
   0x2   :  { %18 = vsyncpa [#allocation9], 0 }
   0x3   :  { %19 = vsyncpa [#allocation12], 0 }
   0x4   :  { %20 = vsyncpa [#allocation15], 0 }
   0x5   :  { %21 = vsyncpa [#allocation18], 0 }
   0x6   :  { %22 = vsyncpa [#allocation4], 0  ;;  %s6276_s17 = smov [#allocation5]   ;;  %s5998_s21 = scalar_lea.hbm %s6632_s1, 57344 }
   0x7   :  { %s38_s18 = sshll.u32 %s6276_s17, 4  ;;  %p5999_p0 = scmp.ne.s32.totalorder %s6632_s1, %s5998_s21  ;;  %s39_s18 = int_to_ptr.vmem [resolvable:$true] %s38_s18 }
   0x8   :  { %p6002_p1 = scmp.lt.u32.totalorder %s5998_s21, %s6632_s1 }
   0xa   :  { %p6004_p2 = pnand %p6002_p1, %p5999_p0 }
   0xc   :  { %6007 = shalt.err (!%p6004_p2)
}
   0xd   :  { %s6008_s26 = scalar_lea.vmem %s39_s18, 57344  ;;  %p6013_p4 = scmp.lt.s32.totalorder %s39_s18, %s39_s18 }
   0xe   :  { %p6009_p3 = scmp.ne.s32.totalorder %s39_s18, %s6008_s26  ;;  %p6014_p5 = scmp.lt.s32.totalorder %s6008_s26, %s6008_s26 }
  0x10   :  { %p6015_p6 = por %p6014_p5, %p6013_p4 }
  0x12   :  { %p6016_p7 = pnand %p6015_p6, %p6009_p3 }
  0x14   :  { %6019 = shalt.err (!%p6016_p7)
}
  0x15   :  { %s6277_s27 = smov 512   ;;  %s6278_s28 = smov 32  }
  0x16   :  { %44 = dma.hbm_to_vmem [thread:$0]  %s6632_s1, 57344, %s39_s18, [#allocation6], %s6277_s27, %s6277_s27, %s6278_s28  }
  0x17   :  { %s6279_s12 = smov [#allocation8]   ;;  %s6020_s16 = scalar_lea.hbm %s6634_s3, 16384 }
  0x18   :  { %s60_s13 = sshll.u32 %s6279_s12, 4  ;;  %p6021_p8 = scmp.ne.s32.totalorder %s6634_s3, %s6020_s16  ;;  %s61_s13 = int_to_ptr.vmem [resolvable:$true] %s60_s13 }
  0x19   :  { %p6024_p9 = scmp.lt.u32.totalorder %s6020_s16, %s6634_s3 }
  0x1b   :  { %p6026_p10 = pnand %p6024_p9, %p6021_p8 }
  0x1d   :  { %6029 = shalt.err (!%p6026_p10)
}
  0x1e   :  { %s6030_s22 = scalar_lea.vmem %s61_s13, 16384  ;;  %p6035_p12 = scmp.lt.s32.totalorder %s61_s13, %s61_s13 }
  0x1f   :  { %p6031_p11 = scmp.ne.s32.totalorder %s61_s13, %s6030_s22  ;;  %p6036_p13 = scmp.lt.s32.totalorder %s6030_s22, %s6030_s22 }
  0x21   :  { %p6037_p0 = por %p6036_p13, %p6035_p12 }
  0x23   :  { %p6038_p1 = pnand %p6037_p0, %p6031_p11 }
  0x25   :  { %6041 = shalt.err (!%p6038_p1)
}
  0x26   :  { %s6280_s1 = smov 128   ;;  %s6281_s18 = smov 8  }
  0x27   :  { %66 = dma.hbm_to_vmem [thread:$0]  %s6634_s3, 16384, %s61_s13, [#allocation9], %s6280_s1, %s6280_s1, %s6281_s18  }
  0x28   :  { %s6282_s25 = smov [#allocation11]   ;;  %s6042_s29 = scalar_lea.hbm %s6636_s5, 2048 }
  0x29   :  { %s82_s26 = sshll.u32 %s6282_s25, 4  ;;  %p6043_p2 = scmp.ne.s32.totalorder %s6636_s5, %s6042_s29  ;;  %s83_s26 = int_to_ptr.vmem [resolvable:$true] %s82_s26 }
  0x2a   :  { %p6046_p3 = scmp.lt.u32.totalorder %s6042_s29, %s6636_s5 }
  0x2c   :  { %p6048_p4 = pnand %p6046_p3, %p6043_p2 }
  0x2e   :  { %6051 = shalt.err (!%p6048_p4)
}
  0x2f   :  { %s6052_s16 = scalar_lea.vmem %s83_s26, 2048  ;;  %p6057_p6 = scmp.lt.s32.totalorder %s83_s26, %s83_s26 }
  0x30   :  { %p6053_p5 = scmp.ne.s32.totalorder %s83_s26, %s6052_s16  ;;  %p6058_p7 = scmp.lt.s32.totalorder %s6052_s16, %s6052_s16 }
  0x32   :  { %p6059_p8 = por %p6058_p7, %p6057_p6 }
  0x34   :  { %p6060_p9 = pnand %p6059_p8, %p6053_p5 }
  0x36   :  { %6063 = shalt.err (!%p6060_p9)
}
  0x37   :  { %s6283_s3 = smov 64   ;;  %s6284_s13 = smov 4  }
  0x38   :  { %88 = dma.hbm_to_vmem [thread:$0]  %s6636_s5, 2048, %s83_s26, [#allocation12], %s6283_s3, %s6283_s3, %s6284_s13  }
  0x39   :  { %s6285_s20 = smov [#allocation14]   ;;  %s6286_s22 = smov [#allocation17]  }
  0x3a   :  { %s104_s21 = sshll.u32 %s6285_s20, 4  ;;  %s126_s1 = sshll.u32 %s6286_s22, 4  ;;  %s105_s21 = int_to_ptr.vmem [resolvable:$true] %s104_s21  ;;  %s127_s1 = int_to_ptr.vmem [resolvable:$true] %s126_s1 }
  0x3b   :  { %s6064_s24 = scalar_lea.hbm %s6638_s7, 1024 }
  0x3c   :  { %p6065_p10 = scmp.ne.s32.totalorder %s6638_s7, %s6064_s24  ;;  %p6068_p11 = scmp.lt.u32.totalorder %s6064_s24, %s6638_s7 }
  0x3e   :  { %p6070_p12 = pnand %p6068_p11, %p6065_p10 }
  0x40   :  { %6073 = shalt.err (!%p6070_p12)
}
  0x41   :  { %s6074_s5 = scalar_lea.vmem %s105_s21, 1024  ;;  %p6079_p0 = scmp.lt.s32.totalorder %s105_s21, %s105_s21 }
  0x42   :  { %p6075_p13 = scmp.ne.s32.totalorder %s105_s21, %s6074_s5  ;;  %p6080_p1 = scmp.lt.s32.totalorder %s6074_s5, %s6074_s5 }
  0x44   :  { %p6081_p2 = por %p6080_p1, %p6079_p0 }
  0x46   :  { %p6082_p3 = pnand %p6081_p2, %p6075_p13 }
  0x48   :  { %6085 = shalt.err (!%p6082_p3)
}
  0x49   :  { %110 = dma.hbm_to_vmem [thread:$0]  %s6638_s7, 1024, %s105_s21, [#allocation15], %s6283_s3, %s6283_s3, %s6284_s13  }
  0x4a   :  { %s6086_s15 = scalar_lea.hbm %s6640_s9, 1024 }
  0x4b   :  { %p6087_p4 = scmp.ne.s32.totalorder %s6640_s9, %s6086_s15  ;;  %p6090_p5 = scmp.lt.u32.totalorder %s6086_s15, %s6640_s9 }
  0x4d   :  { %p6092_p6 = pnand %p6090_p5, %p6087_p4 }
  0x4f   :  { %6095 = shalt.err (!%p6092_p6)
}
  0x50   :  { %s6096_s22 = scalar_lea.vmem %s127_s1, 1024  ;;  %p6101_p8 = scmp.lt.s32.totalorder %s127_s1, %s127_s1 }
  0x51   :  { %p6097_p7 = scmp.ne.s32.totalorder %s127_s1, %s6096_s22  ;;  %p6102_p9 = scmp.lt.s32.totalorder %s6096_s22, %s6096_s22 }
  0x53   :  { %p6103_p10 = por %p6102_p9, %p6101_p8 }
  0x55   :  { %p6104_p11 = pnand %p6103_p10, %p6097_p7 }
  0x57   :  { %6107 = shalt.err (!%p6104_p11)
}
  0x58   :  { %132 = dma.hbm_to_vmem [thread:$0]  %s6640_s9, 1024, %s127_s1, [#allocation18], %s6283_s3, %s6283_s3, %s6284_s13  }
  0x59   :  { %s6287_s18 = smov [#allocation2]   ;;  %s6288_s24 = smov [#allocation7]  }
  0x5a   :  { %s29_s23 = sshll.u32 %s6287_s18, 4  ;;  %s51_s25 = sshll.u32 %s6288_s24, 4  ;;  %s30_s23 = int_to_ptr.vmem [resolvable:$true] %s29_s23  ;;  %s52_s25 = int_to_ptr.vmem [resolvable:$true] %s51_s25 }
  0x5b   :  { %s6108_s29 = scalar_lea.hbm %s6631_s0, 448 }
  0x5c   :  { %p6109_p12 = scmp.ne.s32.totalorder %s6631_s0, %s6108_s29  ;;  %p6112_p13 = scmp.lt.u32.totalorder %s6108_s29, %s6631_s0 }
  0x5e   :  { %p6114_p0 = pnand %p6112_p13, %p6109_p12 }
  0x60   :  { %6117 = shalt.err (!%p6114_p0)
}
  0x61   :  { %s6118_s9 = scalar_lea.vmem %s30_s23, 448  ;;  %p6123_p2 = scmp.lt.s32.totalorder %s30_s23, %s30_s23 }
  0x62   :  { %p6119_p1 = scmp.ne.s32.totalorder %s30_s23, %s6118_s9  ;;  %p6124_p3 = scmp.lt.s32.totalorder %s6118_s9, %s6118_s9 }
  0x64   :  { %p6125_p4 = por %p6124_p3, %p6123_p2 }
  0x66   :  { %p6126_p5 = pnand %p6125_p4, %p6119_p1 }
  0x68   :  { %6129 = shalt.err (!%p6126_p5)
}
  0x69   :  { %32 = dma.hbm_to_vmem [thread:$0]  %s6631_s0, 448, %s30_s23, [#allocation3]  }
  0x6a   :  { %s6130_s15 = scalar_lea.hbm %s6633_s2, 128 }
  0x6b   :  { %p6131_p6 = scmp.ne.s32.totalorder %s6633_s2, %s6130_s15  ;;  %p6134_p7 = scmp.lt.u32.totalorder %s6130_s15, %s6633_s2 }
  0x6d   :  { %p6136_p8 = pnand %p6134_p7, %p6131_p6 }
  0x6f   :  { %6139 = shalt.err (!%p6136_p8)
}
  0x70   :  { %s6140_s22 = scalar_lea.vmem %s52_s25, 128  ;;  %p6145_p10 = scmp.lt.s32.totalorder %s52_s25, %s52_s25 }
  0x71   :  { %p6141_p9 = scmp.ne.s32.totalorder %s52_s25, %s6140_s22  ;;  %p6146_p11 = scmp.lt.s32.totalorder %s6140_s22, %s6140_s22 }
  0x73   :  { %p6147_p12 = por %p6146_p11, %p6145_p10 }
  0x75   :  { %p6148_p13 = pnand %p6147_p12, %p6141_p9 }
  0x77   :  { %6151 = shalt.err (!%p6148_p13)
}
  0x78   :  { %54 = dma.hbm_to_vmem [thread:$0]  %s6633_s2, 128, %s52_s25, [#allocation6]  }
  0x79   :  { %s6289_s21 = smov [#allocation10]   ;;  %s6290_s23 = smov [#allocation13]  }
  0x7a   :  { %s73_s18 = sshll.u32 %s6289_s21, 4  ;;  %s95_s24 = sshll.u32 %s6290_s23, 4  ;;  %s74_s18 = int_to_ptr.vmem [resolvable:$true] %s73_s18  ;;  %s96_s24 = int_to_ptr.vmem [resolvable:$true] %s95_s24 }
  0x7b   :  { %s6152_s29 = scalar_lea.hbm %s6635_s4, 32 }
  0x7c   :  { %p6153_p0 = scmp.ne.s32.totalorder %s6635_s4, %s6152_s29  ;;  %p6156_p1 = scmp.lt.u32.totalorder %s6152_s29, %s6635_s4 }
  0x7e   :  { %p6158_p2 = pnand %p6156_p1, %p6153_p0 }
  0x80   :  { %6161 = shalt.err (!%p6158_p2)
}
  0x81   :  { %s6162_s2 = scalar_lea.vmem %s74_s18, 32  ;;  %p6167_p4 = scmp.lt.s32.totalorder %s74_s18, %s74_s18 }
  0x82   :  { %p6163_p3 = scmp.ne.s32.totalorder %s74_s18, %s6162_s2  ;;  %p6168_p5 = scmp.lt.s32.totalorder %s6162_s2, %s6162_s2 }
  0x84   :  { %p6169_p6 = por %p6168_p5, %p6167_p4 }
  0x86   :  { %p6170_p7 = pnand %p6169_p6, %p6163_p3 }
  0x88   :  { %6173 = shalt.err (!%p6170_p7)
}
  0x89   :  { %76 = dma.hbm_to_vmem [thread:$0]  %s6635_s4, 32, %s74_s18, [#allocation9]  }
  0x8a   :  { %s6174_s1 = scalar_lea.hbm %s6637_s6, 16 }
  0x8b   :  { %p6175_p8 = scmp.ne.s32.totalorder %s6637_s6, %s6174_s1  ;;  %p6178_p9 = scmp.lt.u32.totalorder %s6174_s1, %s6637_s6 }
  0x8d   :  { %p6180_p10 = pnand %p6178_p9, %p6175_p8 }
  0x8f   :  { %6183 = shalt.err (!%p6180_p10)
}
  0x90   :  { %s6184_s19 = scalar_lea.vmem %s96_s24, 16  ;;  %s6188_s20 = scalar_lea.vmem %s96_s24, 32 }
  0x91   :  { %p6185_p11 = scmp.ne.s32.totalorder %s96_s24, %s6184_s19  ;;  %p6189_p12 = scmp.lt.s32.totalorder %s96_s24, %s96_s24 }
  0x92   :  { %p6190_p13 = scmp.lt.s32.totalorder %s6188_s20, %s6184_s19 }
  0x94   :  { %p6191_p0 = por %p6190_p13, %p6189_p12 }
  0x96   :  { %p6192_p1 = pnand %p6191_p0, %p6185_p11 }
  0x98   :  { %6195 = shalt.err (!%p6192_p1)
}
  0x99   :  { %98 = dma.hbm_to_vmem [thread:$0]  %s6637_s6, 16, %s96_s24, [#allocation12]  }
  0x9a   :  { %s6291_s0 = smov [#allocation16]   ;;  %s6292_s21 = smov [#allocation19]  }
  0x9b   :  { %s117_s7 = sshll.u32 %s6291_s0, 4  ;;  %s139_s18 = sshll.u32 %s6292_s21, 4  ;;  %s118_s7 = int_to_ptr.vmem [resolvable:$true] %s117_s7  ;;  %s140_s18 = int_to_ptr.vmem [resolvable:$true] %s139_s18 }
  0x9c   :  { %s6196_s28 = scalar_lea.hbm %s6639_s8, 16 }
  0x9d   :  { %p6197_p2 = scmp.ne.s32.totalorder %s6639_s8, %s6196_s28  ;;  %p6200_p3 = scmp.lt.u32.totalorder %s6196_s28, %s6639_s8 }
  0x9f   :  { %p6202_p4 = pnand %p6200_p3, %p6197_p2 }
  0xa1   :  { %6205 = shalt.err (!%p6202_p4)
}
  0xa2   :  { %s6206_s6 = scalar_lea.vmem %s118_s7, 16  ;;  %s6210_s24 = scalar_lea.vmem %s118_s7, 32 }
  0xa3   :  { %p6207_p5 = scmp.ne.s32.totalorder %s118_s7, %s6206_s6  ;;  %p6211_p6 = scmp.lt.s32.totalorder %s118_s7, %s118_s7 }
  0xa4   :  { %p6212_p7 = scmp.lt.s32.totalorder %s6210_s24, %s6206_s6 }
  0xa6   :  { %p6213_p8 = por %p6212_p7, %p6211_p6 }
  0xa8   :  { %p6214_p9 = pnand %p6213_p8, %p6207_p5 }
  0xaa   :  { %6217 = shalt.err (!%p6214_p9)
}
  0xab   :  { %120 = dma.hbm_to_vmem [thread:$0]  %s6639_s8, 16, %s118_s7, [#allocation15]  }
  0xac   :  { %s6218_s3 = scalar_lea.hbm %s6641_s10, 16 }
  0xad   :  { %p6219_p10 = scmp.ne.s32.totalorder %s6641_s10, %s6218_s3  ;;  %p6222_p11 = scmp.lt.u32.totalorder %s6218_s3, %s6641_s10 }
  0xaf   :  { %p6224_p12 = pnand %p6222_p11, %p6219_p10 }
  0xb1   :  { %6227 = shalt.err (!%p6224_p12)
}
  0xb2   :  { %s6228_s16 = scalar_lea.vmem %s140_s18, 16  ;;  %s6232_s17 = scalar_lea.vmem %s140_s18, 32 }
  0xb3   :  { %p6229_p13 = scmp.ne.s32.totalorder %s140_s18, %s6228_s16  ;;  %p6233_p0 = scmp.lt.s32.totalorder %s140_s18, %s140_s18 }
  0xb4   :  { %p6234_p1 = scmp.lt.s32.totalorder %s6232_s17, %s6228_s16 }
  0xb6   :  { %p6235_p2 = por %p6234_p1, %p6233_p0 }
  0xb8   :  { %p6236_p3 = pnand %p6235_p2, %p6229_p13 }
  0xba   :  { %6239 = shalt.err (!%p6236_p3)
}
  0xbb   :  { %142 = dma.hbm_to_vmem [thread:$0]  %s6641_s10, 16, %s140_s18, [#allocation18]  }
  0xbc   :  { %6262 = dma.done.wait [#allocation3], 448  }
  0xbd   :  { %6263 = vsyncadd [#allocation3], 4294966848 }
  0xbe   :  { %6264 = dma.done.wait [#allocation6], 57472  }
  0xbf   :  { %6265 = vsyncadd [#allocation6], 4294909824 }
  0xc0   :  { %6266 = dma.done.wait [#allocation9], 16416  }
  0xc1   :  { %6267 = vsyncadd [#allocation9], 4294950880 }
  0xc2   :  { %6268 = dma.done.wait [#allocation12], 2064  }
  0xc3   :  { %6269 = vsyncadd [#allocation12], 4294965232 }
  0xc4   :  { %6270 = dma.done.wait [#allocation15], 1040  }
  0xc5   :  { %6271 = vsyncadd [#allocation15], 4294966256 }
  0xc6   :  { %6272 = dma.done.wait [#allocation18], 1040  }
  0xc7   :  { %6273 = vsyncadd [#allocation18], 4294966256  ;;  %v181_v0 = vld [vmem:[#allocation5] sm:$0xff]  ;;  %v6500_v54 = vld [vmem:[#allocation2 + $0x8] sm:$0xff]  ;;  %vm6295_vm0 = vmmov 0   ;;  %s6296_s10 = smov [#allocation20]  }
  0xc8   :  { %v185_v1 = vld [vmem:[#allocation5 + $0x20] sm:$0xff]  ;;  %v6508_v61 = vcombine.high %v6500_v54, %v6500_v54  ;;  %s4964_s20 = sshll.u32 %s6296_s10, 4  ;;  %s4965_s20 = int_to_ptr.vmem [resolvable:$true] %s4964_s20 }
  0xc9   :  { %v309_v2 = vld [vmem:[#allocation5 + $0x400] sm:$0xff]  ;;  %v4986_v3 = vcombine.high %v181_v0, %v185_v1  ;;  %v4985_v5 = vcombine.low %v181_v0, %v185_v1  ;;  %s6240_s4 = scalar_lea.vmem %s4965_s20, 128  ;;  %p6245_p5 = scmp.lt.s32.totalorder %s4965_s20, %s4965_s20 }
  0xca   :  { %v313_v4 = vld [vmem:[#allocation5 + $0x420] sm:$0xff]  ;;  %3009 = vmatprep.mubr.bf16.mxu0 %v6508_v61  ;;  %p6241_p4 = scmp.ne.s32.totalorder %s4965_s20, %s6240_s4  ;;  %p6246_p6 = scmp.lt.s32.totalorder %s6240_s4, %s6240_s4 }
  0xcb   :  { %v189_v6 = vld [vmem:[#allocation5 + $0x40] sm:$0xff]  ;;  %v5114_v8 = vcombine.high %v309_v2, %v313_v4  ;;  %v5113_v9 = vcombine.low %v309_v2, %v313_v4  ;;  %2936 = vmatprep.subr.bf16.mxu1 %v4986_v3 }
  0xcc   :  { %v193_v7 = vld [vmem:[#allocation5 + $0x60] sm:$0xff]  ;;  %2937 = vmatpush1.bf16.msra.mxu1 %v4985_v5  ;;  %p6247_p7 = por %p6246_p6, %p6245_p5 }
  0xcd   :  { %v4994_v10 = vcombine.high %v189_v6, %v193_v7  ;;  %v317_v11 = vld [vmem:[#allocation5 + $0x440] sm:$0xff]  ;;  %2977 = vmatprep.subr.bf16.mxu0 %v5114_v8  ;;  %v4993_v18 = vcombine.low %v189_v6, %v193_v7 }
  0xce   :  { %v321_v12 = vld [vmem:[#allocation5 + $0x460] sm:$0xff]  ;;  %2978 = vmatpush1.bf16.msra.mxu0 %v5113_v9  ;;  %p6248_p8 = pnand %p6247_p7, %p6241_p4 }
  0xcf   :  { %v197_v13 = vld [vmem:[#allocation5 + $0x80] sm:$0xff]  ;;  %v5122_v14 = vcombine.high %v317_v11, %v321_v12  ;;  %2938 = vmatprep.subr.bf16.mxu1 %v4994_v10  ;;  %v5121_v19 = vcombine.low %v317_v11, %v321_v12 }
  0xd0   :  { %v201_v15 = vld [vmem:[#allocation5 + $0xa0] sm:$0xff]  ;;  %2939 = vmatpush1.bf16.msra.mxu1 %v4993_v18 }
  0xd1   :  { %v325_v16 = vld [vmem:[#allocation5 + $0x480] sm:$0xff]  ;;  %v5002_v20 = vcombine.high %v197_v13, %v201_v15  ;;  %2979 = vmatprep.subr.bf16.mxu0 %v5122_v14  ;;  %v5001_v26 = vcombine.low %v197_v13, %v201_v15 }
  0xd2   :  { %v329_v17 = vld [vmem:[#allocation5 + $0x4a0] sm:$0xff]  ;;  %2980 = vmatpush1.bf16.msra.mxu0 %v5121_v19 }
  0xd3   :  { %v5130_v21 = vcombine.high %v325_v16, %v329_v17  ;;  %v205_v22 = vld [vmem:[#allocation5 + $0xc0] sm:$0xff]  ;;  %2940 = vmatprep.subr.bf16.mxu1 %v5002_v20  ;;  %v5129_v27 = vcombine.low %v325_v16, %v329_v17 }
  0xd4   :  { %v209_v23 = vld [vmem:[#allocation5 + $0xe0] sm:$0xff]  ;;  %2941 = vmatpush1.bf16.msra.mxu1 %v5001_v26 }
  0xd5   :  { %v333_v24 = vld [vmem:[#allocation5 + $0x4c0] sm:$0xff]  ;;  %v5010_v28 = vcombine.high %v205_v22, %v209_v23  ;;  %2981 = vmatprep.subr.bf16.mxu0 %v5130_v21  ;;  %v5009_v34 = vcombine.low %v205_v22, %v209_v23 }
  0xd6   :  { %v337_v25 = vld [vmem:[#allocation5 + $0x4e0] sm:$0xff]  ;;  %2982 = vmatpush1.bf16.msra.mxu0 %v5129_v27 }
  0xd7   :  { %v5138_v29 = vcombine.high %v333_v24, %v337_v25  ;;  %v213_v30 = vld [vmem:[#allocation5 + $0x100] sm:$0xff]  ;;  %2942 = vmatprep.subr.bf16.mxu1 %v5010_v28  ;;  %v5137_v35 = vcombine.low %v333_v24, %v337_v25 }
  0xd8   :  { %v217_v31 = vld [vmem:[#allocation5 + $0x120] sm:$0xff]  ;;  %2943 = vmatpush1.bf16.msra.mxu1 %v5009_v34 }
  0xd9   :  { %v341_v32 = vld [vmem:[#allocation5 + $0x500] sm:$0xff]  ;;  %v5018_v36 = vcombine.high %v213_v30, %v217_v31  ;;  %2983 = vmatprep.subr.bf16.mxu0 %v5138_v29  ;;  %v5017_v42 = vcombine.low %v213_v30, %v217_v31 }
  0xda   :  { %v345_v33 = vld [vmem:[#allocation5 + $0x520] sm:$0xff]  ;;  %2984 = vmatpush1.bf16.msra.mxu0 %v5137_v35 }
  0xdb   :  { %v5146_v37 = vcombine.high %v341_v32, %v345_v33  ;;  %v221_v38 = vld [vmem:[#allocation5 + $0x140] sm:$0xff]  ;;  %2944 = vmatprep.subr.bf16.mxu1 %v5018_v36  ;;  %v5145_v43 = vcombine.low %v341_v32, %v345_v33 }
  0xdc   :  { %v225_v39 = vld [vmem:[#allocation5 + $0x160] sm:$0xff]  ;;  %2945 = vmatpush1.bf16.msra.mxu1 %v5017_v42 }
  0xdd   :  { %v349_v40 = vld [vmem:[#allocation5 + $0x540] sm:$0xff]  ;;  %v5026_v44 = vcombine.high %v221_v38, %v225_v39  ;;  %2985 = vmatprep.subr.bf16.mxu0 %v5146_v37  ;;  %v5025_v50 = vcombine.low %v221_v38, %v225_v39 }
  0xde   :  { %v353_v41 = vld [vmem:[#allocation5 + $0x560] sm:$0xff]  ;;  %2986 = vmatpush1.bf16.msra.mxu0 %v5145_v43 }
  0xdf   :  { %v5154_v45 = vcombine.high %v349_v40, %v353_v41  ;;  %v229_v46 = vld [vmem:[#allocation5 + $0x180] sm:$0xff]  ;;  %2946 = vmatprep.subr.bf16.mxu1 %v5026_v44  ;;  %v5153_v51 = vcombine.low %v349_v40, %v353_v41 }
  0xe0   :  { %v233_v47 = vld [vmem:[#allocation5 + $0x1a0] sm:$0xff]  ;;  %2947 = vmatpush1.bf16.msra.mxu1 %v5025_v50 }
  0xe1   :  { %v357_v48 = vld [vmem:[#allocation5 + $0x580] sm:$0xff]  ;;  %v5034_v52 = vcombine.high %v229_v46, %v233_v47  ;;  %2987 = vmatprep.subr.bf16.mxu0 %v5154_v45  ;;  %v5033_v62 = vcombine.low %v229_v46, %v233_v47 }
  0xe2   :  { %v361_v49 = vld [vmem:[#allocation5 + $0x5a0] sm:$0xff]  ;;  %2988 = vmatpush1.bf16.msra.mxu0 %v5153_v51 }
  0xe3   :  { %v6498_v53 = vld [vmem:[#allocation2] sm:$0xff]  ;;  %v5162_v55 = vcombine.high %v357_v48, %v361_v49  ;;  %2948 = vmatprep.subr.bf16.mxu1 %v5034_v52  ;;  %v5161_v63 = vcombine.low %v357_v48, %v361_v49 }
  0xe4   :  { %v237_v56 = vld [vmem:[#allocation5 + $0x1c0] sm:$0xff]  ;;  %v6504_v58 = vcombine.high %v6498_v53, %v6498_v53  ;;  %2949 = vmatpush1.bf16.msra.mxu1 %v5033_v62 }
  0xe5   :  { %v241_v57 = vld [vmem:[#allocation5 + $0x1e0] sm:$0xff]  ;;  %2989 = vmatprep.subr.bf16.mxu0 %v5162_v55 }
  0xe6   :  { %v365_v59 = vld [vmem:[#allocation5 + $0x5c0] sm:$0xff]  ;;  %2968 = vmatprep.mubr.bf16.mxu1 %v6504_v58  ;;  %v5042_v0 = vcombine.high %v237_v56, %v241_v57  ;;  %v5041_v6 = vcombine.low %v237_v56, %v241_v57  ;;  %2990 = vmatpush1.bf16.msra.mxu0 %v5161_v63 }
  0xe7   :  { %v369_v60 = vld [vmem:[#allocation5 + $0x5e0] sm:$0xff] }
  0xe8   :  { %v5170_v1 = vcombine.high %v365_v59, %v369_v60  ;;  %v245_v2 = vld [vmem:[#allocation5 + $0x200] sm:$0xff]  ;;  %2950 = vmatprep.subr.bf16.mxu1 %v5042_v0  ;;  %v5169_v7 = vcombine.low %v365_v59, %v369_v60 }
  0xe9   :  { %v249_v3 = vld [vmem:[#allocation5 + $0x220] sm:$0xff]  ;;  %2951 = vmatpush1.bf16.msra.mxu1 %v5041_v6  ;;  %v182_v6 = vld [vmem:[#allocation5 + $0x8] sm:$0xff] }
  0xea   :  { %v373_v4 = vld [vmem:[#allocation5 + $0x600] sm:$0xff]  ;;  %v5050_v8 = vcombine.high %v245_v2, %v249_v3  ;;  %2991 = vmatprep.subr.bf16.mxu0 %v5170_v1  ;;  %v5049_v14 = vcombine.low %v245_v2, %v249_v3 }
  0xeb   :  { %v377_v5 = vld [vmem:[#allocation5 + $0x620] sm:$0xff]  ;;  %2992 = vmatpush1.bf16.msra.mxu0 %v5169_v7  ;;  %v186_v7 = vld [vmem:[#allocation5 + $0x28] sm:$0xff] }
  0xec   :  { %v5178_v9 = vcombine.high %v373_v4, %v377_v5  ;;  %v253_v10 = vld [vmem:[#allocation5 + $0x240] sm:$0xff]  ;;  %2952 = vmatprep.subr.bf16.mxu1 %v5050_v8  ;;  %v5177_v15 = vcombine.low %v373_v4, %v377_v5 }
  0xed   :  { %v257_v11 = vld [vmem:[#allocation5 + $0x260] sm:$0xff]  ;;  %2953 = vmatpush1.bf16.msra.mxu1 %v5049_v14  ;;  %v190_v14 = vld [vmem:[#allocation5 + $0x48] sm:$0xff] }
  0xee   :  { %v381_v12 = vld [vmem:[#allocation5 + $0x640] sm:$0xff]  ;;  %v5058_v16 = vcombine.high %v253_v10, %v257_v11  ;;  %2993 = vmatprep.subr.bf16.mxu0 %v5178_v9  ;;  %v5057_v22 = vcombine.low %v253_v10, %v257_v11 }
  0xef   :  { %v385_v13 = vld [vmem:[#allocation5 + $0x660] sm:$0xff]  ;;  %2994 = vmatpush1.bf16.msra.mxu0 %v5177_v15  ;;  %v194_v15 = vld [vmem:[#allocation5 + $0x68] sm:$0xff] }
  0xf0   :  { %v5186_v17 = vcombine.high %v381_v12, %v385_v13  ;;  %v261_v18 = vld [vmem:[#allocation5 + $0x280] sm:$0xff]  ;;  %2954 = vmatprep.subr.bf16.mxu1 %v5058_v16  ;;  %v5185_v23 = vcombine.low %v381_v12, %v385_v13  ;;  %v4988_v12 = vcombine.high %v182_v6, %v186_v7  ;;  %v6514_v16 = vcombine.low %v6498_v53, %v6498_v53  ;;  %v198_v53 = vld [vmem:[#allocation5 + $0x88] sm:$0xff] }
  0xf1   :  { %v265_v19 = vld [vmem:[#allocation5 + $0x2a0] sm:$0xff]  ;;  %2955 = vmatpush1.bf16.msra.mxu1 %v5057_v22 }
  0xf2   :  { %v389_v20 = vld [vmem:[#allocation5 + $0x680] sm:$0xff]  ;;  %v5066_v24 = vcombine.high %v261_v18, %v265_v19  ;;  %2995 = vmatprep.subr.bf16.mxu0 %v5186_v17  ;;  %v5065_v30 = vcombine.low %v261_v18, %v265_v19  ;;  %v6516_v19 = vld [vmem:[#allocation2 + $0x10] sm:$0xff] }
  0xf3   :  { %v393_v21 = vld [vmem:[#allocation5 + $0x6a0] sm:$0xff]  ;;  %2996 = vmatpush1.bf16.msra.mxu0 %v5185_v23  ;;  %v4996_v23 = vcombine.high %v190_v14, %v194_v15 }
  0xf4   :  { %v5194_v25 = vcombine.high %v389_v20, %v393_v21  ;;  %v269_v26 = vld [vmem:[#allocation5 + $0x2c0] sm:$0xff]  ;;  %2956 = vmatprep.subr.bf16.mxu1 %v5066_v24  ;;  %v5193_v31 = vcombine.low %v389_v20, %v393_v21  ;;  %v4987_v20 = vcombine.low %v182_v6, %v186_v7  ;;  %v6520_v21 = vcombine.low %v6500_v54, %v6500_v54  ;;  %v242_v7 = vld [vmem:[#allocation5 + $0x1e8] sm:$0xff] }
  0xf5   :  { %v273_v27 = vld [vmem:[#allocation5 + $0x2e0] sm:$0xff]  ;;  %2957 = vmatpush1.bf16.msra.mxu1 %v5065_v30  ;;  %v4995_v54 = vcombine.low %v190_v14, %v194_v15  ;;  %v250_v15 = vld [vmem:[#allocation5 + $0x228] sm:$0xff] }
  0xf6   :  { %v397_v28 = vld [vmem:[#allocation5 + $0x6c0] sm:$0xff]  ;;  %v5074_v32 = vcombine.high %v269_v26, %v273_v27  ;;  %2997 = vmatprep.subr.bf16.mxu0 %v5194_v25  ;;  %v5073_v38 = vcombine.low %v269_v26, %v273_v27  ;;  %v202_v27 = vld [vmem:[#allocation5 + $0xa8] sm:$0xff] }
  0xf7   :  { %v401_v29 = vld [vmem:[#allocation5 + $0x6e0] sm:$0xff]  ;;  %2998 = vmatpush1.bf16.msra.mxu0 %v5193_v31  ;;  %v5004_v30 = vcombine.high %v198_v53, %v202_v27 }
  0xf8   :  { %v5202_v33 = vcombine.high %v397_v28, %v401_v29  ;;  %v277_v34 = vld [vmem:[#allocation5 + $0x300] sm:$0xff]  ;;  %2958 = vmatprep.subr.bf16.mxu1 %v5074_v32  ;;  %v5201_v39 = vcombine.low %v397_v28, %v401_v29  ;;  %v6524_v28 = vcombine.high %v6516_v19, %v6516_v19 }
  0xf9   :  { %v281_v35 = vld [vmem:[#allocation5 + $0x320] sm:$0xff]  ;;  %2959 = vmatpush1.bf16.msra.mxu1 %v5073_v38 }
  0xfa   :  { %v405_v36 = vld [vmem:[#allocation5 + $0x700] sm:$0xff]  ;;  %v5082_v40 = vcombine.high %v277_v34, %v281_v35  ;;  %2999 = vmatprep.subr.bf16.mxu0 %v5202_v33  ;;  %v5081_v46 = vcombine.low %v277_v34, %v281_v35  ;;  %v206_v33 = vld [vmem:[#allocation5 + $0xc8] sm:$0xff] }
  0xfb   :  { %v409_v37 = vld [vmem:[#allocation5 + $0x720] sm:$0xff]  ;;  %3000 = vmatpush1.bf16.msra.mxu0 %v5201_v39  ;;  %v210_v35 = vld [vmem:[#allocation5 + $0xe8] sm:$0xff] }
  0xfc   :  { %v5210_v41 = vcombine.high %v405_v36, %v409_v37  ;;  %v285_v42 = vld [vmem:[#allocation5 + $0x340] sm:$0xff]  ;;  %2960 = vmatprep.subr.bf16.mxu1 %v5082_v40  ;;  %v5209_v47 = vcombine.low %v405_v36, %v409_v37  ;;  %v5003_v36 = vcombine.low %v198_v53, %v202_v27  ;;  %v5012_v38 = vcombine.high %v206_v33, %v210_v35 }
  0xfd   :  { %v289_v43 = vld [vmem:[#allocation5 + $0x360] sm:$0xff]  ;;  %2961 = vmatpush1.bf16.msra.mxu1 %v5081_v46 }
  0xfe   :  { %v413_v44 = vld [vmem:[#allocation5 + $0x740] sm:$0xff]  ;;  %v5090_v48 = vcombine.high %v285_v42, %v289_v43  ;;  %3001 = vmatprep.subr.bf16.mxu0 %v5210_v41  ;;  %v5089_v56 = vcombine.low %v285_v42, %v289_v43  ;;  %v214_v41 = vld [vmem:[#allocation5 + $0x108] sm:$0xff] }
  0xff   :  { %v417_v45 = vld [vmem:[#allocation5 + $0x760] sm:$0xff]  ;;  %3002 = vmatpush1.bf16.msra.mxu0 %v5209_v47  ;;  %v218_v43 = vld [vmem:[#allocation5 + $0x128] sm:$0xff] }
 0x100   :  { %v5218_v49 = vcombine.high %v413_v44, %v417_v45  ;;  %v293_v50 = vld [vmem:[#allocation5 + $0x380] sm:$0xff]  ;;  %2962 = vmatprep.subr.bf16.mxu1 %v5090_v48  ;;  %v5217_v57 = vcombine.low %v413_v44, %v417_v45  ;;  %v5011_v44 = vcombine.low %v206_v33, %v210_v35  ;;  %v5020_v46 = vcombine.high %v214_v41, %v218_v43  ;;  %v266_v33 = vld [vmem:[#allocation5 + $0x2a8] sm:$0xff] }
 0x101   :  { %v297_v51 = vld [vmem:[#allocation5 + $0x3a0] sm:$0xff]  ;;  %2963 = vmatpush1.bf16.msra.mxu1 %v5089_v56 }
 0x102   :  { %v421_v52 = vld [vmem:[#allocation5 + $0x780] sm:$0xff]  ;;  %v5098_v59 = vcombine.high %v293_v50, %v297_v51  ;;  %3003 = vmatprep.subr.bf16.mxu0 %v5218_v49  ;;  %v5097_v2 = vcombine.low %v293_v50, %v297_v51  ;;  %v222_v49 = vld [vmem:[#allocation5 + $0x148] sm:$0xff] }
 0x103   :  { %v425_v55 = vld [vmem:[#allocation5 + $0x7a0] sm:$0xff]  ;;  %3004 = vmatpush1.bf16.msra.mxu0 %v5217_v57  ;;  %v226_v51 = vld [vmem:[#allocation5 + $0x168] sm:$0xff] }
 0x104   :  { %v5226_v60 = vcombine.high %v421_v52, %v425_v55  ;;  %v301_v62 = vld [vmem:[#allocation5 + $0x3c0] sm:$0xff]  ;;  %2964 = vmatprep.subr.bf16.mxu1 %v5098_v59  ;;  %v5225_v3 = vcombine.low %v421_v52, %v425_v55  ;;  %v5019_v52 = vcombine.low %v214_v41, %v218_v43  ;;  %v5028_v56 = vcombine.high %v222_v49, %v226_v51  ;;  %v274_v41 = vld [vmem:[#allocation5 + $0x2e8] sm:$0xff] }
 0x105   :  { %v305_v63 = vld [vmem:[#allocation5 + $0x3e0] sm:$0xff]  ;;  %2965 = vmatpush1.bf16.msra.mxu1 %v5097_v2 }
 0x106   :  { %v429_v0 = vld [vmem:[#allocation5 + $0x7c0] sm:$0xff]  ;;  %v5106_v4 = vcombine.high %v301_v62, %v305_v63  ;;  %3005 = vmatprep.subr.bf16.mxu0 %v5226_v60  ;;  %v5105_v10 = vcombine.low %v301_v62, %v305_v63  ;;  %v230_v60 = vld [vmem:[#allocation5 + $0x188] sm:$0xff] }
 0x107   :  { %v433_v1 = vld [vmem:[#allocation5 + $0x7e0] sm:$0xff]  ;;  %3006 = vmatpush1.bf16.msra.mxu0 %v5225_v3  ;;  %v234_v63 = vld [vmem:[#allocation5 + $0x1a8] sm:$0xff] }
 0x108   :  { %v5234_v5 = vcombine.high %v429_v0, %v433_v1  ;;  %v437_v8 = vld [vmem:[#allocation5 + $0x800] sm:$0xff]  ;;  %2966 = vmatprep.subr.bf16.mxu1 %v5106_v4  ;;  %v5233_v11 = vcombine.low %v429_v0, %v433_v1  ;;  %v5027_v0 = vcombine.low %v222_v49, %v226_v51  ;;  %v5036_v2 = vcombine.high %v230_v60, %v234_v63  ;;  %v282_v49 = vld [vmem:[#allocation5 + $0x328] sm:$0xff] }
 0x109   :  { %v441_v9 = vld [vmem:[#allocation5 + $0x820] sm:$0xff]  ;;  %2967 = vmatpush1.bf16.msra.mxu1 %v5105_v10 }
 0x10a   :  { %3007 = vmatprep.subr.bf16.mxu0 %v5234_v5  ;;  %v5242_v13 = vcombine.high %v437_v8, %v441_v9  ;;  %v445_v17 = vld [vmem:[#allocation5 + $0x840] sm:$0xff]  ;;  %v5241_v22 = vcombine.low %v437_v8, %v441_v9  ;;  %3100 = vmatprep.subr.bf16.mxu1 %v4988_v12  ;;  %v238_v5 = vld [vmem:[#allocation5 + $0x1c8] sm:$0xff]  ;;  %v5035_v8 = vcombine.low %v230_v60, %v234_v63 }
 0x10b   :  { %v449_v18 = vld [vmem:[#allocation5 + $0x860] sm:$0xff]  ;;  %3008 = vmatpush1.bf16.msra.mxu0 %v5233_v11  ;;  %v5044_v10 = vcombine.high %v238_v5, %v242_v7  ;;  %v290_v60 = vld [vmem:[#allocation5 + $0x368] sm:$0xff] }
 0x10c   :  { %v453_v24 = vld [vmem:[#allocation5 + $0x880] sm:$0xff]  ;;  %3018 = vmatprep.subr.bf16.mxu0 %v5242_v13  ;;  %v5250_v25 = vcombine.high %v445_v17, %v449_v18  ;;  %2969 = vmatmul.mubr.bf16.vlgmr.msra.gmra.mrb[0].mxu1 %v6514_v16  ;;  %v5249_v29 = vcombine.low %v445_v17, %v449_v18  ;;  %v246_v13 = vld [vmem:[#allocation5 + $0x208] sm:$0xff]  ;;  %v5043_v17 = vcombine.low %v238_v5, %v242_v7 }
 0x10d   :  { %v457_v26 = vld [vmem:[#allocation5 + $0x8a0] sm:$0xff]  ;;  %3101 = vmatpush1.bf16.msra.mxu1 %v4987_v20  ;;  %3132 = vmatprep.mubr.bf16.mxu1 %v6504_v58  ;;  %v5052_v20 = vcombine.high %v246_v13, %v250_v15  ;;  %v5051_v53 = vcombine.low %v246_v13, %v250_v15  ;;  %v298_v5 = vld [vmem:[#allocation5 + $0x3a8] sm:$0xff] }
 0x10e   :  { %3010 = vmatmul.mubr.bf16.vlgmr.msra.gmra.mrb[0].mxu0 %v6520_v21  ;;  %3102 = vmatprep.subr.bf16.mxu1 %v4996_v23  ;;  %v461_v31 = vld [vmem:[#allocation5 + $0x8c0] sm:$0xff]  ;;  %v5258_v34 = vcombine.high %v453_v24, %v457_v26  ;;  %v5257_v37 = vcombine.low %v453_v24, %v457_v26  ;;  %v254_v24 = vld [vmem:[#allocation5 + $0x248] sm:$0xff] }
 0x10f   :  { %3019 = vmatpush1.bf16.msra.mxu0 %v5241_v22  ;;  %v465_v32 = vld [vmem:[#allocation5 + $0x8e0] sm:$0xff]  ;;  %3050 = vmatprep.mubr.bf16.mxu0 %v6524_v28  ;;  %v258_v26 = vld [vmem:[#allocation5 + $0x268] sm:$0xff] }
 0x110   :  { %3020 = vmatprep.subr.bf16.mxu0 %v5250_v25  ;;  %v469_v39 = vld [vmem:[#allocation5 + $0x900] sm:$0xff]  ;;  %v5266_v42 = vcombine.high %v461_v31, %v465_v32  ;;  %v5265_v45 = vcombine.low %v461_v31, %v465_v32  ;;  %v262_v31 = vld [vmem:[#allocation5 + $0x288] sm:$0xff] }
 0x111   :  { %3103 = vmatpush1.bf16.msra.mxu1 %v4995_v54  ;;  %v473_v40 = vld [vmem:[#allocation5 + $0x920] sm:$0xff]  ;;  %v5060_v54 = vcombine.high %v254_v24, %v258_v26  ;;  %v306_v13 = vld [vmem:[#allocation5 + $0x3e8] sm:$0xff] }
 0x112   :  { %3104 = vmatprep.subr.bf16.mxu1 %v5004_v30  ;;  %v477_v47 = vld [vmem:[#allocation5 + $0x940] sm:$0xff]  ;;  %v5274_v50 = vcombine.high %v469_v39, %v473_v40  ;;  %v5273_v55 = vcombine.low %v469_v39, %v473_v40  ;;  %v270_v39 = vld [vmem:[#allocation5 + $0x2c8] sm:$0xff] }
 0x113   :  { %3021 = vmatpush1.bf16.msra.mxu0 %v5249_v29  ;;  %v481_v48 = vld [vmem:[#allocation5 + $0x960] sm:$0xff] }
 0x114   :  { %3022 = vmatprep.subr.bf16.mxu0 %v5258_v34  ;;  %v485_v57 = vld [vmem:[#allocation5 + $0x980] sm:$0xff]  ;;  %v5282_v62 = vcombine.high %v477_v47, %v481_v48  ;;  %v5281_v1 = vcombine.low %v477_v47, %v481_v48  ;;  %v5059_v34 = vcombine.low %v254_v24, %v258_v26  ;;  %v278_v47 = vld [vmem:[#allocation5 + $0x308] sm:$0xff] }
 0x115   :  { %3105 = vmatpush1.bf16.msra.mxu1 %v5003_v36  ;;  %v489_v59 = vld [vmem:[#allocation5 + $0x9a0] sm:$0xff]  ;;  %v5068_v36 = vcombine.high %v262_v31, %v266_v33  ;;  %v314_v24 = vld [vmem:[#allocation5 + $0x428] sm:$0xff] }
 0x116   :  { %3106 = vmatprep.subr.bf16.mxu1 %v5012_v38  ;;  %v493_v3 = vld [vmem:[#allocation5 + $0x9c0] sm:$0xff]  ;;  %v5290_v6 = vcombine.high %v485_v57, %v489_v59  ;;  %v5289_v9 = vcombine.low %v485_v57, %v489_v59  ;;  %v286_v57 = vld [vmem:[#allocation5 + $0x348] sm:$0xff] }
 0x117   :  { %3023 = vmatpush1.bf16.msra.mxu0 %v5257_v37  ;;  %v497_v4 = vld [vmem:[#allocation5 + $0x9e0] sm:$0xff] }
 0x118   :  { %3024 = vmatprep.subr.bf16.mxu0 %v5266_v42  ;;  %v501_v11 = vld [vmem:[#allocation5 + $0xa00] sm:$0xff]  ;;  %v5298_v14 = vcombine.high %v493_v3, %v497_v4  ;;  %v5297_v18 = vcombine.low %v493_v3, %v497_v4  ;;  %v5067_v42 = vcombine.low %v262_v31, %v266_v33  ;;  %v294_v3 = vld [vmem:[#allocation5 + $0x388] sm:$0xff]  ;;  %v6532_v33 = vcombine.low %v6516_v19, %v6516_v19 }
 0x119   :  { %3107 = vmatpush1.bf16.msra.mxu1 %v5011_v44  ;;  %v505_v12 = vld [vmem:[#allocation5 + $0xa20] sm:$0xff]  ;;  %v5076_v44 = vcombine.high %v270_v39, %v274_v41  ;;  %v322_v31 = vld [vmem:[#allocation5 + $0x468] sm:$0xff] }
 0x11a   :  { %3108 = vmatprep.subr.bf16.mxu1 %v5020_v46  ;;  %v509_v22 = vld [vmem:[#allocation5 + $0xa40] sm:$0xff]  ;;  %v5306_v25 = vcombine.high %v501_v11, %v505_v12  ;;  %v5305_v27 = vcombine.low %v501_v11, %v505_v12  ;;  %v302_v11 = vld [vmem:[#allocation5 + $0x3c8] sm:$0xff] }
 0x11b   :  { %3025 = vmatpush1.bf16.msra.mxu0 %v5265_v45  ;;  %v513_v23 = vld [vmem:[#allocation5 + $0xa60] sm:$0xff] }
 0x11c   :  { %3026 = vmatprep.subr.bf16.mxu0 %v5274_v50  ;;  %v517_v29 = vld [vmem:[#allocation5 + $0xa80] sm:$0xff]  ;;  %v5314_v32 = vcombine.high %v509_v22, %v513_v23  ;;  %v5313_v35 = vcombine.low %v509_v22, %v513_v23  ;;  %v5075_v50 = vcombine.low %v270_v39, %v274_v41  ;;  %v310_v22 = vld [vmem:[#allocation5 + $0x408] sm:$0xff] }
 0x11d   :  { %3109 = vmatpush1.bf16.msra.mxu1 %v5019_v52  ;;  %v521_v30 = vld [vmem:[#allocation5 + $0xaa0] sm:$0xff]  ;;  %v5084_v52 = vcombine.high %v278_v47, %v282_v49 }
 0x11e   :  { %3110 = vmatprep.subr.bf16.mxu1 %v5028_v56  ;;  %v525_v37 = vld [vmem:[#allocation5 + $0xac0] sm:$0xff]  ;;  %v5322_v40 = vcombine.high %v517_v29, %v521_v30  ;;  %v5321_v43 = vcombine.low %v517_v29, %v521_v30  ;;  %v318_v29 = vld [vmem:[#allocation5 + $0x448] sm:$0xff] }
 0x11f   :  { %3027 = vmatpush1.bf16.msra.mxu0 %v5273_v55  ;;  %v529_v38 = vld [vmem:[#allocation5 + $0xae0] sm:$0xff]  ;;  %v5123_v41 = vcombine.low %v318_v29, %v322_v31 }
 0x120   :  { %3028 = vmatprep.subr.bf16.mxu0 %v5282_v62  ;;  %v533_v45 = vld [vmem:[#allocation5 + $0xb00] sm:$0xff]  ;;  %v5330_v48 = vcombine.high %v525_v37, %v529_v38  ;;  %v5329_v51 = vcombine.low %v525_v37, %v529_v38  ;;  %v5083_v62 = vcombine.low %v278_v47, %v282_v49  ;;  %v326_v38 = vld [vmem:[#allocation5 + $0x488] sm:$0xff] }
 0x121   :  { %3111 = vmatpush1.bf16.msra.mxu1 %v5027_v0  ;;  %v537_v46 = vld [vmem:[#allocation5 + $0xb20] sm:$0xff]  ;;  %v5092_v0 = vcombine.high %v286_v57, %v290_v60  ;;  %v338_v47 = vld [vmem:[#allocation5 + $0x4e8] sm:$0xff] }
 0x122   :  { %3112 = vmatprep.subr.bf16.mxu1 %v5036_v2  ;;  %v541_v55 = vld [vmem:[#allocation5 + $0xb40] sm:$0xff]  ;;  %v5338_v59 = vcombine.high %v533_v45, %v537_v46  ;;  %v5337_v63 = vcombine.low %v533_v45, %v537_v46  ;;  %v334_v45 = vld [vmem:[#allocation5 + $0x4c8] sm:$0xff] }
 0x123   :  { %3029 = vmatpush1.bf16.msra.mxu0 %v5281_v1  ;;  %v545_v56 = vld [vmem:[#allocation5 + $0xb60] sm:$0xff] }
 0x124   :  { %3030 = vmatprep.subr.bf16.mxu0 %v5290_v6  ;;  %v549_v1 = vld [vmem:[#allocation5 + $0xb80] sm:$0xff]  ;;  %v5346_v4 = vcombine.high %v541_v55, %v545_v56  ;;  %v5091_v6 = vcombine.low %v286_v57, %v290_v60  ;;  %v5345_v7 = vcombine.low %v541_v55, %v545_v56  ;;  %v342_v56 = vld [vmem:[#allocation5 + $0x508] sm:$0xff]  ;;  %v5139_v60 = vcombine.low %v334_v45, %v338_v47 }
 0x125   :  { %3113 = vmatpush1.bf16.msra.mxu1 %v5035_v8  ;;  %v553_v2 = vld [vmem:[#allocation5 + $0xba0] sm:$0xff]  ;;  %v5100_v8 = vcombine.high %v294_v3, %v298_v5 }
 0x126   :  { %3114 = vmatprep.subr.bf16.mxu1 %v5044_v10  ;;  %v561_v10 = vld [vmem:[#allocation5 + $0xbe0] sm:$0xff]  ;;  %v5354_v12 = vcombine.high %v549_v1, %v553_v2  ;;  %v5353_v15 = vcombine.low %v549_v1, %v553_v2  ;;  %v350_v2 = vld [vmem:[#allocation5 + $0x548] sm:$0xff] }
 0x127   :  { %3031 = vmatpush1.bf16.msra.mxu0 %v5289_v9  ;;  %v557_v9 = vld [vmem:[#allocation5 + $0xbc0] sm:$0xff] }
 0x128   :  { %3032 = vmatprep.subr.bf16.mxu0 %v5298_v14  ;;  %v5099_v14 = vcombine.low %v294_v3, %v298_v5  ;;  %v5362_v23 = vcombine.high %v557_v9, %v561_v10  ;;  %v5361_v26 = vcombine.low %v557_v9, %v561_v10  ;;  %v585_v37 = vld [vmem:[#allocation5 + $0xca0] sm:$0xff]  ;;  %v358_v9 = vld [vmem:[#allocation5 + $0x588] sm:$0xff] }
 0x129   :  { %3115 = vmatpush1.bf16.msra.mxu1 %v5043_v17  ;;  %v5108_v17 = vcombine.high %v302_v11, %v306_v13  ;;  %v601_v55 = vld [vmem:[#allocation5 + $0xd20] sm:$0xff] }
 0x12a   :  { %3116 = vmatprep.subr.bf16.mxu1 %v5052_v20  ;;  %v569_v20 = vld [vmem:[#allocation5 + $0xc20] sm:$0xff] }
 0x12b   :  { %3033 = vmatpush1.bf16.msra.mxu0 %v5297_v18  ;;  %v565_v18 = vld [vmem:[#allocation5 + $0xc00] sm:$0xff] }
 0x12c   :  { %3034 = vmatprep.subr.bf16.mxu0 %v5306_v25  ;;  %v5107_v25 = vcombine.low %v302_v11, %v306_v13  ;;  %v5370_v30 = vcombine.high %v565_v18, %v569_v20  ;;  %v609_v1 = vld [vmem:[#allocation5 + $0xd60] sm:$0xff]  ;;  %v362_v11 = vld [vmem:[#allocation5 + $0x5a8] sm:$0xff] }
 0x12d   :  { %3117 = vmatpush1.bf16.msra.mxu1 %v5051_v53  ;;  %v5116_v53 = vcombine.high %v310_v22, %v314_v24 }
 0x12e   :  { %3118 = vmatprep.subr.bf16.mxu1 %v5060_v54  ;;  %v577_v54 = vld [vmem:[#allocation5 + $0xc60] sm:$0xff] }
 0x12f   :  { %3035 = vmatpush1.bf16.msra.mxu0 %v5305_v27  ;;  %v573_v27 = vld [vmem:[#allocation5 + $0xc40] sm:$0xff] }
 0x130   :  { %3036 = vmatprep.subr.bf16.mxu0 %v5314_v32  ;;  %v5115_v32 = vcombine.low %v310_v22, %v314_v24  ;;  %v5378_v39 = vcombine.high %v573_v27, %v577_v54  ;;  %v366_v22 = vld [vmem:[#allocation5 + $0x5c8] sm:$0xff]  ;;  %v5163_v24 = vcombine.low %v358_v9, %v362_v11 }
 0x131   :  { %3119 = vmatpush1.bf16.msra.mxu1 %v5059_v34  ;;  %v5369_v34 = vcombine.low %v565_v18, %v569_v20  ;;  %v625_v18 = vld [vmem:[#allocation5 + $0xde0] sm:$0xff] }
 0x132   :  { %3120 = vmatprep.subr.bf16.mxu1 %v5068_v36  ;;  %v581_v36 = vld [vmem:[#allocation5 + $0xc80] sm:$0xff] }
 0x133   :  { %3037 = vmatpush1.bf16.msra.mxu0 %v5313_v35  ;;  %v5124_v35 = vcombine.high %v318_v29, %v322_v31  ;;  %v5386_v46 = vcombine.high %v581_v36, %v585_v37 }
 0x134   :  { %3038 = vmatprep.subr.bf16.mxu0 %v5322_v40  ;;  %v330_v40 = vld [vmem:[#allocation5 + $0x4a8] sm:$0xff] }
 0x135   :  { %3121 = vmatpush1.bf16.msra.mxu1 %v5067_v42  ;;  %v5377_v42 = vcombine.low %v573_v27, %v577_v54  ;;  %v5132_v19 = vcombine.high %v326_v38, %v330_v40  ;;  %v5131_v49 = vcombine.low %v326_v38, %v330_v40  ;;  %v378_v27 = vld [vmem:[#allocation5 + $0x628] sm:$0xff]  ;;  %v183_v54 = vld [vmem:[#allocation5 + $0x10] sm:$0xff]  ;;  %v6538_v38 = vld [vmem:[#allocation2 + $0x18] ss:$0 sps:$4 sm:$0xff]  }
 0x136   :  { %3122 = vmatprep.subr.bf16.mxu1 %v5076_v44  ;;  %v593_v44 = vld [vmem:[#allocation5 + $0xce0] sm:$0xff]  ;;  %v195_v40 = vld [vmem:[#allocation5 + $0x70] sm:$0xff] }
 0x137   :  { %3039 = vmatpush1.bf16.msra.mxu0 %v5321_v43  ;;  %v589_v43 = vld [vmem:[#allocation5 + $0xcc0] sm:$0xff] }
 0x138   :  { %3040 = vmatprep.subr.bf16.mxu0 %v5330_v48  ;;  %v6293_v48 = vmov 0   ;;  %v5394_v57 = vcombine.high %v589_v43, %v593_v44 }
 0x139   :  { %3123 = vmatpush1.bf16.msra.mxu1 %v5075_v50  ;;  %v5385_v50 = vcombine.low %v581_v36, %v585_v37  ;;  %v386_v36 = vld [vmem:[#allocation5 + $0x668] sm:$0xff]  ;;  %v191_v37 = vld [vmem:[#allocation5 + $0x50] sm:$0xff] }
 0x13a   :  { %3124 = vmatprep.subr.bf16.mxu1 %v5084_v52  ;;  %v597_v52 = vld [vmem:[#allocation5 + $0xd00] sm:$0xff] }
 0x13b   :  { %3041 = vmatpush1.bf16.msra.mxu0 %v5329_v51  ;;  %v5140_v51 = vcombine.high %v334_v45, %v338_v47  ;;  %v5402_v3 = vcombine.high %v597_v52, %v601_v55  ;;  %v4998_v45 = vcombine.high %v191_v37, %v195_v40  ;;  %v203_v47 = vld [vmem:[#allocation5 + $0xb0] sm:$0xff] }
 0x13c   :  { %3042 = vmatprep.subr.bf16.mxu0 %v5338_v59  ;;  %v346_v59 = vld [vmem:[#allocation5 + $0x528] sm:$0xff] }
 0x13d   :  { %3125 = vmatpush1.bf16.msra.mxu1 %v5083_v62  ;;  %v5393_v62 = vcombine.low %v589_v43, %v593_v44  ;;  %v5147_v5 = vcombine.low %v342_v56, %v346_v59  ;;  %v390_v43 = vld [vmem:[#allocation5 + $0x688] sm:$0xff] }
 0x13e   :  { %3126 = vmatprep.subr.bf16.mxu1 %v5092_v0  ;;  %v605_v0 = vld [vmem:[#allocation5 + $0xd40] sm:$0xff]  ;;  %v394_v44 = vld [vmem:[#allocation5 + $0x6a8] sm:$0xff] }
 0x13f   :  { %3043 = vmatpush1.bf16.msra.mxu0 %v5337_v63  ;;  %v5148_v63 = vcombine.high %v342_v56, %v346_v59  ;;  %v5410_v10 = vcombine.high %v605_v0, %v609_v1  ;;  %v402_v56 = vld [vmem:[#allocation5 + $0x6e8] sm:$0xff]  ;;  %v211_v59 = vld [vmem:[#allocation5 + $0xf0] sm:$0xff] }
 0x140   :  { %3044 = vmatprep.subr.bf16.mxu0 %v5346_v4  ;;  %v354_v4 = vld [vmem:[#allocation5 + $0x568] sm:$0xff] }
 0x141   :  { %3127 = vmatpush1.bf16.msra.mxu1 %v5091_v6  ;;  %v5401_v6 = vcombine.low %v597_v52, %v601_v55  ;;  %v5155_v13 = vcombine.low %v350_v2, %v354_v4  ;;  %v398_v55 = vld [vmem:[#allocation5 + $0x6c8] sm:$0xff] }
 0x142   :  { %3128 = vmatprep.subr.bf16.mxu1 %v5100_v8  ;;  %v613_v8 = vld [vmem:[#allocation5 + $0xd80] sm:$0xff] }
 0x143   :  { %3045 = vmatpush1.bf16.msra.mxu0 %v5345_v7  ;;  %v5156_v7 = vcombine.high %v350_v2, %v354_v4  ;;  %v410_v2 = vld [vmem:[#allocation5 + $0x728] sm:$0xff]  ;;  %v219_v4 = vld [vmem:[#allocation5 + $0x130] sm:$0xff] }
 0x144   :  { %3046 = vmatprep.subr.bf16.mxu0 %v5354_v12  ;;  %v617_v12 = vld [vmem:[#allocation5 + $0xda0] sm:$0xff] }
 0x145   :  { %3129 = vmatpush1.bf16.msra.mxu1 %v5099_v14  ;;  %v5409_v14 = vcombine.low %v605_v0, %v609_v1  ;;  %v5418_v20 = vcombine.high %v613_v8, %v617_v12  ;;  %v406_v1 = vld [vmem:[#allocation5 + $0x708] sm:$0xff] }
 0x146   :  { %3130 = vmatprep.subr.bf16.mxu1 %v5108_v17  ;;  %v621_v17 = vld [vmem:[#allocation5 + $0xdc0] sm:$0xff] }
 0x147   :  { %3047 = vmatpush1.bf16.msra.mxu0 %v5353_v15  ;;  %v5164_v15 = vcombine.high %v358_v9, %v362_v11  ;;  %v5426_v29 = vcombine.high %v621_v17, %v625_v18  ;;  %v414_v9 = vld [vmem:[#allocation5 + $0x748] sm:$0xff]  ;;  %v223_v11 = vld [vmem:[#allocation5 + $0x150] sm:$0xff] }
 0x148   :  { %3048 = vmatprep.subr.bf16.mxu0 %v5362_v23  ;;  %v370_v23 = vld [vmem:[#allocation5 + $0x5e8] sm:$0xff] }
 0x149   :  { %3131 = vmatpush1.bf16.msra.mxu1 %v5107_v25  ;;  %v5417_v25 = vcombine.low %v613_v8, %v617_v12  ;;  %v5171_v31 = vcombine.low %v366_v22, %v370_v23  ;;  %v227_v12 = vld [vmem:[#allocation5 + $0x170] sm:$0xff] }
 0x14a   :  { %3141 = vmatprep.subr.bf16.mxu1 %v5116_v53  ;;  %v374_v53 = vld [vmem:[#allocation5 + $0x608] sm:$0xff] }
 0x14b   :  { %3049 = vmatpush1.bf16.msra.mxu0 %v5361_v26  ;;  %v5172_v26 = vcombine.high %v366_v22, %v370_v23  ;;  %v231_v22 = vld [vmem:[#allocation5 + $0x190] sm:$0xff] }
 0x14c   :  { %3059 = vmatprep.subr.bf16.mxu0 %v5370_v30  ;;  %3133 = vmatmul.mubr.bf16.vlgmr.msra.gmra.mrb[4].mxu1 %v6514_v16  ;;  %v187_v30 = vld [vmem:[#allocation5 + $0x30] sm:$0xff] }
 0x14d   :  { %3142 = vmatpush1.bf16.msra.mxu1 %v5115_v32  ;;  %3173 = vmatprep.mubr.bf16.mxu1 %v6508_v61  ;;  %v5425_v32 = vcombine.low %v621_v17, %v625_v18  ;;  %v5030_v17 = vcombine.high %v223_v11, %v227_v12  ;;  %v422_v18 = vld [vmem:[#allocation5 + $0x788] sm:$0xff]  ;;  %v235_v23 = vld [vmem:[#allocation5 + $0x1b0] sm:$0xff] }
 0x14e   :  { %3051 = vmatmul.mubr.bf16.vlgmr.msra.gmra.mrb[0].mxu0 %v6532_v33  ;;  %3143 = vmatprep.subr.bf16.mxu1 %v5124_v35  ;;  %v382_v35 = vld [vmem:[#allocation5 + $0x648] sm:$0xff] }
 0x14f   :  { %3060 = vmatpush1.bf16.msra.mxu0 %v5369_v34  ;;  %3091 = vmatprep.mubr.bf16.mxu0 %v6293_v48  ;;  %v5180_v34 = vcombine.high %v374_v53, %v378_v27 }
 0x150   :  { %3061 = vmatprep.subr.bf16.mxu0 %v5378_v39  ;;  %v4990_v39 = vcombine.high %v183_v54, %v187_v30 }
 0x151   :  { %3144 = vmatpush1.bf16.msra.mxu1 %v5123_v41  ;;  %v5179_v41 = vcombine.low %v374_v53, %v378_v27  ;;  %v5038_v53 = vcombine.high %v231_v22, %v235_v23  ;;  %v430_v27 = vld [vmem:[#allocation5 + $0x7c8] sm:$0xff] }
 0x152   :  { %3145 = vmatprep.subr.bf16.mxu1 %v5132_v19  ;;  %v5188_v19 = vcombine.high %v382_v35, %v386_v36 }
 0x153   :  { %3062 = vmatpush1.bf16.msra.mxu0 %v5377_v42  ;;  %v4989_v42 = vcombine.low %v183_v54, %v187_v30  ;;  %v434_v54 = vld [vmem:[#allocation5 + $0x7e8] sm:$0xff]  ;;  %v243_v30 = vld [vmem:[#allocation5 + $0x1f0] sm:$0xff] }
 0x154   :  { %3063 = vmatprep.subr.bf16.mxu0 %v5386_v46  ;;  %v199_v46 = vld [vmem:[#allocation5 + $0x90] sm:$0xff] }
 0x155   :  { %3146 = vmatpush1.bf16.msra.mxu1 %v5131_v49  ;;  %v5187_v49 = vcombine.low %v382_v35, %v386_v36  ;;  %v5006_v52 = vcombine.high %v199_v46, %v203_v47  ;;  %v438_v36 = vld [vmem:[#allocation5 + $0x808] sm:$0xff] }
 0x156   :  { %3147 = vmatprep.subr.bf16.mxu1 %v5140_v51  ;;  %v5196_v51 = vcombine.high %v390_v43, %v394_v44 }
 0x157   :  { %3064 = vmatpush1.bf16.msra.mxu0 %v5385_v50  ;;  %v4997_v50 = vcombine.low %v191_v37, %v195_v40  ;;  %v442_v37 = vld [vmem:[#allocation5 + $0x828] sm:$0xff]  ;;  %v251_v40 = vld [vmem:[#allocation5 + $0x230] sm:$0xff] }
 0x158   :  { %3065 = vmatprep.subr.bf16.mxu0 %v5394_v57  ;;  %v207_v57 = vld [vmem:[#allocation5 + $0xd0] sm:$0xff] }
 0x159   :  { %3148 = vmatpush1.bf16.msra.mxu1 %v5139_v60  ;;  %v5195_v60 = vcombine.low %v390_v43, %v394_v44  ;;  %v5014_v0 = vcombine.high %v207_v57, %v211_v59  ;;  %v446_v44 = vld [vmem:[#allocation5 + $0x848] sm:$0xff] }
 0x15a   :  { %3149 = vmatprep.subr.bf16.mxu1 %v5148_v63  ;;  %v5204_v63 = vcombine.high %v398_v55, %v402_v56 }
 0x15b   :  { %3066 = vmatpush1.bf16.msra.mxu0 %v5393_v62  ;;  %v5005_v62 = vcombine.low %v199_v46, %v203_v47  ;;  %v255_v46 = vld [vmem:[#allocation5 + $0x250] sm:$0xff] }
 0x15c   :  { %3067 = vmatprep.subr.bf16.mxu0 %v5402_v3  ;;  %v215_v3 = vld [vmem:[#allocation5 + $0x110] sm:$0xff] }
 0x15d   :  { %3150 = vmatpush1.bf16.msra.mxu1 %v5147_v5  ;;  %v5203_v5 = vcombine.low %v398_v55, %v402_v56  ;;  %v5022_v8 = vcombine.high %v215_v3, %v219_v4  ;;  %v259_v47 = vld [vmem:[#allocation5 + $0x270] sm:$0xff]  ;;  %v454_v55 = vld [vmem:[#allocation5 + $0x888] sm:$0xff] }
 0x15e   :  { %3151 = vmatprep.subr.bf16.mxu1 %v5156_v7  ;;  %v5212_v7 = vcombine.high %v406_v1, %v410_v2  ;;  %v458_v56 = vld [vmem:[#allocation5 + $0x8a8] sm:$0xff] }
 0x15f   :  { %3068 = vmatpush1.bf16.msra.mxu0 %v5401_v6  ;;  %v5013_v6 = vcombine.low %v207_v57, %v211_v59  ;;  %v263_v57 = vld [vmem:[#allocation5 + $0x290] sm:$0xff] }
 0x160   :  { %3069 = vmatprep.subr.bf16.mxu0 %v5410_v10  ;;  %v418_v10 = vld [vmem:[#allocation5 + $0x768] sm:$0xff]  ;;  %v267_v59 = vld [vmem:[#allocation5 + $0x2b0] sm:$0xff] }
 0x161   :  { %3152 = vmatpush1.bf16.msra.mxu1 %v5155_v13  ;;  %v5211_v13 = vcombine.low %v406_v1, %v410_v2  ;;  %v462_v1 = vld [vmem:[#allocation5 + $0x8c8] sm:$0xff] }
 0x162   :  { %3153 = vmatprep.subr.bf16.mxu1 %v5164_v15  ;;  %v5220_v15 = vcombine.high %v414_v9, %v418_v10  ;;  %v466_v2 = vld [vmem:[#allocation5 + $0x8e8] sm:$0xff] }
 0x163   :  { %3070 = vmatpush1.bf16.msra.mxu0 %v5409_v14  ;;  %v5021_v14 = vcombine.low %v215_v3, %v219_v4  ;;  %v271_v3 = vld [vmem:[#allocation5 + $0x2d0] sm:$0xff] }
 0x164   :  { %3071 = vmatprep.subr.bf16.mxu0 %v5418_v20  ;;  %v426_v20 = vld [vmem:[#allocation5 + $0x7a8] sm:$0xff]  ;;  %v275_v4 = vld [vmem:[#allocation5 + $0x2f0] sm:$0xff] }
 0x165   :  { %3154 = vmatpush1.bf16.msra.mxu1 %v5163_v24  ;;  %v5219_v24 = vcombine.low %v414_v9, %v418_v10  ;;  %v470_v9 = vld [vmem:[#allocation5 + $0x908] sm:$0xff] }
 0x166   :  { %3155 = vmatprep.subr.bf16.mxu1 %v5172_v26  ;;  %v5228_v26 = vcombine.high %v422_v18, %v426_v20  ;;  %v474_v10 = vld [vmem:[#allocation5 + $0x928] sm:$0xff] }
 0x167   :  { %3072 = vmatpush1.bf16.msra.mxu0 %v5417_v25  ;;  %v5029_v25 = vcombine.low %v223_v11, %v227_v12  ;;  %v279_v11 = vld [vmem:[#allocation5 + $0x310] sm:$0xff] }
 0x168   :  { %3073 = vmatprep.subr.bf16.mxu0 %v5426_v29  ;;  %v239_v29 = vld [vmem:[#allocation5 + $0x1d0] sm:$0xff] }
 0x169   :  { %3156 = vmatpush1.bf16.msra.mxu1 %v5171_v31  ;;  %v5227_v31 = vcombine.low %v422_v18, %v426_v20  ;;  %v5046_v35 = vcombine.high %v239_v29, %v243_v30  ;;  %v283_v12 = vld [vmem:[#allocation5 + $0x330] sm:$0xff]  ;;  %v478_v18 = vld [vmem:[#allocation5 + $0x948] sm:$0xff] }
 0x16a   :  { %3157 = vmatprep.subr.bf16.mxu1 %v5180_v34  ;;  %v5236_v34 = vcombine.high %v430_v27, %v434_v54  ;;  %v482_v20 = vld [vmem:[#allocation5 + $0x968] sm:$0xff] }
 0x16b   :  { %3074 = vmatpush1.bf16.msra.mxu0 %v5425_v32  ;;  %v5037_v32 = vcombine.low %v231_v22, %v235_v23  ;;  %v287_v22 = vld [vmem:[#allocation5 + $0x350] sm:$0xff] }
 0x16c   :  { %3264 = vmatprep.subr.bf16.mxu0 %v4990_v39  ;;  %v247_v39 = vld [vmem:[#allocation5 + $0x210] sm:$0xff] }
 0x16d   :  { %3158 = vmatpush1.bf16.msra.mxu1 %v5179_v41  ;;  %v5235_v41 = vcombine.low %v430_v27, %v434_v54  ;;  %v5054_v43 = vcombine.high %v247_v39, %v251_v40  ;;  %v291_v23 = vld [vmem:[#allocation5 + $0x370] sm:$0xff]  ;;  %v486_v27 = vld [vmem:[#allocation5 + $0x988] sm:$0xff] }
 0x16e   :  { %3092 = vmatmul.mubr.bf16.vlgmr.msra.gmra.mrb[0].mxu0 %v6538_v38  ;;  %3159 = vmatprep.subr.bf16.mxu1 %v5188_v19  ;;  %v5244_v19 = vcombine.high %v438_v36, %v442_v37  ;;  %v490_v54 = vld [vmem:[#allocation5 + $0x9a8] sm:$0xff] }
 0x16f   :  { %3265 = vmatpush1.bf16.msra.mxu0 %v4989_v42  ;;  %3296 = vmatprep.mubr.bf16.mxu0 %v6504_v58  ;;  %v5045_v42 = vcombine.low %v239_v29, %v243_v30  ;;  %v295_v29 = vld [vmem:[#allocation5 + $0x390] sm:$0xff] }
 0x170   :  { %3266 = vmatprep.subr.bf16.mxu0 %v4998_v45  ;;  %v450_v45 = vld [vmem:[#allocation5 + $0x868] sm:$0xff]  ;;  %v299_v30 = vld [vmem:[#allocation5 + $0x3b0] sm:$0xff] }
 0x171   :  { %3160 = vmatpush1.bf16.msra.mxu1 %v5187_v49  ;;  %v5243_v49 = vcombine.low %v438_v36, %v442_v37  ;;  %v494_v36 = vld [vmem:[#allocation5 + $0x9c8] sm:$0xff] }
 0x172   :  { %3161 = vmatprep.subr.bf16.mxu1 %v5196_v51  ;;  %v5252_v51 = vcombine.high %v446_v44, %v450_v45  ;;  %v498_v37 = vld [vmem:[#allocation5 + $0x9e8] sm:$0xff] }
 0x173   :  { %3267 = vmatpush1.bf16.msra.mxu0 %v4997_v50  ;;  %v5053_v50 = vcombine.low %v247_v39, %v251_v40  ;;  %v303_v39 = vld [vmem:[#allocation5 + $0x3d0] sm:$0xff] }
 0x174   :  { %3268 = vmatprep.subr.bf16.mxu0 %v5006_v52  ;;  %v5062_v52 = vcombine.high %v255_v46, %v259_v47  ;;  %v307_v40 = vld [vmem:[#allocation5 + $0x3f0] sm:$0xff] }
 0x175   :  { %3162 = vmatpush1.bf16.msra.mxu1 %v5195_v60  ;;  %v5251_v60 = vcombine.low %v446_v44, %v450_v45  ;;  %v502_v44 = vld [vmem:[#allocation5 + $0xa08] sm:$0xff] }
 0x176   :  { %3163 = vmatprep.subr.bf16.mxu1 %v5204_v63  ;;  %v5260_v63 = vcombine.high %v454_v55, %v458_v56  ;;  %v506_v45 = vld [vmem:[#allocation5 + $0xa28] sm:$0xff] }
 0x177   :  { %3269 = vmatpush1.bf16.msra.mxu0 %v5005_v62  ;;  %v5061_v62 = vcombine.low %v255_v46, %v259_v47  ;;  %v311_v46 = vld [vmem:[#allocation5 + $0x410] sm:$0xff] }
 0x178   :  { %3270 = vmatprep.subr.bf16.mxu0 %v5014_v0  ;;  %v5070_v0 = vcombine.high %v263_v57, %v267_v59  ;;  %v315_v47 = vld [vmem:[#allocation5 + $0x430] sm:$0xff] }
 0x179   :  { %3164 = vmatpush1.bf16.msra.mxu1 %v5203_v5  ;;  %v5259_v5 = vcombine.low %v454_v55, %v458_v56  ;;  %v510_v55 = vld [vmem:[#allocation5 + $0xa48] sm:$0xff] }
 0x17a   :  { %3165 = vmatprep.subr.bf16.mxu1 %v5212_v7  ;;  %v5268_v7 = vcombine.high %v462_v1, %v466_v2  ;;  %v514_v56 = vld [vmem:[#allocation5 + $0xa68] sm:$0xff] }
 0x17b   :  { %3271 = vmatpush1.bf16.msra.mxu0 %v5013_v6  ;;  %v5069_v6 = vcombine.low %v263_v57, %v267_v59  ;;  %v319_v57 = vld [vmem:[#allocation5 + $0x450] sm:$0xff] }
 0x17c   :  { %3272 = vmatprep.subr.bf16.mxu0 %v5022_v8  ;;  %v5078_v8 = vcombine.high %v271_v3, %v275_v4  ;;  %v323_v59 = vld [vmem:[#allocation5 + $0x470] sm:$0xff] }
 0x17d   :  { %3166 = vmatpush1.bf16.msra.mxu1 %v5211_v13  ;;  %v5267_v13 = vcombine.low %v462_v1, %v466_v2  ;;  %v518_v1 = vld [vmem:[#allocation5 + $0xa88] sm:$0xff] }
 0x17e   :  { %3167 = vmatprep.subr.bf16.mxu1 %v5220_v15  ;;  %v5276_v15 = vcombine.high %v470_v9, %v474_v10  ;;  %v522_v2 = vld [vmem:[#allocation5 + $0xaa8] sm:$0xff] }
 0x17f   :  { %3273 = vmatpush1.bf16.msra.mxu0 %v5021_v14  ;;  %v5077_v14 = vcombine.low %v271_v3, %v275_v4  ;;  %v327_v3 = vld [vmem:[#allocation5 + $0x490] sm:$0xff] }
 0x180   :  { %3274 = vmatprep.subr.bf16.mxu0 %v5030_v17  ;;  %v5086_v17 = vcombine.high %v279_v11, %v283_v12  ;;  %v331_v4 = vld [vmem:[#allocation5 + $0x4b0] sm:$0xff] }
 0x181   :  { %3168 = vmatpush1.bf16.msra.mxu1 %v5219_v24  ;;  %v5275_v24 = vcombine.low %v470_v9, %v474_v10  ;;  %v526_v9 = vld [vmem:[#allocation5 + $0xac8] sm:$0xff] }
 0x182   :  { %3169 = vmatprep.subr.bf16.mxu1 %v5228_v26  ;;  %v5284_v26 = vcombine.high %v478_v18, %v482_v20  ;;  %v530_v10 = vld [vmem:[#allocation5 + $0xae8] sm:$0xff] }
 0x183   :  { %3275 = vmatpush1.bf16.msra.mxu0 %v5029_v25  ;;  %v5085_v25 = vcombine.low %v279_v11, %v283_v12  ;;  %v335_v11 = vld [vmem:[#allocation5 + $0x4d0] sm:$0xff] }
 0x184   :  { %3276 = vmatprep.subr.bf16.mxu0 %v5038_v53  ;;  %v5094_v53 = vcombine.high %v287_v22, %v291_v23  ;;  %v339_v12 = vld [vmem:[#allocation5 + $0x4f0] sm:$0xff] }
 0x185   :  { %3170 = vmatpush1.bf16.msra.mxu1 %v5227_v31  ;;  %v5283_v31 = vcombine.low %v478_v18, %v482_v20  ;;  %v534_v18 = vld [vmem:[#allocation5 + $0xb08] sm:$0xff] }
 0x186   :  { %3171 = vmatprep.subr.bf16.mxu1 %v5236_v34  ;;  %v5292_v34 = vcombine.high %v486_v27, %v490_v54  ;;  %v538_v20 = vld [vmem:[#allocation5 + $0xb28] sm:$0xff] }
 0x187   :  { %3277 = vmatpush1.bf16.msra.mxu0 %v5037_v32  ;;  %v5093_v32 = vcombine.low %v287_v22, %v291_v23  ;;  %v343_v22 = vld [vmem:[#allocation5 + $0x510] sm:$0xff] }
 0x188   :  { %3278 = vmatprep.subr.bf16.mxu0 %v5046_v35  ;;  %v5102_v35 = vcombine.high %v295_v29, %v299_v30  ;;  %v347_v23 = vld [vmem:[#allocation5 + $0x530] sm:$0xff] }
 0x189   :  { %3172 = vmatpush1.bf16.msra.mxu1 %v5235_v41  ;;  %v5291_v41 = vcombine.low %v486_v27, %v490_v54  ;;  %v542_v27 = vld [vmem:[#allocation5 + $0xb48] sm:$0xff] }
 0x18a   :  { %3182 = vmatprep.subr.bf16.mxu1 %v5244_v19  ;;  %v5300_v19 = vcombine.high %v494_v36, %v498_v37  ;;  %v546_v54 = vld [vmem:[#allocation5 + $0xb68] sm:$0xff] }
 0x18b   :  { %3279 = vmatpush1.bf16.msra.mxu0 %v5045_v42  ;;  %v5101_v42 = vcombine.low %v295_v29, %v299_v30  ;;  %v351_v29 = vld [vmem:[#allocation5 + $0x550] sm:$0xff] }
 0x18c   :  { %3280 = vmatprep.subr.bf16.mxu0 %v5054_v43  ;;  %3174 = vmatmul.mubr.bf16.vlgmr.msra.gmra.mrb[4].mxu1 %v6520_v21  ;;  %v5110_v43 = vcombine.high %v303_v39, %v307_v40  ;;  %v355_v30 = vld [vmem:[#allocation5 + $0x570] sm:$0xff] }
 0x18d   :  { %3183 = vmatpush1.bf16.msra.mxu1 %v5243_v49  ;;  %3214 = vmatprep.mubr.bf16.mxu1 %v6524_v28  ;;  %v5299_v49 = vcombine.low %v494_v36, %v498_v37  ;;  %v550_v36 = vld [vmem:[#allocation5 + $0xb88] sm:$0xff] }
 0x18e   :  { %3184 = vmatprep.subr.bf16.mxu1 %v5252_v51  ;;  %v5308_v51 = vcombine.high %v502_v44, %v506_v45  ;;  %v554_v37 = vld [vmem:[#allocation5 + $0xba8] sm:$0xff] }
 0x18f   :  { %3281 = vmatpush1.bf16.msra.mxu0 %v5053_v50  ;;  %v5109_v50 = vcombine.low %v303_v39, %v307_v40  ;;  %v359_v39 = vld [vmem:[#allocation5 + $0x590] sm:$0xff] }
 0x190   :  { %3282 = vmatprep.subr.bf16.mxu0 %v5062_v52  ;;  %v5118_v52 = vcombine.high %v311_v46, %v315_v47  ;;  %v363_v40 = vld [vmem:[#allocation5 + $0x5b0] sm:$0xff] }
 0x191   :  { %3185 = vmatpush1.bf16.msra.mxu1 %v5251_v60  ;;  %v5307_v60 = vcombine.low %v502_v44, %v506_v45  ;;  %v558_v44 = vld [vmem:[#allocation5 + $0xbc8] sm:$0xff] }
 0x192   :  { %3186 = vmatprep.subr.bf16.mxu1 %v5260_v63  ;;  %v5316_v63 = vcombine.high %v510_v55, %v514_v56  ;;  %v562_v45 = vld [vmem:[#allocation5 + $0xbe8] sm:$0xff] }
 0x193   :  { %3283 = vmatpush1.bf16.msra.mxu0 %v5061_v62  ;;  %v5117_v62 = vcombine.low %v311_v46, %v315_v47  ;;  %v367_v46 = vld [vmem:[#allocation5 + $0x5d0] sm:$0xff] }
 0x194   :  { %3284 = vmatprep.subr.bf16.mxu0 %v5070_v0  ;;  %v5126_v0 = vcombine.high %v319_v57, %v323_v59  ;;  %v371_v47 = vld [vmem:[#allocation5 + $0x5f0] sm:$0xff] }
 0x195   :  { %3187 = vmatpush1.bf16.msra.mxu1 %v5259_v5  ;;  %v5315_v5 = vcombine.low %v510_v55, %v514_v56  ;;  %v566_v55 = vld [vmem:[#allocation5 + $0xc08] sm:$0xff] }
 0x196   :  { %3188 = vmatprep.subr.bf16.mxu1 %v5268_v7  ;;  %v5324_v7 = vcombine.high %v518_v1, %v522_v2  ;;  %v570_v56 = vld [vmem:[#allocation5 + $0xc28] sm:$0xff] }
 0x197   :  { %3285 = vmatpush1.bf16.msra.mxu0 %v5069_v6  ;;  %v5125_v6 = vcombine.low %v319_v57, %v323_v59  ;;  %v375_v57 = vld [vmem:[#allocation5 + $0x610] sm:$0xff] }
 0x198   :  { %3286 = vmatprep.subr.bf16.mxu0 %v5078_v8  ;;  %v5134_v8 = vcombine.high %v327_v3, %v331_v4  ;;  %v379_v59 = vld [vmem:[#allocation5 + $0x630] sm:$0xff] }
 0x199   :  { %3189 = vmatpush1.bf16.msra.mxu1 %v5267_v13  ;;  %v5323_v13 = vcombine.low %v518_v1, %v522_v2  ;;  %v574_v1 = vld [vmem:[#allocation5 + $0xc48] sm:$0xff] }
 0x19a   :  { %3190 = vmatprep.subr.bf16.mxu1 %v5276_v15  ;;  %v5332_v15 = vcombine.high %v526_v9, %v530_v10  ;;  %v578_v2 = vld [vmem:[#allocation5 + $0xc68] sm:$0xff] }
 0x19b   :  { %3287 = vmatpush1.bf16.msra.mxu0 %v5077_v14  ;;  %v5133_v14 = vcombine.low %v327_v3, %v331_v4  ;;  %v383_v3 = vld [vmem:[#allocation5 + $0x650] sm:$0xff] }
 0x19c   :  { %3288 = vmatprep.subr.bf16.mxu0 %v5086_v17  ;;  %v5142_v17 = vcombine.high %v335_v11, %v339_v12  ;;  %v387_v4 = vld [vmem:[#allocation5 + $0x670] sm:$0xff] }
 0x19d   :  { %3191 = vmatpush1.bf16.msra.mxu1 %v5275_v24  ;;  %v5331_v24 = vcombine.low %v526_v9, %v530_v10  ;;  %v582_v9 = vld [vmem:[#allocation5 + $0xc88] sm:$0xff] }
 0x19e   :  { %3192 = vmatprep.subr.bf16.mxu1 %v5284_v26  ;;  %v5340_v26 = vcombine.high %v534_v18, %v538_v20  ;;  %v586_v10 = vld [vmem:[#allocation5 + $0xca8] sm:$0xff] }
 0x19f   :  { %3289 = vmatpush1.bf16.msra.mxu0 %v5085_v25  ;;  %v5141_v25 = vcombine.low %v335_v11, %v339_v12  ;;  %v391_v11 = vld [vmem:[#allocation5 + $0x690] sm:$0xff] }
 0x1a0   :  { %3290 = vmatprep.subr.bf16.mxu0 %v5094_v53  ;;  %v5150_v53 = vcombine.high %v343_v22, %v347_v23  ;;  %v395_v12 = vld [vmem:[#allocation5 + $0x6b0] sm:$0xff] }
 0x1a1   :  { %3193 = vmatpush1.bf16.msra.mxu1 %v5283_v31  ;;  %v5339_v31 = vcombine.low %v534_v18, %v538_v20  ;;  %v590_v18 = vld [vmem:[#allocation5 + $0xcc8] sm:$0xff] }
 0x1a2   :  { %3194 = vmatprep.subr.bf16.mxu1 %v5292_v34  ;;  %v5348_v34 = vcombine.high %v542_v27, %v546_v54  ;;  %v594_v20 = vld [vmem:[#allocation5 + $0xce8] sm:$0xff] }
 0x1a3   :  { %3291 = vmatpush1.bf16.msra.mxu0 %v5093_v32  ;;  %v5149_v32 = vcombine.low %v343_v22, %v347_v23  ;;  %v399_v22 = vld [vmem:[#allocation5 + $0x6d0] sm:$0xff] }
 0x1a4   :  { %3292 = vmatprep.subr.bf16.mxu0 %v5102_v35  ;;  %v5158_v35 = vcombine.high %v351_v29, %v355_v30  ;;  %v403_v23 = vld [vmem:[#allocation5 + $0x6f0] sm:$0xff] }
 0x1a5   :  { %3195 = vmatpush1.bf16.msra.mxu1 %v5291_v41  ;;  %v5347_v41 = vcombine.low %v542_v27, %v546_v54  ;;  %v598_v27 = vld [vmem:[#allocation5 + $0xd08] sm:$0xff] }
 0x1a6   :  { %3196 = vmatprep.subr.bf16.mxu1 %v5300_v19  ;;  %v5356_v19 = vcombine.high %v550_v36, %v554_v37  ;;  %v602_v54 = vld [vmem:[#allocation5 + $0xd28] sm:$0xff] }
 0x1a7   :  { %3293 = vmatpush1.bf16.msra.mxu0 %v5101_v42  ;;  %v5157_v42 = vcombine.low %v351_v29, %v355_v30  ;;  %v407_v29 = vld [vmem:[#allocation5 + $0x710] sm:$0xff] }
 0x1a8   :  { %3294 = vmatprep.subr.bf16.mxu0 %v5110_v43  ;;  %v5166_v43 = vcombine.high %v359_v39, %v363_v40  ;;  %v411_v30 = vld [vmem:[#allocation5 + $0x730] sm:$0xff] }
 0x1a9   :  { %3197 = vmatpush1.bf16.msra.mxu1 %v5299_v49  ;;  %v5355_v49 = vcombine.low %v550_v36, %v554_v37  ;;  %v606_v36 = vld [vmem:[#allocation5 + $0xd48] sm:$0xff] }
 0x1aa   :  { %3198 = vmatprep.subr.bf16.mxu1 %v5308_v51  ;;  %v5364_v51 = vcombine.high %v558_v44, %v562_v45  ;;  %v610_v37 = vld [vmem:[#allocation5 + $0xd68] sm:$0xff] }
 0x1ab   :  { %3295 = vmatpush1.bf16.msra.mxu0 %v5109_v50  ;;  %v5165_v50 = vcombine.low %v359_v39, %v363_v40  ;;  %v415_v39 = vld [vmem:[#allocation5 + $0x750] sm:$0xff] }
 0x1ac   :  { %3305 = vmatprep.subr.bf16.mxu0 %v5118_v52  ;;  %v5174_v52 = vcombine.high %v367_v46, %v371_v47  ;;  %v419_v40 = vld [vmem:[#allocation5 + $0x770] sm:$0xff] }
 0x1ad   :  { %3199 = vmatpush1.bf16.msra.mxu1 %v5307_v60  ;;  %v5363_v60 = vcombine.low %v558_v44, %v562_v45  ;;  %v614_v44 = vld [vmem:[#allocation5 + $0xd88] sm:$0xff] }
 0x1ae   :  { %3297 = vmatmul.mubr.bf16.vlgmr.msra.gmra.mrb[4].mxu0 %v6514_v16  ;;  %3200 = vmatprep.subr.bf16.mxu1 %v5316_v63  ;;  %v5372_v63 = vcombine.high %v566_v55, %v570_v56  ;;  %v618_v45 = vld [vmem:[#allocation5 + $0xda8] sm:$0xff] }
 0x1af   :  { %3306 = vmatpush1.bf16.msra.mxu0 %v5117_v62  ;;  %3337 = vmatprep.mubr.bf16.mxu0 %v6508_v61  ;;  %v5173_v62 = vcombine.low %v367_v46, %v371_v47  ;;  %v423_v46 = vld [vmem:[#allocation5 + $0x790] sm:$0xff] }
 0x1b0   :  { %3307 = vmatprep.subr.bf16.mxu0 %v5126_v0  ;;  %v5182_v0 = vcombine.high %v375_v57, %v379_v59  ;;  %v427_v47 = vld [vmem:[#allocation5 + $0x7b0] sm:$0xff] }
 0x1b1   :  { %3201 = vmatpush1.bf16.msra.mxu1 %v5315_v5  ;;  %v5371_v5 = vcombine.low %v566_v55, %v570_v56  ;;  %v5230_v55 = vcombine.high %v423_v46, %v427_v47  ;;  %v622_v56 = vld [vmem:[#allocation5 + $0xdc8] sm:$0xff] }
 0x1b2   :  { %3202 = vmatprep.subr.bf16.mxu1 %v5324_v7  ;;  %v5380_v7 = vcombine.high %v574_v1, %v578_v2 }
 0x1b3   :  { %3308 = vmatpush1.bf16.msra.mxu0 %v5125_v6  ;;  %v5181_v6 = vcombine.low %v375_v57, %v379_v59  ;;  %v626_v57 = vld [vmem:[#allocation5 + $0xde8] sm:$0xff] }
 0x1b4   :  { %3309 = vmatprep.subr.bf16.mxu0 %v5134_v8  ;;  %v5190_v8 = vcombine.high %v383_v3, %v387_v4 }
 0x1b5   :  { %3203 = vmatpush1.bf16.msra.mxu1 %v5323_v13  ;;  %v5379_v13 = vcombine.low %v574_v1, %v578_v2  ;;  %v5229_v2 = vcombine.low %v423_v46, %v427_v47  ;;  %v224_v46 = vld [vmem:[#allocation5 + $0x158] sm:$0xff] }
 0x1b6   :  { %3204 = vmatprep.subr.bf16.mxu1 %v5332_v15  ;;  %v5388_v15 = vcombine.high %v582_v9, %v586_v10  ;;  %v228_v47 = vld [vmem:[#allocation5 + $0x178] sm:$0xff] }
 0x1b7   :  { %3310 = vmatpush1.bf16.msra.mxu0 %v5133_v14  ;;  %v5189_v14 = vcombine.low %v383_v3, %v387_v4  ;;  %v5428_v3 = vcombine.high %v622_v56, %v626_v57 }
 0x1b8   :  { %3311 = vmatprep.subr.bf16.mxu0 %v5142_v17  ;;  %v5198_v17 = vcombine.high %v391_v11, %v395_v12 }
 0x1b9   :  { %3205 = vmatpush1.bf16.msra.mxu1 %v5331_v24  ;;  %v5387_v24 = vcombine.low %v582_v9, %v586_v10  ;;  %v5427_v9 = vcombine.low %v622_v56, %v626_v57  ;;  %v5032_v56 = vcombine.high %v224_v46, %v228_v47 }
 0x1ba   :  { %3206 = vmatprep.subr.bf16.mxu1 %v5340_v26  ;;  %v5396_v26 = vcombine.high %v590_v18, %v594_v20 }
 0x1bb   :  { %3312 = vmatpush1.bf16.msra.mxu0 %v5141_v25  ;;  %v5197_v25 = vcombine.low %v391_v11, %v395_v12 }
 0x1bc   :  { %3313 = vmatprep.subr.bf16.mxu0 %v5150_v53  ;;  %v5206_v53 = vcombine.high %v399_v22, %v403_v23 }
 0x1bd   :  { %3207 = vmatpush1.bf16.msra.mxu1 %v5339_v31  ;;  %v5395_v31 = vcombine.low %v590_v18, %v594_v20 }
 0x1be   :  { %3208 = vmatprep.subr.bf16.mxu1 %v5348_v34  ;;  %v5404_v34 = vcombine.high %v598_v27, %v602_v54 }
 0x1bf   :  { %3314 = vmatpush1.bf16.msra.mxu0 %v5149_v32  ;;  %v5205_v32 = vcombine.low %v399_v22, %v403_v23 }
 0x1c0   :  { %3315 = vmatprep.subr.bf16.mxu0 %v5158_v35  ;;  %v5214_v35 = vcombine.high %v407_v29, %v411_v30 }
 0x1c1   :  { %3209 = vmatpush1.bf16.msra.mxu1 %v5347_v41  ;;  %v5403_v41 = vcombine.low %v598_v27, %v602_v54 }
 0x1c2   :  { %3210 = vmatprep.subr.bf16.mxu1 %v5356_v19  ;;  %v5412_v19 = vcombine.high %v606_v36, %v610_v37 }
 0x1c3   :  { %3316 = vmatpush1.bf16.msra.mxu0 %v5157_v42  ;;  %v5213_v42 = vcombine.low %v407_v29, %v411_v30 }
 0x1c4   :  { %3317 = vmatprep.subr.bf16.mxu0 %v5166_v43  ;;  %v5222_v43 = vcombine.high %v415_v39, %v419_v40 }
 0x1c5   :  { %3211 = vmatpush1.bf16.msra.mxu1 %v5355_v49  ;;  %v5411_v49 = vcombine.low %v606_v36, %v610_v37 }
 0x1c6   :  { %3212 = vmatprep.subr.bf16.mxu1 %v5364_v51  ;;  %v5420_v51 = vcombine.high %v614_v44, %v618_v45 }
 0x1c7   :  { %3318 = vmatpush1.bf16.msra.mxu0 %v5165_v50  ;;  %v5221_v50 = vcombine.low %v415_v39, %v419_v40  ;;  %v216_v40 = vld [vmem:[#allocation5 + $0x118] sm:$0xff] }
 0x1c8   :  { %3319 = vmatprep.subr.bf16.mxu0 %v5174_v52 }
 0x1c9   :  { %3213 = vmatpush1.bf16.msra.mxu1 %v5363_v60  ;;  %v431_v60 = vld [vmem:[#allocation5 + $0x7d0] sm:$0xff] }
 0x1ca   :  { %3223 = vmatprep.subr.bf16.mxu1 %v5372_v63 }
 0x1cb   :  { %3320 = vmatpush1.bf16.msra.mxu0 %v5173_v62  ;;  %v435_v62 = vld [vmem:[#allocation5 + $0x7f0] sm:$0xff] }
 0x1cc   :  { %3321 = vmatprep.subr.bf16.mxu0 %v5182_v0  ;;  %3215 = vmatmul.mubr.bf16.vlgmr.msra.gmra.mrb[4].mxu1 %v6532_v33  ;;  %v5419_v0 = vcombine.low %v614_v44, %v618_v45  ;;  %v5238_v4 = vcombine.high %v431_v60, %v435_v62  ;;  %v5237_v10 = vcombine.low %v431_v60, %v435_v62  ;;  %v232_v60 = vld [vmem:[#allocation5 + $0x198] sm:$0xff] }
 0x1cd   :  { %3224 = vmatpush1.bf16.msra.mxu1 %v5371_v5  ;;  %3255 = vmatprep.mubr.bf16.mxu1 %v6293_v48  ;;  %v184_v5 = vld [vmem:[#allocation5 + $0x18] sm:$0xff] }
 0x1ce   :  { %3225 = vmatprep.subr.bf16.mxu1 %v5380_v7  ;;  %v439_v7 = vld [vmem:[#allocation5 + $0x810] sm:$0xff]  ;;  %v236_v62 = vld [vmem:[#allocation5 + $0x1b8] sm:$0xff] }
 0x1cf   :  { %3322 = vmatpush1.bf16.msra.mxu0 %v5181_v6  ;;  %v188_v6 = vld [vmem:[#allocation5 + $0x38] sm:$0xff] }
 0x1d0   :  { %3323 = vmatprep.subr.bf16.mxu0 %v5190_v8  ;;  %v443_v8 = vld [vmem:[#allocation5 + $0x830] sm:$0xff]  ;;  %v4992_v11 = vcombine.high %v184_v5, %v188_v6  ;;  %v4991_v18 = vcombine.low %v184_v5, %v188_v6  ;;  %v240_v5 = vld [vmem:[#allocation5 + $0x1d8] sm:$0xff] }
 0x1d1   :  { %3226 = vmatpush1.bf16.msra.mxu1 %v5379_v13  ;;  %v5246_v12 = vcombine.high %v439_v7, %v443_v8  ;;  %v192_v13 = vld [vmem:[#allocation5 + $0x58] sm:$0xff]  ;;  %v5245_v20 = vcombine.low %v439_v7, %v443_v8  ;;  %v495_v7 = vld [vmem:[#allocation5 + $0x9d0] sm:$0xff] }
 0x1d2   :  { %3227 = vmatprep.subr.bf16.mxu1 %v5388_v15  ;;  %v447_v15 = vld [vmem:[#allocation5 + $0x850] sm:$0xff]  ;;  %v244_v6 = vld [vmem:[#allocation5 + $0x1f8] sm:$0xff] }
 0x1d3   :  { %3324 = vmatpush1.bf16.msra.mxu0 %v5189_v14  ;;  %v196_v14 = vld [vmem:[#allocation5 + $0x78] sm:$0xff]  ;;  %v499_v8 = vld [vmem:[#allocation5 + $0x9f0] sm:$0xff] }
 0x1d4   :  { %3325 = vmatprep.subr.bf16.mxu0 %v5198_v17  ;;  %v451_v17 = vld [vmem:[#allocation5 + $0x870] sm:$0xff]  ;;  %v5000_v22 = vcombine.high %v192_v13, %v196_v14  ;;  %v4999_v27 = vcombine.low %v192_v13, %v196_v14  ;;  %v248_v13 = vld [vmem:[#allocation5 + $0x218] sm:$0xff] }
 0x1d5   :  { %3228 = vmatpush1.bf16.msra.mxu1 %v5387_v24  ;;  %v5254_v23 = vcombine.high %v447_v15, %v451_v17  ;;  %v200_v24 = vld [vmem:[#allocation5 + $0x98] sm:$0xff]  ;;  %v5253_v54 = vcombine.low %v447_v15, %v451_v17  ;;  %v503_v15 = vld [vmem:[#allocation5 + $0xa10] sm:$0xff] }
 0x1d6   :  { %3229 = vmatprep.subr.bf16.mxu1 %v5396_v26  ;;  %v455_v26 = vld [vmem:[#allocation5 + $0x890] sm:$0xff]  ;;  %v252_v14 = vld [vmem:[#allocation5 + $0x238] sm:$0xff] }
 0x1d7   :  { %3326 = vmatpush1.bf16.msra.mxu0 %v5197_v25  ;;  %v204_v25 = vld [vmem:[#allocation5 + $0xb8] sm:$0xff]  ;;  %v507_v17 = vld [vmem:[#allocation5 + $0xa30] sm:$0xff] }
 0x1d8   :  { %3327 = vmatprep.subr.bf16.mxu0 %v5206_v53  ;;  %v459_v53 = vld [vmem:[#allocation5 + $0x8b0] sm:$0xff]  ;;  %v5008_v29 = vcombine.high %v200_v24, %v204_v25 }
 0x1d9   :  { %3230 = vmatpush1.bf16.msra.mxu1 %v5395_v31  ;;  %v5262_v30 = vcombine.high %v455_v26, %v459_v53  ;;  %v208_v31 = vld [vmem:[#allocation5 + $0xd8] sm:$0xff]  ;;  %v5261_v36 = vcombine.low %v455_v26, %v459_v53  ;;  %v511_v26 = vld [vmem:[#allocation5 + $0xa50] sm:$0xff] }
 0x1da   :  { %3231 = vmatprep.subr.bf16.mxu1 %v5404_v34  ;;  %v463_v34 = vld [vmem:[#allocation5 + $0x8d0] sm:$0xff] }
 0x1db   :  { %3328 = vmatpush1.bf16.msra.mxu0 %v5205_v32  ;;  %v212_v32 = vld [vmem:[#allocation5 + $0xf8] sm:$0xff]  ;;  %v515_v53 = vld [vmem:[#allocation5 + $0xa70] sm:$0xff] }
 0x1dc   :  { %3329 = vmatprep.subr.bf16.mxu0 %v5214_v35  ;;  %v467_v35 = vld [vmem:[#allocation5 + $0x8f0] sm:$0xff]  ;;  %v5016_v37 = vcombine.high %v208_v31, %v212_v32 }
 0x1dd   :  { %3232 = vmatpush1.bf16.msra.mxu1 %v5403_v41  ;;  %v5270_v39 = vcombine.high %v463_v34, %v467_v35  ;;  %v220_v41 = vld [vmem:[#allocation5 + $0x138] sm:$0xff]  ;;  %v5269_v44 = vcombine.low %v463_v34, %v467_v35  ;;  %v519_v34 = vld [vmem:[#allocation5 + $0xa90] sm:$0xff] }
 0x1de   :  { %3233 = vmatprep.subr.bf16.mxu1 %v5412_v19  ;;  %v475_v19 = vld [vmem:[#allocation5 + $0x930] sm:$0xff]  ;;  %v5024_v45 = vcombine.high %v216_v40, %v220_v41 }
 0x1df   :  { %3330 = vmatpush1.bf16.msra.mxu0 %v5213_v42  ;;  %v6548_v52 = vpop.f32.mrb[0].mxu1  ;;  %v471_v42 = vld [vmem:[#allocation5 + $0x910] sm:$0xff] }
 0x1e0   :  { %3331 = vmatprep.subr.bf16.mxu0 %v5222_v43  ;;  %v6550_v59 = vpop.f32.mrb[1].mxu1  ;;  %v5015_v43 = vcombine.low %v208_v31, %v212_v32  ;;  %v264_v31 = vld [vmem:[#allocation5 + $0x298] sm:$0xff]  ;;  %v523_v35 = vld [vmem:[#allocation5 + $0xab0] sm:$0xff] }
 0x1e1   :  { %v2974_v63 = vpop.f32.mrb[2].mxu1  ;;  %3234 = vmatpush1.bf16.msra.mxu1 %v5411_v49  ;;  %v479_v49 = vld [vmem:[#allocation5 + $0x950] sm:$0xff]  ;;  %v268_v32 = vld [vmem:[#allocation5 + $0x2b8] sm:$0xff] }
 0x1e2   :  { %v2975_v1 = vpop.f32.mrb[3].mxu1  ;;  %3235 = vmatprep.subr.bf16.mxu1 %v5420_v51  ;;  %v5023_v51 = vcombine.low %v216_v40, %v220_v41  ;;  %v487_v63 = vld [vmem:[#allocation5 + $0x990] sm:$0xff]  ;;  %v272_v40 = vld [vmem:[#allocation5 + $0x2d8] sm:$0xff] }
 0x1e3   :  { %3332 = vmatpush1.bf16.msra.mxu0 %v5221_v50  ;;  %v483_v50 = vld [vmem:[#allocation5 + $0x970] sm:$0xff]  ;;  %v5031_v1 = vcombine.low %v224_v46, %v228_v47  ;;  %v276_v41 = vld [vmem:[#allocation5 + $0x2f8] sm:$0xff] }
 0x1e4   :  { %3333 = vmatprep.subr.bf16.mxu0 %v5230_v55  ;;  %v5277_v55 = vcombine.low %v471_v42, %v475_v19  ;;  %v5286_v57 = vcombine.high %v479_v49, %v483_v50  ;;  %v280_v46 = vld [vmem:[#allocation5 + $0x318] sm:$0xff] }
 0x1e5   :  { %3236 = vmatpush1.bf16.msra.mxu1 %v5419_v0  ;;  %v491_v0 = vld [vmem:[#allocation5 + $0x9b0] sm:$0xff]  ;;  %v284_v47 = vld [vmem:[#allocation5 + $0x338] sm:$0xff] }
 0x1e6   :  { %3237 = vmatprep.subr.bf16.mxu1 %v5428_v3  ;;  %v5040_v3 = vcombine.high %v232_v60, %v236_v62 }
 0x1e7   :  { %3334 = vmatpush1.bf16.msra.mxu0 %v5229_v2  ;;  %v5285_v2 = vcombine.low %v479_v49, %v483_v50  ;;  %v535_v49 = vld [vmem:[#allocation5 + $0xb10] sm:$0xff] }
 0x1e8   :  { %3335 = vmatprep.subr.bf16.mxu0 %v5238_v4  ;;  %v5294_v4 = vcombine.high %v487_v63, %v491_v0  ;;  %v539_v50 = vld [vmem:[#allocation5 + $0xb30] sm:$0xff] }
 0x1e9   :  { %3238 = vmatpush1.bf16.msra.mxu1 %v5427_v9  ;;  %v5039_v9 = vcombine.low %v232_v60, %v236_v62  ;;  %v288_v60 = vld [vmem:[#allocation5 + $0x358] sm:$0xff] }
 0x1ea   :  { %3428 = vmatprep.subr.bf16.mxu1 %v4992_v11  ;;  %v5048_v11 = vcombine.high %v240_v5, %v244_v6  ;;  %v292_v62 = vld [vmem:[#allocation5 + $0x378] sm:$0xff] }
 0x1eb   :  { %3336 = vmatpush1.bf16.msra.mxu0 %v5237_v10  ;;  %v5293_v10 = vcombine.low %v487_v63, %v491_v0  ;;  %v543_v63 = vld [vmem:[#allocation5 + $0xb50] sm:$0xff] }
 0x1ec   :  { %3346 = vmatprep.subr.bf16.mxu0 %v5246_v12  ;;  %3256 = vmatmul.mubr.bf16.vlgmr.msra.gmra.mrb[4].mxu1 %v6538_v38  ;;  %v5007_v38 = vcombine.low %v200_v24, %v204_v25  ;;  %v5302_v12 = vcombine.high %v495_v7, %v499_v8  ;;  %v256_v24 = vld [vmem:[#allocation5 + $0x258] sm:$0xff]  ;;  %v547_v0 = vld [vmem:[#allocation5 + $0xb70] sm:$0xff] }
 0x1ed   :  { %3429 = vmatpush1.bf16.msra.mxu1 %v4991_v18  ;;  %3460 = vmatprep.mubr.bf16.mxu1 %v6504_v58  ;;  %v5278_v58 = vcombine.high %v471_v42, %v475_v19  ;;  %v5047_v18 = vcombine.low %v240_v5, %v244_v6  ;;  %v260_v25 = vld [vmem:[#allocation5 + $0x278] sm:$0xff]  ;;  %v527_v42 = vld [vmem:[#allocation5 + $0xad0] sm:$0xff] }
 0x1ee   :  { %3338 = vmatmul.mubr.bf16.vlgmr.msra.gmra.mrb[4].mxu0 %v6520_v21  ;;  %3430 = vmatprep.subr.bf16.mxu1 %v5000_v22  ;;  %v5056_v22 = vcombine.high %v248_v13, %v252_v14  ;;  %v531_v19 = vld [vmem:[#allocation5 + $0xaf0] sm:$0xff]  ;;  %v296_v5 = vld [vmem:[#allocation5 + $0x398] sm:$0xff] }
 0x1ef   :  { %3347 = vmatpush1.bf16.msra.mxu0 %v5245_v20  ;;  %3378 = vmatprep.mubr.bf16.mxu0 %v6524_v28  ;;  %v5301_v20 = vcombine.low %v495_v7, %v499_v8  ;;  %v300_v6 = vld [vmem:[#allocation5 + $0x3b8] sm:$0xff]  ;;  %v551_v7 = vld [vmem:[#allocation5 + $0xb90] sm:$0xff] }
 0x1f0   :  { %3348 = vmatprep.subr.bf16.mxu0 %v5254_v23  ;;  %v5310_v23 = vcombine.high %v503_v15, %v507_v17  ;;  %v555_v8 = vld [vmem:[#allocation5 + $0xbb0] sm:$0xff] }
 0x1f1   :  { %3431 = vmatpush1.bf16.msra.mxu1 %v4999_v27  ;;  %v5055_v27 = vcombine.low %v248_v13, %v252_v14  ;;  %v304_v13 = vld [vmem:[#allocation5 + $0x3d8] sm:$0xff] }
 0x1f2   :  { %3432 = vmatprep.subr.bf16.mxu1 %v5008_v29  ;;  %v5064_v29 = vcombine.high %v256_v24, %v260_v25  ;;  %v308_v14 = vld [vmem:[#allocation5 + $0x3f8] sm:$0xff] }
 0x1f3   :  { %3349 = vmatpush1.bf16.msra.mxu0 %v5253_v54  ;;  %v5309_v54 = vcombine.low %v503_v15, %v507_v17  ;;  %v559_v15 = vld [vmem:[#allocation5 + $0xbd0] sm:$0xff] }
 0x1f4   :  { %3350 = vmatprep.subr.bf16.mxu0 %v5262_v30  ;;  %v5318_v30 = vcombine.high %v511_v26, %v515_v53  ;;  %v563_v17 = vld [vmem:[#allocation5 + $0xbf0] sm:$0xff] }
 0x1f5   :  { %3433 = vmatpush1.bf16.msra.mxu1 %v5007_v38  ;;  %v5063_v38 = vcombine.low %v256_v24, %v260_v25  ;;  %v312_v24 = vld [vmem:[#allocation5 + $0x418] sm:$0xff] }
 0x1f6   :  { %3434 = vmatprep.subr.bf16.mxu1 %v5016_v37  ;;  %v5072_v37 = vcombine.high %v264_v31, %v268_v32  ;;  %v316_v25 = vld [vmem:[#allocation5 + $0x438] sm:$0xff] }
 0x1f7   :  { %3351 = vmatpush1.bf16.msra.mxu0 %v5261_v36  ;;  %v5317_v36 = vcombine.low %v511_v26, %v515_v53  ;;  %v567_v26 = vld [vmem:[#allocation5 + $0xc10] sm:$0xff] }
 0x1f8   :  { %3352 = vmatprep.subr.bf16.mxu0 %v5270_v39  ;;  %v5326_v39 = vcombine.high %v519_v34, %v523_v35  ;;  %v571_v53 = vld [vmem:[#allocation5 + $0xc30] sm:$0xff] }
 0x1f9   :  { %3435 = vmatpush1.bf16.msra.mxu1 %v5015_v43  ;;  %v5071_v43 = vcombine.low %v264_v31, %v268_v32  ;;  %v320_v31 = vld [vmem:[#allocation5 + $0x458] sm:$0xff] }
 0x1fa   :  { %3436 = vmatprep.subr.bf16.mxu1 %v5024_v45  ;;  %v5080_v45 = vcombine.high %v272_v40, %v276_v41  ;;  %v324_v32 = vld [vmem:[#allocation5 + $0x478] sm:$0xff] }
 0x1fb   :  { %3353 = vmatpush1.bf16.msra.mxu0 %v5269_v44  ;;  %v5325_v44 = vcombine.low %v519_v34, %v523_v35  ;;  %v575_v34 = vld [vmem:[#allocation5 + $0xc50] sm:$0xff] }
 0x1fc   :  { %3354 = vmatprep.subr.bf16.mxu0 %v5278_v58  ;;  %v5334_v58 = vcombine.high %v527_v42, %v531_v19  ;;  %v579_v35 = vld [vmem:[#allocation5 + $0xc70] sm:$0xff] }
 0x1fd   :  { %3437 = vmatpush1.bf16.msra.mxu1 %v5023_v51  ;;  %v5079_v51 = vcombine.low %v272_v40, %v276_v41  ;;  %v328_v40 = vld [vmem:[#allocation5 + $0x498] sm:$0xff] }
 0x1fe   :  { %3438 = vmatprep.subr.bf16.mxu1 %v5032_v56  ;;  %v5088_v56 = vcombine.high %v280_v46, %v284_v47  ;;  %v332_v41 = vld [vmem:[#allocation5 + $0x4b8] sm:$0xff] }
 0x1ff   :  { %3355 = vmatpush1.bf16.msra.mxu0 %v5277_v55  ;;  %v5333_v55 = vcombine.low %v527_v42, %v531_v19  ;;  %v583_v42 = vld [vmem:[#allocation5 + $0xc90] sm:$0xff] }
 0x200   :  { %3356 = vmatprep.subr.bf16.mxu0 %v5286_v57  ;;  %v5342_v57 = vcombine.high %v535_v49, %v539_v50  ;;  %v587_v19 = vld [vmem:[#allocation5 + $0xcb0] sm:$0xff] }
 0x201   :  { %3439 = vmatpush1.bf16.msra.mxu1 %v5031_v1  ;;  %v5087_v1 = vcombine.low %v280_v46, %v284_v47  ;;  %v5390_v46 = vcombine.high %v583_v42, %v587_v19  ;;  %v336_v47 = vld [vmem:[#allocation5 + $0x4d8] sm:$0xff] }
 0x202   :  { %3440 = vmatprep.subr.bf16.mxu1 %v5040_v3  ;;  %v5096_v3 = vcombine.high %v288_v60, %v292_v62 }
 0x203   :  { %3357 = vmatpush1.bf16.msra.mxu0 %v5285_v2  ;;  %v5341_v2 = vcombine.low %v535_v49, %v539_v50  ;;  %v340_v49 = vld [vmem:[#allocation5 + $0x4f8] sm:$0xff]  ;;  %v591_v50 = vld [vmem:[#allocation5 + $0xcd0] sm:$0xff] }
 0x204   :  { %3358 = vmatprep.subr.bf16.mxu0 %v5294_v4  ;;  %v5350_v4 = vcombine.high %v543_v63, %v547_v0 }
 0x205   :  { %3441 = vmatpush1.bf16.msra.mxu1 %v5039_v9  ;;  %v5095_v9 = vcombine.low %v288_v60, %v292_v62  ;;  %v344_v62 = vld [vmem:[#allocation5 + $0x518] sm:$0xff] }
 0x206   :  { %3442 = vmatprep.subr.bf16.mxu1 %v5048_v11  ;;  %v5104_v11 = vcombine.high %v296_v5, %v300_v6 }
 0x207   :  { %3359 = vmatpush1.bf16.msra.mxu0 %v5293_v10  ;;  %v5349_v10 = vcombine.low %v543_v63, %v547_v0  ;;  %v348_v63 = vld [vmem:[#allocation5 + $0x538] sm:$0xff]  ;;  %v599_v0 = vld [vmem:[#allocation5 + $0xd10] sm:$0xff] }
 0x208   :  { %3360 = vmatprep.subr.bf16.mxu0 %v5302_v12  ;;  %v5358_v12 = vcombine.high %v551_v7, %v555_v8 }
 0x209   :  { %3443 = vmatpush1.bf16.msra.mxu1 %v5047_v18  ;;  %v5103_v18 = vcombine.low %v296_v5, %v300_v6  ;;  %v352_v6 = vld [vmem:[#allocation5 + $0x558] sm:$0xff] }
 0x20a   :  { %3444 = vmatprep.subr.bf16.mxu1 %v5056_v22  ;;  %v5112_v22 = vcombine.high %v304_v13, %v308_v14 }
 0x20b   :  { %3361 = vmatpush1.bf16.msra.mxu0 %v5301_v20  ;;  %v5357_v20 = vcombine.low %v551_v7, %v555_v8  ;;  %v356_v7 = vld [vmem:[#allocation5 + $0x578] sm:$0xff]  ;;  %v6563_v8 = vld [vmem:[#allocation7] sm:$0xff] }
 0x20c   :  { %3362 = vmatprep.subr.bf16.mxu0 %v5310_v23  ;;  %v5366_v23 = vcombine.high %v559_v15, %v563_v17 }
 0x20d   :  { %3445 = vmatpush1.bf16.msra.mxu1 %v5055_v27  ;;  %v5111_v27 = vcombine.low %v304_v13, %v308_v14  ;;  %v5160_v14 = vcombine.high %v352_v6, %v356_v7 }
 0x20e   :  { %3446 = vmatprep.subr.bf16.mxu1 %v5064_v29  ;;  %v5120_v29 = vcombine.high %v312_v24, %v316_v25 }
 0x20f   :  { %3363 = vmatpush1.bf16.msra.mxu0 %v5309_v54  ;;  %v5365_v54 = vcombine.low %v559_v15, %v563_v17 }
 0x210   :  { %3364 = vmatprep.subr.bf16.mxu0 %v5318_v30  ;;  %v5374_v30 = vcombine.high %v567_v26, %v571_v53 }
 0x211   :  { %3447 = vmatpush1.bf16.msra.mxu1 %v5063_v38  ;;  %v5119_v38 = vcombine.low %v312_v24, %v316_v25  ;;  %v619_v24 = vld [vmem:[#allocation5 + $0xdb0] sm:$0xff]  ;;  %v5159_v25 = vcombine.low %v352_v6, %v356_v7  ;;  %v404_v6 = vld [vmem:[#allocation5 + $0x6f8] sm:$0xff] }
 0x212   :  { %3448 = vmatprep.subr.bf16.mxu1 %v5072_v37  ;;  %v5128_v37 = vcombine.high %v320_v31, %v324_v32 }
 0x213   :  { %3365 = vmatpush1.bf16.msra.mxu0 %v5317_v36  ;;  %v5373_v36 = vcombine.low %v567_v26, %v571_v53 }
 0x214   :  { %3366 = vmatprep.subr.bf16.mxu0 %v5326_v39  ;;  %v5382_v39 = vcombine.high %v575_v34, %v579_v35 }
 0x215   :  { %3449 = vmatpush1.bf16.msra.mxu1 %v5071_v43  ;;  %v5127_v43 = vcombine.low %v320_v31, %v324_v32 }
 0x216   :  { %3450 = vmatprep.subr.bf16.mxu1 %v5080_v45  ;;  %v5136_v45 = vcombine.high %v328_v40, %v332_v41 }
 0x217   :  { %3367 = vmatpush1.bf16.msra.mxu0 %v5325_v44  ;;  %v5381_v44 = vcombine.low %v575_v34, %v579_v35  ;;  %v623_v34 = vld [vmem:[#allocation5 + $0xdd0] sm:$0xff] }
 0x218   :  { %3368 = vmatprep.subr.bf16.mxu0 %v5334_v58  ;;  %v631_v58 = vlaneseq  ;;  %v627_v35 = vld [vmem:[#allocation5 + $0xdf0] sm:$0xff] }
 0x219   :  { %3451 = vmatpush1.bf16.msra.mxu1 %v5079_v51  ;;  %v595_v51 = vld [vmem:[#allocation5 + $0xcf0] sm:$0xff] }
 0x21a   :  { %3452 = vmatprep.subr.bf16.mxu1 %v5088_v56  ;;  %v5144_v56 = vcombine.high %v336_v47, %v340_v49  ;;  %v5398_v60 = vcombine.high %v591_v50, %v595_v51 }
 0x21b   :  { %3369 = vmatpush1.bf16.msra.mxu0 %v5333_v55  ;;  %v5389_v55 = vcombine.low %v583_v42, %v587_v19  ;;  %v5430_v19 = vcombine.high %v623_v34, %v627_v35 }
 0x21c   :  { %3370 = vmatprep.subr.bf16.mxu0 %v5342_v57  ;;  %v6560_v57 = vshrl.u32 %v631_v58, 7 }
 0x21d   :  { %3453 = vmatpush1.bf16.msra.mxu1 %v5087_v1  ;;  %v603_v1 = vld [vmem:[#allocation5 + $0xd30] sm:$0xff] }
 0x21e   :  { %3454 = vmatprep.subr.bf16.mxu1 %v5096_v3  ;;  %v5397_v3 = vcombine.low %v591_v50, %v595_v51  ;;  %v5406_v5 = vcombine.high %v599_v0, %v603_v1  ;;  %v5405_v13 = vcombine.low %v599_v0, %v603_v1  ;;  %v388_v50 = vld [vmem:[#allocation5 + $0x678] sm:$0xff] }
 0x21f   :  { %3371 = vmatpush1.bf16.msra.mxu0 %v5341_v2  ;;  %v5143_v2 = vcombine.low %v336_v47, %v340_v49  ;;  %v384_v49 = vld [vmem:[#allocation5 + $0x658] sm:$0xff] }
 0x220   :  { %3372 = vmatprep.subr.bf16.mxu0 %v5350_v4  ;;  %v633_v4 = vsub.s32 0, %v6560_v57  ;;  %v6576_v0 = vld [vmem:[#allocation2 + $0x18] ss:$0 sps:$4 sm:$0xff]   ;;  %v5191_v1 = vcombine.low %v384_v49, %v388_v50 }
 0x221   :  { %3455 = vmatpush1.bf16.msra.mxu1 %v5095_v9  ;;  %v637_v9 = vsub.s32 1, %v6560_v57 }
 0x222   :  { %3456 = vmatprep.subr.bf16.mxu1 %v5104_v11  ;;  %v611_v11 = vld [vmem:[#allocation5 + $0xd70] sm:$0xff]  ;;  %v634_v15 = vrot.slane %v6563_v8, %v633_v4 }
 0x223   :  { %3373 = vmatpush1.bf16.msra.mxu0 %v5349_v10  ;;  %v607_v10 = vld [vmem:[#allocation5 + $0xd50] sm:$0xff] }
 0x224   :  { %3374 = vmatprep.subr.bf16.mxu0 %v5358_v12  ;;  %v5151_v12 = vcombine.low %v344_v62, %v348_v63  ;;  %v5414_v17 = vcombine.high %v607_v10, %v611_v11  ;;  %v5413_v26 = vcombine.low %v607_v10, %v611_v11  ;;  %v5778_v10 = vld [vmem:[#allocation8 + $0x20] ss:$8 sps:$4 sm:$0xff]  }
 0x225   :  { %3457 = vmatpush1.bf16.msra.mxu1 %v5103_v18  ;;  %v360_v18 = vld [vmem:[#allocation5 + $0x598] sm:$0xff] }
 0x226   :  { %3458 = vmatprep.subr.bf16.mxu1 %v5112_v22  ;;  %v638_v22 = vrot.slane %v6563_v8, %v637_v9 }
 0x227   :  { %3375 = vmatpush1.bf16.msra.mxu0 %v5357_v20  ;;  %v364_v20 = vld [vmem:[#allocation5 + $0x5b8] sm:$0xff] }
 0x228   :  { %3376 = vmatprep.subr.bf16.mxu0 %v5366_v23  ;;  %v615_v23 = vld [vmem:[#allocation5 + $0xd90] sm:$0xff]  ;;  %v5168_v53 = vcombine.high %v360_v18, %v364_v20  ;;  %v2973_v31 = vadd.f32 %v6550_v59, %v638_v22  ;;  %v416_v22 = vld [vmem:[#allocation5 + $0x758] sm:$0xff] }
 0x229   :  { %3459 = vmatpush1.bf16.msra.mxu1 %v5111_v27  ;;  %v2971_v27 = vadd.f32 %v6548_v52, %v634_v15 }
 0x22a   :  { %3469 = vmatprep.subr.bf16.mxu1 %v5120_v29  ;;  %v368_v29 = vld [vmem:[#allocation5 + $0x5d8] sm:$0xff] }
 0x22b   :  { %3377 = vmatpush1.bf16.msra.mxu0 %v5365_v54  ;;  %v5422_v54 = vcombine.high %v615_v23, %v619_v24 }
 0x22c   :  { %3387 = vmatprep.subr.bf16.mxu0 %v5374_v30  ;;  %3461 = vmatmul.mubr.bf16.vlgmr.msra.gmra.mrb[8].mxu1 %v6514_v16  ;;  %v5135_v16 = vcombine.low %v328_v40, %v332_v41  ;;  %v372_v30 = vld [vmem:[#allocation5 + $0x5f8] sm:$0xff]  ;;  %v5421_v41 = vcombine.low %v615_v23, %v619_v24 }
 0x22d   :  { %3470 = vmatpush1.bf16.msra.mxu1 %v5119_v38  ;;  %3501 = vmatprep.mubr.bf16.mxu1 %v6508_v61  ;;  %v5152_v61 = vcombine.high %v344_v62, %v348_v63  ;;  %v5176_v52 = vcombine.high %v368_v29, %v372_v30  ;;  %v5175_v59 = vcombine.low %v368_v29, %v372_v30  ;;  %v396_v62 = vld [vmem:[#allocation5 + $0x6b8] sm:$0xff] }
 0x22e   :  { %3379 = vmatmul.mubr.bf16.vlgmr.msra.gmra.mrb[4].mxu0 %v6532_v33  ;;  %3471 = vmatprep.subr.bf16.mxu1 %v5128_v37  ;;  %v5167_v37 = vcombine.low %v360_v18, %v364_v20  ;;  %v5786_v20 = vld [vmem:[#allocation8 + $0x44] ss:$8 sps:$4 sm:$0xff]   ;;  %v420_v23 = vld [vmem:[#allocation5 + $0x778] sm:$0xff] }
 0x22f   :  { %3388 = vmatpush1.bf16.msra.mxu0 %v5373_v36  ;;  %3419 = vmatprep.mubr.bf16.mxu0 %v6293_v48  ;;  %v5223_v29 = vcombine.low %v416_v22, %v420_v23  ;;  %v5787_v30 = vld [vmem:[#allocation8 + $0x50] ss:$8 sps:$4 sm:$0xff]  }
 0x230   :  { %3389 = vmatprep.subr.bf16.mxu0 %v5382_v39 }
 0x231   :  { %3472 = vmatpush1.bf16.msra.mxu1 %v5127_v43  ;;  %v376_v43 = vld [vmem:[#allocation5 + $0x618] sm:$0xff] }
 0x232   :  { %3473 = vmatprep.subr.bf16.mxu1 %v5136_v45  ;;  %v5429_v45 = vcombine.low %v623_v34, %v627_v35  ;;  %v432_v34 = vld [vmem:[#allocation5 + $0x7d8] sm:$0xff] }
 0x233   :  { %3390 = vmatpush1.bf16.msra.mxu0 %v5381_v44  ;;  %v380_v44 = vld [vmem:[#allocation5 + $0x638] sm:$0xff] }
 0x234   :  { %3391 = vmatprep.subr.bf16.mxu0 %v5390_v46  ;;  %v5184_v58 = vcombine.high %v376_v43, %v380_v44  ;;  %v5774_v46 = vld [vmem:[#allocation8 + $0x4] ss:$8 sps:$4 sm:$0xff]   ;;  %v5183_v51 = vcombine.low %v376_v43, %v380_v44  ;;  %v436_v35 = vld [vmem:[#allocation5 + $0x7f8] sm:$0xff] }
 0x235   :  { %3474 = vmatpush1.bf16.msra.mxu1 %v5135_v16  ;;  %v5772_v16 = vld [vmem:[#allocation8] ss:$8 sps:$4 sm:$0xff]   ;;  %v5798_v44 = vld [vmem:[#allocation8 + $0x84] ss:$8 sps:$4 sm:$0xff]  }
 0x236   :  { %3475 = vmatprep.subr.bf16.mxu1 %v5144_v56  ;;  %v5777_v56 = vld [vmem:[#allocation8 + $0x14] ss:$8 sps:$4 sm:$0xff]  }
 0x237   :  { %3392 = vmatpush1.bf16.msra.mxu0 %v5389_v55  ;;  %v5192_v55 = vcombine.high %v384_v49, %v388_v50  ;;  %v5801_v49 = vld [vmem:[#allocation8 + $0x94] ss:$8 sps:$4 sm:$0xff]  }
 0x238   :  { %3393 = vmatprep.subr.bf16.mxu0 %v5398_v60  ;;  %v392_v60 = vld [vmem:[#allocation5 + $0x698] sm:$0xff] }
 0x239   :  { %3476 = vmatpush1.bf16.msra.mxu1 %v5143_v2  ;;  %v5775_v2 = vld [vmem:[#allocation8 + $0x10] ss:$8 sps:$4 sm:$0xff]   ;;  %v5199_v7 = vcombine.low %v392_v60, %v396_v62 }
 0x23a   :  { %3477 = vmatprep.subr.bf16.mxu1 %v5152_v61  ;;  %v5780_v61 = vld [vmem:[#allocation8 + $0x24] ss:$8 sps:$4 sm:$0xff]   ;;  %v456_v50 = vld [vmem:[#allocation5 + $0x898] sm:$0xff] }
 0x23b   :  { %3394 = vmatpush1.bf16.msra.mxu0 %v5397_v3  ;;  %v5200_v3 = vcombine.high %v392_v60, %v396_v62  ;;  %v5804_v60 = vld [vmem:[#allocation8 + $0xa4] ss:$8 sps:$4 sm:$0xff]   ;;  %v464_v62 = vld [vmem:[#allocation5 + $0x8d8] sm:$0xff] }
 0x23c   :  { %3395 = vmatprep.subr.bf16.mxu0 %v5406_v5  ;;  %v400_v5 = vld [vmem:[#allocation5 + $0x6d8] sm:$0xff] }
 0x23d   :  { %3478 = vmatpush1.bf16.msra.mxu1 %v5151_v12  ;;  %v5208_v11 = vcombine.high %v400_v5, %v404_v6  ;;  %v5783_v12 = vld [vmem:[#allocation8 + $0x34] ss:$8 sps:$4 sm:$0xff]   ;;  %v5207_v15 = vcombine.low %v400_v5, %v404_v6  ;;  %v5805_v6 = vld [vmem:[#allocation8 + $0xb0] ss:$8 sps:$4 sm:$0xff]  }
 0x23e   :  { %3479 = vmatprep.subr.bf16.mxu1 %v5160_v14  ;;  %v412_v14 = vld [vmem:[#allocation5 + $0x738] sm:$0xff] }
 0x23f   :  { %3396 = vmatpush1.bf16.msra.mxu0 %v5405_v13  ;;  %v408_v13 = vld [vmem:[#allocation5 + $0x718] sm:$0xff] }
 0x240   :  { %3397 = vmatprep.subr.bf16.mxu0 %v5414_v17  ;;  %v5781_v17 = vld [vmem:[#allocation8 + $0x30] ss:$8 sps:$4 sm:$0xff]   ;;  %v5216_v18 = vcombine.high %v408_v13, %v412_v14  ;;  %v5215_v24 = vcombine.low %v408_v13, %v412_v14  ;;  %v5808_v14 = vld [vmem:[#allocation8 + $0xc0] ss:$8 sps:$4 sm:$0xff]  }
 0x241   :  { %v3093_v32 = vpop.f32.mrb[0].mxu0  ;;  %3480 = vmatpush1.bf16.msra.mxu1 %v5159_v25  ;;  %v5784_v25 = vld [vmem:[#allocation8 + $0x40] ss:$8 sps:$4 sm:$0xff]   ;;  %v476_v5 = vld [vmem:[#allocation5 + $0x938] sm:$0xff] }
 0x242   :  { %v6574_v38 = vadd.f32 %v3093_v32, %v2971_v27  ;;  %v3095_v36 = vpop.f32.mrb[1].mxu0  ;;  %3481 = vmatprep.subr.bf16.mxu1 %v5168_v53  ;;  %v5789_v53 = vld [vmem:[#allocation8 + $0x54] ss:$8 sps:$4 sm:$0xff]   ;;  %v5792_v32 = vld [vmem:[#allocation8 + $0x64] ss:$8 sps:$4 sm:$0xff]  }
 0x243   :  { %v5679_v39 = vadd.f32 %v3095_v36, %v2973_v31  ;;  %v3097_v40 = vpop.f32.mrb[2].mxu0  ;;  %3398 = vmatpush1.bf16.msra.mxu0 %v5413_v26  ;;  %v5224_v26 = vcombine.high %v416_v22, %v420_v23  ;;  %v424_v27 = vld [vmem:[#allocation5 + $0x798] sm:$0xff] }
 0x244   :  { %v3098_v42 = vpop.f32.mrb[3].mxu0  ;;  %3399 = vmatprep.subr.bf16.mxu0 %v5422_v54  ;;  %v428_v54 = vld [vmem:[#allocation5 + $0x7b8] sm:$0xff] }
 0x245   :  { %3482 = vmatpush1.bf16.msra.mxu1 %v5167_v37  ;;  %v3593_v47 = vmax.f32 %v5679_v39, 0.0  ;;  %v5232_v31 = vcombine.high %v424_v27, %v428_v54  ;;  %v5231_v36 = vcombine.low %v424_v27, %v428_v54  ;;  %v5790_v37 = vld [vmem:[#allocation8 + $0x60] ss:$8 sps:$4 sm:$0xff]   ;;  %v5240_v39 = vcombine.high %v432_v34, %v436_v35  ;;  %v5795_v40 = vld [vmem:[#allocation8 + $0x74] ss:$8 sps:$4 sm:$0xff]  }
 0x246   :  { %3483 = vmatprep.subr.bf16.mxu1 %v5176_v52  ;;  %v444_v52 = vld [vmem:[#allocation5 + $0x838] sm:$0xff]  ;;  %v5239_v42 = vcombine.low %v432_v34, %v436_v35  ;;  %v5814_v54 = vld [vmem:[#allocation8 + $0xe0] ss:$8 sps:$4 sm:$0xff]  }
 0x247   :  { %3400 = vmatpush1.bf16.msra.mxu0 %v5421_v41  ;;  %v3601_v63 = vpack.c.bf16 %v3593_v47, %v3593_v47  ;;  %v440_v41 = vld [vmem:[#allocation5 + $0x818] sm:$0xff] }
 0x248   :  { %3401 = vmatprep.subr.bf16.mxu0 %v5430_v19  ;;  %v5793_v19 = vld [vmem:[#allocation8 + $0x70] ss:$8 sps:$4 sm:$0xff]   ;;  %v5248_v43 = vcombine.high %v440_v41, %v444_v52 }
 0x249   :  { %3484 = vmatpush1.bf16.msra.mxu1 %v5175_v59  ;;  %v448_v59 = vld [vmem:[#allocation5 + $0x858] sm:$0xff] }
 0x24a   :  { %3485 = vmatprep.subr.bf16.mxu1 %v5184_v58  ;;  %v5247_v58 = vcombine.low %v440_v41, %v444_v52  ;;  %v5811_v23 = vld [vmem:[#allocation8 + $0xd0] ss:$8 sps:$4 sm:$0xff]  }
 0x24b   :  { %3402 = vmatpush1.bf16.msra.mxu0 %v5429_v45  ;;  %v452_v45 = vld [vmem:[#allocation5 + $0x878] sm:$0xff] }
 0x24c   :  { %4388 = vmatprep.subr.bf16.mxu0 %v5774_v46  ;;  %v5796_v46 = vld [vmem:[#allocation8 + $0x80] ss:$8 sps:$4 sm:$0xff]   ;;  %v5256_v47 = vcombine.high %v448_v59, %v452_v45  ;;  %v5817_v35 = vld [vmem:[#allocation8 + $0xf0] ss:$8 sps:$4 sm:$0xff]  }
 0x24d   :  { %3486 = vmatpush1.bf16.msra.mxu1 %v5183_v51  ;;  %v460_v51 = vld [vmem:[#allocation5 + $0x8b8] sm:$0xff] }
 0x24e   :  { %3420 = vmatmul.mubr.bf16.vlgmr.msra.gmra.mrb[4].mxu0 %v6576_v0  ;;  %3487 = vmatprep.subr.bf16.mxu1 %v5192_v55  ;;  %v5799_v55 = vld [vmem:[#allocation8 + $0x90] ss:$8 sps:$4 sm:$0xff]  }
 0x24f   :  { %4389 = vmatpush1.bf16.msra.mxu0 %v5772_v16  ;;  %4420 = vmatprep.mubr.bf16.mxu0 %v3601_v63  ;;  %v5255_v16 = vcombine.low %v448_v59, %v452_v45  ;;  %v468_v63 = vld [vmem:[#allocation5 + $0x8f8] sm:$0xff] }
 0x250   :  { %4390 = vmatprep.subr.bf16.mxu0 %v5777_v56  ;;  %v5264_v56 = vcombine.high %v456_v50, %v460_v51  ;;  %v516_v41 = vld [vmem:[#allocation5 + $0xa78] sm:$0xff] }
 0x251   :  { %3488 = vmatpush1.bf16.msra.mxu1 %v5191_v1  ;;  %v5263_v1 = vcombine.low %v456_v50, %v460_v51  ;;  %v520_v59 = vld [vmem:[#allocation5 + $0xa98] sm:$0xff] }
 0x252   :  { %3489 = vmatprep.subr.bf16.mxu1 %v5200_v3  ;;  %v5272_v3 = vcombine.high %v464_v62, %v468_v63  ;;  %v524_v45 = vld [vmem:[#allocation5 + $0xab8] sm:$0xff] }
 0x253   :  { %4391 = vmatpush1.bf16.msra.mxu0 %v5775_v2  ;;  %v5802_v2 = vld [vmem:[#allocation8 + $0xa0] ss:$8 sps:$4 sm:$0xff]   ;;  %v532_v50 = vld [vmem:[#allocation5 + $0xaf8] sm:$0xff]  ;;  %v5327_v51 = vcombine.low %v520_v59, %v524_v45 }
 0x254   :  { %4392 = vmatprep.subr.bf16.mxu0 %v5780_v61  ;;  %v472_v61 = vld [vmem:[#allocation5 + $0x918] sm:$0xff] }
 0x255   :  { %3490 = vmatpush1.bf16.msra.mxu1 %v5199_v7  ;;  %v5280_v7 = vcombine.high %v472_v61, %v476_v5  ;;  %v5279_v13 = vcombine.low %v472_v61, %v476_v5  ;;  %v548_v61 = vld [vmem:[#allocation5 + $0xb78] sm:$0xff] }
 0x256   :  { %3491 = vmatprep.subr.bf16.mxu1 %v5208_v11  ;;  %v480_v11 = vld [vmem:[#allocation5 + $0x958] sm:$0xff] }
 0x257   :  { %4393 = vmatpush1.bf16.msra.mxu0 %v5778_v10  ;;  %v5810_v10 = vld [vmem:[#allocation8 + $0xc4] ss:$8 sps:$4 sm:$0xff]  }
 0x258   :  { %4394 = vmatprep.subr.bf16.mxu0 %v5783_v12  ;;  %v484_v12 = vld [vmem:[#allocation5 + $0x978] sm:$0xff] }
 0x259   :  { %3492 = vmatpush1.bf16.msra.mxu1 %v5207_v15  ;;  %v5288_v15 = vcombine.high %v480_v11, %v484_v12  ;;  %v5287_v22 = vcombine.low %v480_v11, %v484_v12  ;;  %v556_v11 = vld [vmem:[#allocation5 + $0xbb8] sm:$0xff] }
 0x25a   :  { %3493 = vmatprep.subr.bf16.mxu1 %v5216_v18  ;;  %v488_v18 = vld [vmem:[#allocation5 + $0x998] sm:$0xff] }
 0x25b   :  { %4395 = vmatpush1.bf16.msra.mxu0 %v5781_v17  ;;  %v5813_v17 = vld [vmem:[#allocation8 + $0xd4] ss:$8 sps:$4 sm:$0xff]  }
 0x25c   :  { %4396 = vmatprep.subr.bf16.mxu0 %v5786_v20  ;;  %v492_v20 = vld [vmem:[#allocation5 + $0x9b8] sm:$0xff] }
 0x25d   :  { %3494 = vmatpush1.bf16.msra.mxu1 %v5215_v24  ;;  %v5296_v24 = vcombine.high %v488_v18, %v492_v20  ;;  %v5295_v27 = vcombine.low %v488_v18, %v492_v20  ;;  %v564_v18 = vld [vmem:[#allocation5 + $0xbf8] sm:$0xff] }
 0x25e   :  { %3495 = vmatprep.subr.bf16.mxu1 %v5224_v26  ;;  %v496_v26 = vld [vmem:[#allocation5 + $0x9d8] sm:$0xff] }
 0x25f   :  { %4397 = vmatpush1.bf16.msra.mxu0 %v5784_v25  ;;  %v5816_v25 = vld [vmem:[#allocation8 + $0xe4] ss:$8 sps:$4 sm:$0xff]  }
 0x260   :  { %4398 = vmatprep.subr.bf16.mxu0 %v5789_v53  ;;  %v500_v53 = vld [vmem:[#allocation5 + $0x9f8] sm:$0xff] }
 0x261   :  { %3496 = vmatpush1.bf16.msra.mxu1 %v5223_v29  ;;  %v5304_v29 = vcombine.high %v496_v26, %v500_v53  ;;  %v5303_v34 = vcombine.low %v496_v26, %v500_v53  ;;  %v572_v26 = vld [vmem:[#allocation5 + $0xc38] sm:$0xff] }
 0x262   :  { %3497 = vmatprep.subr.bf16.mxu1 %v5232_v31  ;;  %v504_v31 = vld [vmem:[#allocation5 + $0xa18] sm:$0xff] }
 0x263   :  { %4399 = vmatpush1.bf16.msra.mxu0 %v5787_v30  ;;  %v5819_v30 = vld [vmem:[#allocation8 + $0xf4] ss:$8 sps:$4 sm:$0xff]  }
 0x264   :  { %4400 = vmatprep.subr.bf16.mxu0 %v5792_v32  ;;  %v508_v32 = vld [vmem:[#allocation5 + $0xa38] sm:$0xff] }
 0x265   :  { %3498 = vmatpush1.bf16.msra.mxu1 %v5231_v36  ;;  %v5312_v36 = vcombine.high %v504_v31, %v508_v32  ;;  %v5311_v52 = vcombine.low %v504_v31, %v508_v32  ;;  %v580_v31 = vld [vmem:[#allocation5 + $0xc78] sm:$0xff] }
 0x266   :  { %3499 = vmatprep.subr.bf16.mxu1 %v5240_v39  ;;  %v5822_v39 = vld [vmem:[#allocation8 + $0x104] ss:$8 sps:$4 sm:$0xff]  }
 0x267   :  { %4401 = vmatpush1.bf16.msra.mxu0 %v5790_v37  ;;  %v3592_v37 = vmax.f32 %v6574_v38, 0.0  ;;  %v5823_v38 = vld [vmem:[#allocation8 + $0x110] ss:$8 sps:$4 sm:$0xff]  }
 0x268   :  { %4402 = vmatprep.subr.bf16.mxu0 %v5795_v40  ;;  %v512_v40 = vld [vmem:[#allocation5 + $0xa58] sm:$0xff] }
 0x269   :  { %3500 = vmatpush1.bf16.msra.mxu1 %v5239_v42  ;;  %v5820_v42 = vld [vmem:[#allocation8 + $0x100] ss:$8 sps:$4 sm:$0xff]  }
 0x26a   :  { %3510 = vmatprep.subr.bf16.mxu1 %v5248_v43  ;;  %v3600_v43 = vpack.c.bf16 %v3592_v37, %v3592_v37  ;;  %v584_v37 = vld [vmem:[#allocation5 + $0xc98] sm:$0xff] }
 0x26b   :  { %4403 = vmatpush1.bf16.msra.mxu0 %v5793_v19  ;;  %v5320_v19 = vcombine.high %v512_v40, %v516_v41 }
 0x26c   :  { %4404 = vmatprep.subr.bf16.mxu0 %v5798_v44  ;;  %3502 = vmatmul.mubr.bf16.vlgmr.msra.gmra.mrb[8].mxu1 %v6520_v21  ;;  %v5807_v21 = vld [vmem:[#allocation8 + $0xb4] ss:$8 sps:$4 sm:$0xff]  }
 0x26d   :  { %3511 = vmatpush1.bf16.msra.mxu1 %v5247_v58  ;;  %3542 = vmatprep.mubr.bf16.mxu1 %v6524_v28  ;;  %v5271_v28 = vcombine.low %v464_v62, %v468_v63  ;;  %v5825_v44 = vld [vmem:[#allocation8 + $0x114] ss:$8 sps:$4 sm:$0xff]   ;;  %v5319_v58 = vcombine.low %v512_v40, %v516_v41  ;;  %v5847_v41 = vld [vmem:[#allocation8 + $0x190] ss:$8 sps:$4 sm:$0xff]  }
 0x26e   :  { %3512 = vmatprep.subr.bf16.mxu1 %v5256_v47  ;;  %v5828_v47 = vld [vmem:[#allocation8 + $0x124] ss:$8 sps:$4 sm:$0xff]   ;;  %v540_v62 = vld [vmem:[#allocation5 + $0xb38] sm:$0xff] }
 0x26f   :  { %4405 = vmatpush1.bf16.msra.mxu0 %v5796_v46  ;;  %v5328_v46 = vcombine.high %v520_v59, %v524_v45  ;;  %v5850_v59 = vld [vmem:[#allocation8 + $0x1a0] ss:$8 sps:$4 sm:$0xff]  }
 0x270   :  { %4406 = vmatprep.subr.bf16.mxu0 %v5801_v49  ;;  %v528_v49 = vld [vmem:[#allocation5 + $0xad8] sm:$0xff] }
 0x271   :  { %3513 = vmatpush1.bf16.msra.mxu1 %v5255_v16  ;;  %v5826_v16 = vld [vmem:[#allocation8 + $0x120] ss:$8 sps:$4 sm:$0xff]   ;;  %v5335_v63 = vcombine.low %v528_v49, %v532_v50 }
 0x272   :  { %3514 = vmatprep.subr.bf16.mxu1 %v5264_v56  ;;  %v5831_v56 = vld [vmem:[#allocation8 + $0x134] ss:$8 sps:$4 sm:$0xff]  }
 0x273   :  { %4407 = vmatpush1.bf16.msra.mxu0 %v5799_v55  ;;  %v5336_v55 = vcombine.high %v528_v49, %v532_v50  ;;  %v5858_v49 = vld [vmem:[#allocation8 + $0x1c4] ss:$8 sps:$4 sm:$0xff]   ;;  %v608_v50 = vld [vmem:[#allocation5 + $0xd58] sm:$0xff] }
 0x274   :  { %4408 = vmatprep.subr.bf16.mxu0 %v5804_v60  ;;  %v536_v60 = vld [vmem:[#allocation5 + $0xb18] sm:$0xff] }
 0x275   :  { %3515 = vmatpush1.bf16.msra.mxu1 %v5263_v1  ;;  %v5829_v1 = vld [vmem:[#allocation8 + $0x130] ss:$8 sps:$4 sm:$0xff]   ;;  %v5343_v5 = vcombine.low %v536_v60, %v540_v62 }
 0x276   :  { %3516 = vmatprep.subr.bf16.mxu1 %v5272_v3  ;;  %v5834_v3 = vld [vmem:[#allocation8 + $0x144] ss:$8 sps:$4 sm:$0xff]  }
 0x277   :  { %4409 = vmatpush1.bf16.msra.mxu0 %v5802_v2  ;;  %v5344_v2 = vcombine.high %v536_v60, %v540_v62  ;;  %v641_v62 = vsub.s32 2, %v6560_v57 }
 0x278   :  { %4410 = vmatprep.subr.bf16.mxu0 %v5807_v21  ;;  %v544_v21 = vld [vmem:[#allocation5 + $0xb58] sm:$0xff] }
 0x279   :  { %3517 = vmatpush1.bf16.msra.mxu1 %v5271_v28  ;;  %v5832_v28 = vld [vmem:[#allocation8 + $0x140] ss:$8 sps:$4 sm:$0xff]   ;;  %v5351_v12 = vcombine.low %v544_v21, %v548_v61 }
 0x27a   :  { %3518 = vmatprep.subr.bf16.mxu1 %v5280_v7  ;;  %v5837_v7 = vld [vmem:[#allocation8 + $0x154] ss:$8 sps:$4 sm:$0xff]  }
 0x27b   :  { %4411 = vmatpush1.bf16.msra.mxu0 %v5805_v6  ;;  %v5352_v6 = vcombine.high %v544_v21, %v548_v61  ;;  %v5859_v61 = vld [vmem:[#allocation8 + $0x1d0] ss:$8 sps:$4 sm:$0xff]  }
 0x27c   :  { %4412 = vmatprep.subr.bf16.mxu0 %v5810_v10  ;;  %v552_v10 = vld [vmem:[#allocation5 + $0xb98] sm:$0xff] }
 0x27d   :  { %3519 = vmatpush1.bf16.msra.mxu1 %v5279_v13  ;;  %v5835_v13 = vld [vmem:[#allocation8 + $0x150] ss:$8 sps:$4 sm:$0xff]   ;;  %v5359_v20 = vcombine.low %v552_v10, %v556_v11 }
 0x27e   :  { %3520 = vmatprep.subr.bf16.mxu1 %v5288_v15  ;;  %v5840_v15 = vld [vmem:[#allocation8 + $0x164] ss:$8 sps:$4 sm:$0xff]  }
 0x27f   :  { %4413 = vmatpush1.bf16.msra.mxu0 %v5808_v14  ;;  %v5360_v14 = vcombine.high %v552_v10, %v556_v11  ;;  %v624_v10 = vld [vmem:[#allocation5 + $0xdd8] sm:$0xff] }
 0x280   :  { %4414 = vmatprep.subr.bf16.mxu0 %v5813_v17  ;;  %v560_v17 = vld [vmem:[#allocation5 + $0xbd8] sm:$0xff] }
 0x281   :  { %3521 = vmatpush1.bf16.msra.mxu1 %v5287_v22  ;;  %v5838_v22 = vld [vmem:[#allocation8 + $0x160] ss:$8 sps:$4 sm:$0xff]   ;;  %v5367_v53 = vcombine.low %v560_v17, %v564_v18  ;;  %v628_v11 = vld [vmem:[#allocation5 + $0xdf8] sm:$0xff] }
 0x282   :  { %3522 = vmatprep.subr.bf16.mxu1 %v5296_v24  ;;  %v5843_v24 = vld [vmem:[#allocation8 + $0x174] ss:$8 sps:$4 sm:$0xff]  }
 0x283   :  { %4415 = vmatpush1.bf16.msra.mxu0 %v5811_v23  ;;  %v5368_v23 = vcombine.high %v560_v17, %v564_v18  ;;  %v5862_v18 = vld [vmem:[#allocation8 + $0x1e0] ss:$8 sps:$4 sm:$0xff]  }
 0x284   :  { %4416 = vmatprep.subr.bf16.mxu0 %v5816_v25  ;;  %v568_v25 = vld [vmem:[#allocation5 + $0xc18] sm:$0xff] }
 0x285   :  { %3523 = vmatpush1.bf16.msra.mxu1 %v5295_v27  ;;  %v5841_v27 = vld [vmem:[#allocation8 + $0x170] ss:$8 sps:$4 sm:$0xff]   ;;  %v5375_v32 = vcombine.low %v568_v25, %v572_v26 }
 0x286   :  { %3524 = vmatprep.subr.bf16.mxu1 %v5304_v29  ;;  %v5846_v29 = vld [vmem:[#allocation8 + $0x184] ss:$8 sps:$4 sm:$0xff]  }
 0x287   :  { %4417 = vmatpush1.bf16.msra.mxu0 %v5814_v54  ;;  %v5376_v54 = vcombine.high %v568_v25, %v572_v26  ;;  %v5431_v26 = vcombine.low %v624_v10, %v628_v11 }
 0x288   :  { %4418 = vmatprep.subr.bf16.mxu0 %v5819_v30  ;;  %v576_v30 = vld [vmem:[#allocation5 + $0xc58] sm:$0xff] }
 0x289   :  { %3525 = vmatpush1.bf16.msra.mxu1 %v5303_v34  ;;  %v5844_v34 = vld [vmem:[#allocation8 + $0x180] ss:$8 sps:$4 sm:$0xff]   ;;  %v5383_v40 = vcombine.low %v576_v30, %v580_v31 }
 0x28a   :  { %3526 = vmatprep.subr.bf16.mxu1 %v5312_v36  ;;  %v5849_v36 = vld [vmem:[#allocation8 + $0x194] ss:$8 sps:$4 sm:$0xff]  }
 0x28b   :  { %4419 = vmatpush1.bf16.msra.mxu0 %v5817_v35  ;;  %v5384_v35 = vcombine.high %v576_v30, %v580_v31  ;;  %v5873_v31 = vld [vmem:[#allocation8 + $0x214] ss:$8 sps:$4 sm:$0xff]  }
 0x28c   :  { %4429 = vmatprep.subr.bf16.mxu0 %v5822_v39  ;;  %v588_v39 = vld [vmem:[#allocation5 + $0xcb8] sm:$0xff] }
 0x28d   :  { %3527 = vmatpush1.bf16.msra.mxu1 %v5311_v52  ;;  %v5392_v52 = vcombine.high %v584_v37, %v588_v39 }
 0x28e   :  { %4421 = vmatmul.mubr.bf16.vlgmr.msra.gmra.mrb[8].mxu0 %v3600_v43  ;;  %3528 = vmatprep.subr.bf16.mxu1 %v5320_v19  ;;  %v592_v19 = vld [vmem:[#allocation5 + $0xcd8] sm:$0xff] }
 0x28f   :  { %4430 = vmatpush1.bf16.msra.mxu0 %v5820_v42  ;;  %v5852_v42 = vld [vmem:[#allocation8 + $0x1a4] ss:$8 sps:$4 sm:$0xff]   ;;  %v596_v43 = vld [vmem:[#allocation5 + $0xcf8] sm:$0xff] }
 0x290   :  { %4431 = vmatprep.subr.bf16.mxu0 %v5825_v44  ;;  %v5391_v44 = vcombine.low %v584_v37, %v588_v39  ;;  %v5400_v45 = vcombine.high %v592_v19, %v596_v43  ;;  %v5877_v37 = vld [vmem:[#allocation8 + $0x230] ss:$8 sps:$4 sm:$0xff]   ;;  %v5882_v39 = vld [vmem:[#allocation8 + $0x244] ss:$8 sps:$4 sm:$0xff]  }
 0x291   :  { %3529 = vmatpush1.bf16.msra.mxu1 %v5319_v58  ;;  %v600_v58 = vld [vmem:[#allocation5 + $0xd18] sm:$0xff] }
 0x292   :  { %3530 = vmatprep.subr.bf16.mxu1 %v5328_v46  ;;  %v5853_v46 = vld [vmem:[#allocation8 + $0x1b0] ss:$8 sps:$4 sm:$0xff]  }
 0x293   :  { %4432 = vmatpush1.bf16.msra.mxu0 %v5823_v38  ;;  %v604_v38 = vld [vmem:[#allocation5 + $0xd38] sm:$0xff] }
 0x294   :  { %4433 = vmatprep.subr.bf16.mxu0 %v5828_v47  ;;  %v5408_v47 = vcombine.high %v600_v58, %v604_v38 }
 0x295   :  { %3531 = vmatpush1.bf16.msra.mxu1 %v5327_v51  ;;  %v612_v51 = vld [vmem:[#allocation5 + $0xd78] sm:$0xff] }
 0x296   :  { %3532 = vmatprep.subr.bf16.mxu1 %v5336_v55  ;;  %v645_v55 = vsub.s32 3, %v6560_v57  ;;  %v5416_v60 = vcombine.high %v608_v50, %v612_v51  ;;  %v5415_v21 = vcombine.low %v608_v50, %v612_v51  ;;  %v5909_v50 = vld [vmem:[#allocation8 + $0x2d4] ss:$8 sps:$4 sm:$0xff]   ;;  %v5907_v51 = vld [vmem:[#allocation8 + $0x2d0] ss:$8 sps:$4 sm:$0xff]  }
 0x297   :  { %4434 = vmatpush1.bf16.msra.mxu0 %v5826_v16  ;;  %v5407_v16 = vcombine.low %v600_v58, %v604_v38  ;;  %v5900_v58 = vld [vmem:[#allocation8 + $0x2a4] ss:$8 sps:$4 sm:$0xff]   ;;  %v5898_v38 = vld [vmem:[#allocation8 + $0x2a0] ss:$8 sps:$4 sm:$0xff]  }
 0x298   :  { %4435 = vmatprep.subr.bf16.mxu0 %v5831_v56  ;;  %v5856_v56 = vld [vmem:[#allocation8 + $0x1c0] ss:$8 sps:$4 sm:$0xff]  }
 0x299   :  { %3533 = vmatpush1.bf16.msra.mxu1 %v5335_v63  ;;  %v5861_v63 = vld [vmem:[#allocation8 + $0x1d4] ss:$8 sps:$4 sm:$0xff]  }
 0x29a   :  { %3534 = vmatprep.subr.bf16.mxu1 %v5344_v2  ;;  %v620_v2 = vld [vmem:[#allocation5 + $0xdb8] sm:$0xff] }
 0x29b   :  { %4436 = vmatpush1.bf16.msra.mxu0 %v5829_v1  ;;  %v616_v1 = vld [vmem:[#allocation5 + $0xd98] sm:$0xff] }
 0x29c   :  { %4437 = vmatprep.subr.bf16.mxu0 %v5834_v3  ;;  %v646_v3 = vrot.slane %v6563_v8, %v645_v55  ;;  %v5910_v55 = vld [vmem:[#allocation8 + $0x2e0] ss:$8 sps:$4 sm:$0xff]  }
 0x29d   :  { %3535 = vmatpush1.bf16.msra.mxu1 %v5343_v5  ;;  %v5424_v5 = vcombine.high %v616_v1, %v620_v2 }
 0x29e   :  { %3536 = vmatprep.subr.bf16.mxu1 %v5352_v6 }
 0x29f   :  { %4438 = vmatpush1.bf16.msra.mxu0 %v5832_v28  ;;  %v642_v28 = vrot.slane %v6563_v8, %v641_v62  ;;  %v5918_v62 = vld [vmem:[#allocation8 + $0x304] ss:$8 sps:$4 sm:$0xff]  }
 0x2a0   :  { %4439 = vmatprep.subr.bf16.mxu0 %v5837_v7  ;;  %v5864_v7 = vld [vmem:[#allocation8 + $0x1e4] ss:$8 sps:$4 sm:$0xff]  }
 0x2a1   :  { %3537 = vmatpush1.bf16.msra.mxu1 %v5351_v12 }
 0x2a2   :  { %3538 = vmatprep.subr.bf16.mxu1 %v5360_v14 }
 0x2a3   :  { %4440 = vmatpush1.bf16.msra.mxu0 %v5835_v13 }
 0x2a4   :  { %4441 = vmatprep.subr.bf16.mxu0 %v5840_v15  ;;  %v5423_v15 = vcombine.low %v616_v1, %v620_v2  ;;  %v653_v1 = vsub.s32 5, %v6560_v57 }
 0x2a5   :  { %3539 = vmatpush1.bf16.msra.mxu1 %v5359_v20  ;;  %v5432_v20 = vcombine.high %v624_v10, %v628_v11 }
 0x2a6   :  { %3540 = vmatprep.subr.bf16.mxu1 %v5368_v23 }
 0x2a7   :  { %4442 = vmatpush1.bf16.msra.mxu0 %v5838_v22 }
 0x2a8   :  { %4443 = vmatprep.subr.bf16.mxu0 %v5843_v24  ;;  %v5867_v24 = vld [vmem:[#allocation8 + $0x1f4] ss:$8 sps:$4 sm:$0xff]  }
 0x2a9   :  { %3541 = vmatpush1.bf16.msra.mxu1 %v5367_v53  ;;  %v5865_v53 = vld [vmem:[#allocation8 + $0x1f0] ss:$8 sps:$4 sm:$0xff]  }
 0x2aa   :  { %3551 = vmatprep.subr.bf16.mxu1 %v5376_v54  ;;  %v5870_v54 = vld [vmem:[#allocation8 + $0x204] ss:$8 sps:$4 sm:$0xff]  }
 0x2ab   :  { %4444 = vmatpush1.bf16.msra.mxu0 %v5841_v27 }
 0x2ac   :  { %4445 = vmatprep.subr.bf16.mxu0 %v5846_v29  ;;  %3543 = vmatmul.mubr.bf16.vlgmr.msra.gmra.mrb[8].mxu1 %v6532_v33  ;;  %v5855_v33 = vld [vmem:[#allocation8 + $0x1b4] ss:$8 sps:$4 sm:$0xff]   ;;  %v5868_v29 = vld [vmem:[#allocation8 + $0x200] ss:$8 sps:$4 sm:$0xff]  }
 0x2ad   :  { %3552 = vmatpush1.bf16.msra.mxu1 %v5375_v32  ;;  %3583 = vmatprep.mubr.bf16.mxu1 %v6293_v48  ;;  %v5399_v48 = vcombine.low %v592_v19, %v596_v43  ;;  %v5871_v32 = vld [vmem:[#allocation8 + $0x210] ss:$8 sps:$4 sm:$0xff]   ;;  %v5891_v19 = vld [vmem:[#allocation8 + $0x274] ss:$8 sps:$4 sm:$0xff]  }
 0x2ae   :  { %3553 = vmatprep.subr.bf16.mxu1 %v5384_v35  ;;  %v5874_v35 = vld [vmem:[#allocation8 + $0x220] ss:$8 sps:$4 sm:$0xff]   ;;  %v5889_v43 = vld [vmem:[#allocation8 + $0x270] ss:$8 sps:$4 sm:$0xff]  }
 0x2af   :  { %4446 = vmatpush1.bf16.msra.mxu0 %v5844_v34  ;;  %v5876_v34 = vld [vmem:[#allocation8 + $0x224] ss:$8 sps:$4 sm:$0xff]  }
 0x2b0   :  { %4447 = vmatprep.subr.bf16.mxu0 %v5849_v36  ;;  %v5879_v36 = vld [vmem:[#allocation8 + $0x234] ss:$8 sps:$4 sm:$0xff]  }
 0x2b1   :  { %3554 = vmatpush1.bf16.msra.mxu1 %v5383_v40  ;;  %v5880_v40 = vld [vmem:[#allocation8 + $0x240] ss:$8 sps:$4 sm:$0xff]  }
 0x2b2   :  { %3555 = vmatprep.subr.bf16.mxu1 %v5392_v52  ;;  %v5883_v52 = vld [vmem:[#allocation8 + $0x250] ss:$8 sps:$4 sm:$0xff]  }
 0x2b3   :  { %4448 = vmatpush1.bf16.msra.mxu0 %v5847_v41  ;;  %v5885_v41 = vld [vmem:[#allocation8 + $0x254] ss:$8 sps:$4 sm:$0xff]  }
 0x2b4   :  { %4449 = vmatprep.subr.bf16.mxu0 %v5852_v42  ;;  %v5886_v42 = vld [vmem:[#allocation8 + $0x260] ss:$8 sps:$4 sm:$0xff]  }
 0x2b5   :  { %3556 = vmatpush1.bf16.msra.mxu1 %v5391_v44  ;;  %v5894_v44 = vld [vmem:[#allocation8 + $0x284] ss:$8 sps:$4 sm:$0xff]  }
 0x2b6   :  { %3557 = vmatprep.subr.bf16.mxu1 %v5400_v45  ;;  %v5897_v45 = vld [vmem:[#allocation8 + $0x294] ss:$8 sps:$4 sm:$0xff]  }
 0x2b7   :  { %4450 = vmatpush1.bf16.msra.mxu0 %v5850_v59  ;;  %v5892_v59 = vld [vmem:[#allocation8 + $0x280] ss:$8 sps:$4 sm:$0xff]  }
 0x2b8   :  { %4451 = vmatprep.subr.bf16.mxu0 %v5855_v33  ;;  %v5895_v33 = vld [vmem:[#allocation8 + $0x290] ss:$8 sps:$4 sm:$0xff]  }
 0x2b9   :  { %3558 = vmatpush1.bf16.msra.mxu1 %v5399_v48  ;;  %v5903_v48 = vld [vmem:[#allocation8 + $0x2b4] ss:$8 sps:$4 sm:$0xff]  }
 0x2ba   :  { %3559 = vmatprep.subr.bf16.mxu1 %v5408_v47  ;;  %v5906_v47 = vld [vmem:[#allocation8 + $0x2c4] ss:$8 sps:$4 sm:$0xff]  }
 0x2bb   :  { %4452 = vmatpush1.bf16.msra.mxu0 %v5853_v46  ;;  %v5901_v46 = vld [vmem:[#allocation8 + $0x2b0] ss:$8 sps:$4 sm:$0xff]  }
 0x2bc   :  { %4453 = vmatprep.subr.bf16.mxu0 %v5858_v49  ;;  %v5904_v49 = vld [vmem:[#allocation8 + $0x2c0] ss:$8 sps:$4 sm:$0xff]  }
 0x2bd   :  { %3560 = vmatpush1.bf16.msra.mxu1 %v5407_v16  ;;  %v5912_v16 = vld [vmem:[#allocation8 + $0x2e4] ss:$8 sps:$4 sm:$0xff]  }
 0x2be   :  { %3561 = vmatprep.subr.bf16.mxu1 %v5416_v60  ;;  %v5913_v60 = vld [vmem:[#allocation8 + $0x2f0] ss:$8 sps:$4 sm:$0xff]  }
 0x2bf   :  { %4454 = vmatpush1.bf16.msra.mxu0 %v5856_v56  ;;  %v3257_v6 = vpop.f32.mrb[4].mxu1  ;;  %v5915_v56 = vld [vmem:[#allocation8 + $0x2f4] ss:$8 sps:$4 sm:$0xff]  }
 0x2c0   :  { %4455 = vmatprep.subr.bf16.mxu0 %v5861_v63  ;;  %v3259_v12 = vpop.f32.mrb[5].mxu1  ;;  %v5680_v22 = vadd.f32 %v3257_v6, %v642_v28  ;;  %v649_v63 = vsub.s32 4, %v6560_v57 }
 0x2c1   :  { %v5681_v13 = vadd.f32 %v3259_v12, %v646_v3  ;;  %v3261_v14 = vpop.f32.mrb[6].mxu1  ;;  %3562 = vmatpush1.bf16.msra.mxu1 %v5415_v21  ;;  %v654_v3 = vrot.slane %v6563_v8, %v653_v1 }
 0x2c2   :  { %v3262_v17 = vpop.f32.mrb[7].mxu1  ;;  %3563 = vmatprep.subr.bf16.mxu1 %v5424_v5  ;;  %v3594_v27 = vmax.f32 %v5680_v22, 0.0  ;;  %v650_v2 = vrot.slane %v6563_v8, %v649_v63  ;;  %v5919_v22 = vld [vmem:[#allocation8 + $0x310] ss:$8 sps:$4 sm:$0xff]   ;;  %v5924_v8 = vld [vmem:[#allocation8 + $0x324] ss:$8 sps:$4 sm:$0xff]  }
 0x2c3   :  { %4456 = vmatpush1.bf16.msra.mxu0 %v5859_v61  ;;  %v3595_v23 = vmax.f32 %v5681_v13, 0.0  ;;  %v5916_v13 = vld [vmem:[#allocation8 + $0x300] ss:$8 sps:$4 sm:$0xff]  }
 0x2c4   :  { %4457 = vmatprep.subr.bf16.mxu0 %v5864_v7  ;;  %v3602_v30 = vpack.c.bf16 %v3594_v27, %v3594_v27  ;;  %v5964_v17 = vld [vmem:[#allocation11 + $0x40] sm:$0xff]   ;;  %v5970_v27 = vld [vmem:[#allocation11 + $0x58] sm:$0xff]  }
 0x2c5   :  { %v3603_v25 = vpack.c.bf16 %v3595_v23, %v3595_v23  ;;  %3564 = vmatpush1.bf16.msra.mxu1 %v5423_v15  ;;  %v5921_v15 = vld [vmem:[#allocation8 + $0x314] ss:$8 sps:$4 sm:$0xff]   ;;  %v5967_v23 = vld [vmem:[#allocation11 + $0x8] sm:$0xff]  }
 0x2c6   :  { %3565 = vmatprep.subr.bf16.mxu1 %v5432_v20  ;;  %v5966_v20 = vld [vmem:[#allocation11 + $0x48] sm:$0xff]  }
 0x2c7   :  { %4458 = vmatpush1.bf16.msra.mxu0 %v5862_v18  ;;  %4461 = vmatprep.mubr.bf16.mxu0 %v3603_v25  ;;  %v5965_v18 = vld [vmem:[#allocation11] sm:$0xff]  }
 0x2c8   :  { %4459 = vmatprep.subr.bf16.mxu0 %v5867_v24  ;;  %v5968_v24 = vld [vmem:[#allocation11 + $0x50] sm:$0xff]   ;;  %v5922_v25 = vld [vmem:[#allocation8 + $0x320] ss:$8 sps:$4 sm:$0xff]  }
 0x2c9   :  { %3566 = vmatpush1.bf16.msra.mxu1 %v5431_v26  ;;  %v5927_v26 = vld [vmem:[#allocation8 + $0x334] ss:$8 sps:$4 sm:$0xff]  }
 0x2ca   :  { %5596 = vmatprep.subr.bf16.mxu1 %v5964_v17  ;;  %v3736_v17 = vld [vmem:[#allocation10] sm:$0x3] }
 0x2cb   :  { %4460 = vmatpush1.bf16.msra.mxu0 %v5865_v53  ;;  %v5969_v53 = vld [vmem:[#allocation11 + $0x10] sm:$0xff]  }
 0x2cc   :  { %4470 = vmatprep.subr.bf16.mxu0 %v5870_v54  ;;  %3584 = vmatmul.mubr.bf16.vlgmr.msra.gmra.mrb[8].mxu1 %v6576_v0  ;;  %v5888_v0 = vld [vmem:[#allocation8 + $0x264] ss:$8 sps:$4 sm:$0xff]   ;;  %v5925_v54 = vld [vmem:[#allocation8 + $0x330] ss:$8 sps:$4 sm:$0xff]  }
 0x2cd   :  { %5597 = vmatpush3.bf16.msra.mxu1 %v5965_v18  ;;  %v3741_v18 = vrot.slane %v3736_v17, %v633_v4  ;;  %v5983_v4 = vld [vmem:[#allocation14 + $0x18] sm:$0xff]  }
 0x2ce   :  { %4462 = vmatmul.mubr.bf16.vlgmr.msra.gmra.mrb[8].mxu0 %v3602_v30  ;;  %5598 = vmatprep.subr.bf16.mxu1 %v5966_v20  ;;  %v5971_v30 = vld [vmem:[#allocation11 + $0x18] sm:$0xff]   ;;  %v3745_v20 = vrot.slane %v3736_v17, %v637_v9  ;;  %v5984_v9 = vld [vmem:[#allocation14 + $0x20] sm:$0xff]  }
 0x2cf   :  { %4471 = vmatpush1.bf16.msra.mxu0 %v5868_v29  ;;  %v5930_v29 = vld [vmem:[#allocation8 + $0x344] ss:$8 sps:$4 sm:$0xff]  }
 0x2d0   :  { %4472 = vmatprep.subr.bf16.mxu0 %v5873_v31  ;;  %v5972_v31 = vld [vmem:[#allocation11 + $0x60] sm:$0xff]  }
 0x2d1   :  { %5599 = vmatpush3.bf16.msra.mxu1 %v5967_v23 }
 0x2d2   :  { %5600 = vmatprep.subr.bf16.mxu1 %v5968_v24 }
 0x2d3   :  { %4473 = vmatpush1.bf16.msra.mxu0 %v5871_v32  ;;  %v5928_v32 = vld [vmem:[#allocation8 + $0x340] ss:$8 sps:$4 sm:$0xff]  }
 0x2d4   :  { %4474 = vmatprep.subr.bf16.mxu0 %v5876_v34  ;;  %v5933_v34 = vld [vmem:[#allocation8 + $0x354] ss:$8 sps:$4 sm:$0xff]  }
 0x2d5   :  { %5601 = vmatpush3.bf16.msra.mxu1 %v5969_v53 }
 0x2d6   :  { %5602 = vmatprep.subr.bf16.mxu1 %v5970_v27 }
 0x2d7   :  { %4475 = vmatpush1.bf16.msra.mxu0 %v5874_v35  ;;  %v5973_v35 = vld [vmem:[#allocation11 + $0x20] sm:$0xff]  }
 0x2d8   :  { %4476 = vmatprep.subr.bf16.mxu0 %v5879_v36  ;;  %v5974_v36 = vld [vmem:[#allocation11 + $0x68] sm:$0xff]  }
 0x2d9   :  { %5603 = vmatpush3.bf16.msra.mxu1 %v5971_v30 }
 0x2da   :  { %5604 = vmatprep.subr.bf16.mxu1 %v5972_v31  ;;  %v5981_v31 = vld [vmem:[#allocation14 + $0x8] sm:$0xff]  }
 0x2db   :  { %4477 = vmatpush1.bf16.msra.mxu0 %v5877_v37  ;;  %v5931_v37 = vld [vmem:[#allocation8 + $0x350] ss:$8 sps:$4 sm:$0xff]  }
 0x2dc   :  { %4478 = vmatprep.subr.bf16.mxu0 %v5882_v39  ;;  %v5936_v39 = vld [vmem:[#allocation8 + $0x364] ss:$8 sps:$4 sm:$0xff]  }
 0x2dd   :  { %5605 = vmatpush3.bf16.msra.mxu1 %v5973_v35  ;;  %v5987_v35 = vld [vmem:[#allocation14 + $0x38] sm:$0xff]  }
 0x2de   :  { %5606 = vmatprep.subr.bf16.mxu1 %v5974_v36 }
 0x2df   :  { %4479 = vmatpush1.bf16.msra.mxu0 %v5880_v40  ;;  %v5975_v40 = vld [vmem:[#allocation11 + $0x28] sm:$0xff]  }
 0x2e0   :  { %4480 = vmatprep.subr.bf16.mxu0 %v5885_v41  ;;  %v5934_v41 = vld [vmem:[#allocation8 + $0x360] ss:$8 sps:$4 sm:$0xff]  }
 0x2e1   :  { %5607 = vmatpush3.bf16.msra.mxu1 %v5975_v40 }
 0x2e3   :  { %4481 = vmatpush1.bf16.msra.mxu0 %v5883_v52  ;;  %v5939_v52 = vld [vmem:[#allocation8 + $0x374] ss:$8 sps:$4 sm:$0xff]  }
 0x2e4   :  { %4482 = vmatprep.subr.bf16.mxu0 %v5888_v0  ;;  %v5937_v0 = vld [vmem:[#allocation8 + $0x370] ss:$8 sps:$4 sm:$0xff]  }
 0x2e7   :  { %4483 = vmatpush1.bf16.msra.mxu0 %v5886_v42  ;;  %v5942_v42 = vld [vmem:[#allocation8 + $0x384] ss:$8 sps:$4 sm:$0xff]  }
 0x2e8   :  { %4484 = vmatprep.subr.bf16.mxu0 %v5891_v19  ;;  %v5940_v19 = vld [vmem:[#allocation8 + $0x380] ss:$8 sps:$4 sm:$0xff]  }
 0x2eb   :  { %4485 = vmatpush1.bf16.msra.mxu0 %v5889_v43  ;;  %v5945_v43 = vld [vmem:[#allocation8 + $0x394] ss:$8 sps:$4 sm:$0xff]  }
 0x2ec   :  { %4486 = vmatprep.subr.bf16.mxu0 %v5894_v44  ;;  %v5943_v44 = vld [vmem:[#allocation8 + $0x390] ss:$8 sps:$4 sm:$0xff]  }
 0x2ef   :  { %4487 = vmatpush1.bf16.msra.mxu0 %v5892_v59  ;;  %v5948_v59 = vld [vmem:[#allocation8 + $0x3a4] ss:$8 sps:$4 sm:$0xff]  }
 0x2f0   :  { %4488 = vmatprep.subr.bf16.mxu0 %v5897_v45  ;;  %v5946_v45 = vld [vmem:[#allocation8 + $0x3a0] ss:$8 sps:$4 sm:$0xff]  }
 0x2f3   :  { %4489 = vmatpush1.bf16.msra.mxu0 %v5895_v33  ;;  %v5951_v33 = vld [vmem:[#allocation8 + $0x3b4] ss:$8 sps:$4 sm:$0xff]  }
 0x2f4   :  { %4490 = vmatprep.subr.bf16.mxu0 %v5900_v58  ;;  %v5949_v58 = vld [vmem:[#allocation8 + $0x3b0] ss:$8 sps:$4 sm:$0xff]  }
 0x2f7   :  { %4491 = vmatpush1.bf16.msra.mxu0 %v5898_v38  ;;  %v5954_v38 = vld [vmem:[#allocation8 + $0x3c4] ss:$8 sps:$4 sm:$0xff]  }
 0x2f8   :  { %4492 = vmatprep.subr.bf16.mxu0 %v5903_v48  ;;  %v5952_v48 = vld [vmem:[#allocation8 + $0x3c0] ss:$8 sps:$4 sm:$0xff]  }
 0x2fb   :  { %4493 = vmatpush1.bf16.msra.mxu0 %v5901_v46  ;;  %v5957_v46 = vld [vmem:[#allocation8 + $0x3d4] ss:$8 sps:$4 sm:$0xff]  }
 0x2fc   :  { %4494 = vmatprep.subr.bf16.mxu0 %v5906_v47  ;;  %v5955_v47 = vld [vmem:[#allocation8 + $0x3d0] ss:$8 sps:$4 sm:$0xff]  }
 0x2ff   :  { %4495 = vmatpush1.bf16.msra.mxu0 %v5904_v49  ;;  %v5960_v49 = vld [vmem:[#allocation8 + $0x3e4] ss:$8 sps:$4 sm:$0xff]  }
 0x300   :  { %4496 = vmatprep.subr.bf16.mxu0 %v5909_v50  ;;  %v5958_v50 = vld [vmem:[#allocation8 + $0x3e0] ss:$8 sps:$4 sm:$0xff]  }
 0x303   :  { %4497 = vmatpush1.bf16.msra.mxu0 %v5907_v51  ;;  %v5963_v51 = vld [vmem:[#allocation8 + $0x3f4] ss:$8 sps:$4 sm:$0xff]  }
 0x304   :  { %4498 = vmatprep.subr.bf16.mxu0 %v5912_v16  ;;  %v5961_v16 = vld [vmem:[#allocation8 + $0x3f0] ss:$8 sps:$4 sm:$0xff]  }
 0x307   :  { %4499 = vmatpush1.bf16.msra.mxu0 %v5910_v55  ;;  %v657_v55 = vsub.s32 6, %v6560_v57 }
 0x308   :  { %4500 = vmatprep.subr.bf16.mxu0 %v5915_v56  ;;  %v661_v56 = vsub.s32 7, %v6560_v57  ;;  %v5982_v57 = vld [vmem:[#allocation14 + $0x10] sm:$0xff]  }
 0x30b   :  { %4501 = vmatpush1.bf16.msra.mxu0 %v5913_v60  ;;  %v5997_v60 = vld [vmem:[#allocation7] sm:$0xff] }
 0x30c   :  { %4511 = vmatprep.subr.bf16.mxu0 %v5918_v62  ;;  %v658_v62 = vrot.slane %v5997_v60, %v657_v55  ;;  %v662_v63 = vrot.slane %v5997_v60, %v661_v56  ;;  %v5587_v60 = vld [vmem:[#allocation19] ss:$0 sm:$0xff] }
 0x321   :  { %v3421_v21 = vpop.f32.mrb[4].mxu0 }
 0x322   :  { %v5682_v61 = vadd.f32 %v3421_v21, %v650_v2  ;;  %v3423_v5 = vpop.f32.mrb[5].mxu0 }
 0x323   :  { %v5683_v28 = vadd.f32 %v3423_v5, %v654_v3  ;;  %v3425_v6 = vpop.f32.mrb[6].mxu0 }
 0x324   :  { %v3596_v7 = vmax.f32 %v5682_v61, 0.0  ;;  %v3426_v10 = vpop.f32.mrb[7].mxu0 }
 0x325   :  { %v3597_v11 = vmax.f32 %v5683_v28, 0.0 }
 0x326   :  { %v3604_v14 = vpack.c.bf16 %v3596_v7, %v3596_v7 }
 0x327   :  { %v3605_v12 = vpack.c.bf16 %v3597_v11, %v3597_v11  ;;  %v5976_v11 = vld [vmem:[#allocation11 + $0x70] sm:$0xff]  }
 0x328   :  { %5608 = vmatprep.subr.bf16.mxu1 %v5976_v11 }
 0x329   :  { %4502 = vmatprep.mubr.bf16.mxu0 %v3605_v12  ;;  %v5977_v12 = vld [vmem:[#allocation11 + $0x30] sm:$0xff]  }
 0x32a   :  { %4503 = vmatmul.mubr.bf16.vlgmr.msra.gmra.mrb[8].mxu0 %v3604_v14  ;;  %5609 = vmatpush3.bf16.msra.mxu1 %v5977_v12  ;;  %v5979_v14 = vld [vmem:[#allocation11 + $0x38] sm:$0xff]  }
 0x32b   :  { %4512 = vmatpush1.bf16.msra.mxu0 %v5916_v13  ;;  %v5978_v13 = vld [vmem:[#allocation11 + $0x78] sm:$0xff]  }
 0x32c   :  { %4513 = vmatprep.subr.bf16.mxu0 %v5921_v15  ;;  %5610 = vmatprep.subr.bf16.mxu1 %v5978_v13  ;;  %v6294_v15 = vmov 0.0  }
 0x32e   :  { %5611 = vmatpush3.bf16.msra.mxu1 %v5979_v14 }
 0x32f   :  { %4514 = vmatpush1.bf16.msra.mxu0 %v5919_v22  ;;  %5636 = vmatprep.subr.bf16.mxu1 %v6294_v15 }
 0x330   :  { %4515 = vmatprep.subr.bf16.mxu0 %v5924_v8 }
 0x333   :  { %4516 = vmatpush1.bf16.msra.mxu0 %v5922_v25 }
 0x334   :  { %4517 = vmatprep.subr.bf16.mxu0 %v5927_v26 }
 0x337   :  { %4518 = vmatpush1.bf16.msra.mxu0 %v5925_v54 }
 0x338   :  { %4519 = vmatprep.subr.bf16.mxu0 %v5930_v29  ;;  %v5980_v29 = vld [vmem:[#allocation14] sm:$0xff]  }
 0x33b   :  { %4520 = vmatpush1.bf16.msra.mxu0 %v5928_v32  ;;  %v5985_v32 = vld [vmem:[#allocation14 + $0x28] sm:$0xff]  }
 0x33c   :  { %4521 = vmatprep.subr.bf16.mxu0 %v5933_v34  ;;  %v5986_v34 = vld [vmem:[#allocation14 + $0x30] sm:$0xff]  }
 0x33f   :  { %4522 = vmatpush1.bf16.msra.mxu0 %v5931_v37  ;;  %v5561_v37 = vld [vmem:[#allocation13] ss:$0 sm:$0xff] }
 0x340   :  { %4523 = vmatprep.subr.bf16.mxu0 %v5936_v39 }
 0x343   :  { %4524 = vmatpush1.bf16.msra.mxu0 %v5934_v41 }
 0x344   :  { %4525 = vmatprep.subr.bf16.mxu0 %v5939_v52 }
 0x347   :  { %4526 = vmatpush1.bf16.msra.mxu0 %v5937_v0 }
 0x348   :  { %4527 = vmatprep.subr.bf16.mxu0 %v5942_v42 }
 0x34b   :  { %4528 = vmatpush1.bf16.msra.mxu0 %v5940_v19  ;;  %v5988_v19 = vld [vmem:[#allocation17] sm:$0xff]  }
 0x34c   :  { %4529 = vmatprep.subr.bf16.mxu0 %v5945_v43 }
 0x34f   :  { %4530 = vmatpush1.bf16.msra.mxu0 %v5943_v44  ;;  %v5989_v44 = vld [vmem:[#allocation17 + $0x8] sm:$0xff]  }
 0x350   :  { %4531 = vmatprep.subr.bf16.mxu0 %v5948_v59  ;;  %v5990_v59 = vld [vmem:[#allocation17 + $0x10] sm:$0xff]  }
 0x353   :  { %4532 = vmatpush1.bf16.msra.mxu0 %v5946_v45  ;;  %v5991_v45 = vld [vmem:[#allocation17 + $0x18] sm:$0xff]  }
 0x354   :  { %4533 = vmatprep.subr.bf16.mxu0 %v5951_v33  ;;  %v5992_v33 = vld [vmem:[#allocation17 + $0x20] sm:$0xff]  }
 0x357   :  { %4534 = vmatpush1.bf16.msra.mxu0 %v5949_v58  ;;  %v5993_v58 = vld [vmem:[#allocation17 + $0x28] sm:$0xff]  }
 0x358   :  { %4535 = vmatprep.subr.bf16.mxu0 %v5954_v38  ;;  %v5994_v38 = vld [vmem:[#allocation17 + $0x30] sm:$0xff]  }
 0x35b   :  { %4536 = vmatpush1.bf16.msra.mxu0 %v5952_v48  ;;  %v5995_v48 = vld [vmem:[#allocation17 + $0x38] sm:$0xff]  }
 0x35c   :  { %4537 = vmatprep.subr.bf16.mxu0 %v5957_v46  ;;  %v5578_v46 = vld [vmem:[#allocation16] ss:$0 sm:$0xff] }
 0x35f   :  { %4538 = vmatpush1.bf16.msra.mxu0 %v5955_v47 }
 0x360   :  { %4539 = vmatprep.subr.bf16.mxu0 %v5960_v49 }
 0x363   :  { %4540 = vmatpush1.bf16.msra.mxu0 %v5958_v50 }
 0x364   :  { %4541 = vmatprep.subr.bf16.mxu0 %v5963_v51 }
 0x367   :  { %4542 = vmatpush1.bf16.msra.mxu0 %v5961_v16 }
 0x39f   :  { %v3585_v1 = vpop.f32.mrb[8].mxu1 }
 0x3a0   :  { %v5684_v2 = vadd.f32 %v3585_v1, %v658_v62  ;;  %v3587_v3 = vpop.f32.mrb[9].mxu1 }
 0x3a1   :  { %v5685_v21 = vadd.f32 %v3587_v3, %v662_v63  ;;  %v3589_v61 = vpop.f32.mrb[10].mxu1 }
 0x3a2   :  { %v3598_v5 = vmax.f32 %v5684_v2, 0.0  ;;  %v3590_v28 = vpop.f32.mrb[11].mxu1 }
 0x3a3   :  { %v3599_v6 = vmax.f32 %v5685_v21, 0.0 }
 0x3a4   :  { %v3606_v10 = vpack.c.bf16 %v3598_v5, %v3598_v5 }
 0x3a5   :  { %v3607_v7 = vpack.c.bf16 %v3599_v6, %v3599_v6 }
 0x3a7   :  { %4543 = vmatprep.mubr.bf16.mxu0 %v3607_v7 }
 0x3a8   :  { %4544 = vmatmul.mubr.bf16.vlgmr.msra.gmra.mrb[8].mxu0 %v3606_v10 }
 0x47b   :  { %v4545_v22 = vpop.f32.mrb[8].mxu0 }
 0x47c   :  { %v5686_v8 = vadd.f32 %v4545_v22, %v3741_v18  ;;  %v4547_v23 = vpop.f32.mrb[9].mxu0 }
 0x47d   :  { %v5687_v24 = vadd.f32 %v4547_v23, %v3745_v20  ;;  %v4549_v25 = vpop.f32.mrb[10].mxu0 }
 0x47e   :  { %v4552_v26 = vmax.f32 %v5686_v8, 0.0  ;;  %v4550_v53 = vpop.f32.mrb[11].mxu0 }
 0x47f   :  { %v4553_v27 = vmax.f32 %v5687_v24, 0.0 }
 0x480   :  { %v4554_v30 = vpack.c.bf16 %v4552_v26, %v4552_v26 }
 0x481   :  { %v4555_v54 = vpack.c.bf16 %v4553_v27, %v4553_v27 }
 0x483   :  { %4723 = vmatprep.mubr.bf16.mxu1 %v4555_v54 }
 0x484   :  { %4724 = vmatmul.mubr.bf16.vlgmr.msra.gmra.mrb[12].mxu1 %v4554_v30 }
 0x485   :  { %5637 = vmatpush3.bf16.msra.mxu1 %v5980_v29  ;;  %5652 = vmatprep.mubr.msk.bf16.mxu1 %vm6295_vm0, %v6294_v15 }
 0x486   :  { %5638 = vmatprep.subr.bf16.mxu1 %v6294_v15 }
 0x489   :  { %5639 = vmatpush3.bf16.msra.mxu1 %v5981_v31 }
 0x48a   :  { %5640 = vmatprep.subr.bf16.mxu1 %v6294_v15 }
 0x48d   :  { %5641 = vmatpush3.bf16.msra.mxu1 %v5982_v57 }
 0x48e   :  { %5642 = vmatprep.subr.bf16.mxu1 %v6294_v15 }
 0x491   :  { %5643 = vmatpush3.bf16.msra.mxu1 %v5983_v4 }
 0x492   :  { %5644 = vmatprep.subr.bf16.mxu1 %v6294_v15 }
 0x495   :  { %5645 = vmatpush3.bf16.msra.mxu1 %v5984_v9 }
 0x496   :  { %5646 = vmatprep.subr.bf16.mxu1 %v6294_v15 }
 0x499   :  { %5647 = vmatpush3.bf16.msra.mxu1 %v5985_v32 }
 0x49a   :  { %5648 = vmatprep.subr.bf16.mxu1 %v6294_v15 }
 0x49d   :  { %5649 = vmatpush3.bf16.msra.mxu1 %v5986_v34 }
 0x49e   :  { %5650 = vmatprep.subr.bf16.mxu1 %v6294_v15 }
 0x4a1   :  { %5651 = vmatpush3.bf16.msra.mxu1 %v5987_v35 }
 0x4a2   :  { %5656 = vmatprep.subr.bf16.mxu1 %v6294_v15 }
 0x557   :  { %v5612_v36 = vpop.f32.mrb[12].mxu1 }
 0x558   :  { %v5613_v39 = vpop.f32.mrb[13].mxu1 }
 0x559   :  { %v5614_v40 = vadd.f32 %v5613_v39, %v5612_v36  ;;  %v5615_v41 = vpop.f32.mrb[14].mxu1 }
 0x55a   :  { %v5616_v52 = vpop.f32.mrb[15].mxu1 }
 0x55b   :  { %v4726_v0 = vadd.f32 %v5614_v40, %v5561_v37 }
 0x55d   :  { %v4731_v42 = vmax.f32 %v4726_v0, 0.0 }
 0x55f   :  { %v4732_v43 = vpack.c.bf16 %v4731_v42, %v4731_v42 }
 0x561   :  { %5653 = vmatmul.mubr.bf16.vlgmr.msra.gmra.mrb[16].mxu1 %v4732_v43 }
 0x562   :  { %5657 = vmatpush3.bf16.msra.mxu1 %v5988_v19  ;;  %5672 = vmatprep.mubr.msk.bf16.mxu1 %vm6295_vm0, %v6294_v15 }
 0x563   :  { %5658 = vmatprep.subr.bf16.mxu1 %v6294_v15 }
 0x566   :  { %5659 = vmatpush3.bf16.msra.mxu1 %v5989_v44 }
 0x567   :  { %5660 = vmatprep.subr.bf16.mxu1 %v6294_v15 }
 0x56a   :  { %5661 = vmatpush3.bf16.msra.mxu1 %v5990_v59 }
 0x56b   :  { %5662 = vmatprep.subr.bf16.mxu1 %v6294_v15 }
 0x56e   :  { %5663 = vmatpush3.bf16.msra.mxu1 %v5991_v45 }
 0x56f   :  { %5664 = vmatprep.subr.bf16.mxu1 %v6294_v15 }
 0x572   :  { %5665 = vmatpush3.bf16.msra.mxu1 %v5992_v33 }
 0x573   :  { %5666 = vmatprep.subr.bf16.mxu1 %v6294_v15 }
 0x576   :  { %5667 = vmatpush3.bf16.msra.mxu1 %v5993_v58 }
 0x577   :  { %5668 = vmatprep.subr.bf16.mxu1 %v6294_v15 }
 0x57a   :  { %5669 = vmatpush3.bf16.msra.mxu1 %v5994_v38 }
 0x57b   :  { %5670 = vmatprep.subr.bf16.mxu1 %v6294_v15 }
 0x57e   :  { %5671 = vmatpush3.bf16.msra.mxu1 %v5995_v48 }
 0x634   :  { %v4838_v47 = vpop.f32.mrb[16].mxu1 }
 0x635   :  { %v4839_v49 = vadd.f32 %v5578_v46, %v4838_v47  ;;  %v5654_v50 = vpop.f32.mrb[17].mxu1 }
 0x636   :  { %v4841_v51 = vpop.f32.mrb[18].mxu1 }
 0x637   :  { %v4844_v16 = vmax.f32 %v4839_v49, 0.0  ;;  %v5655_v55 = vpop.f32.mrb[19].mxu1 }
 0x639   :  { %v4845_v56 = vpack.c.bf16 %v4844_v16, %v4844_v16 }
 0x63b   :  { %5673 = vmatmul.mubr.bf16.vlgmr.msra.gmra.mrb[20].mxu1 %v4845_v56 }
 0x70e   :  { %v4951_v62 = vpop.f32.mrb[20].mxu1 }
 0x70f   :  { %v4952_v63 = vadd.f32 %v5587_v60, %v4951_v62  ;;  %v5674_v1 = vpop.f32.mrb[21].mxu1 }
 0x710   :  { %v4954_v2 = vpop.f32.mrb[22].mxu1 }
 0x711   :  { %4957 = vst [vmem:[#allocation20] sm:$0xff] %v4952_v63  ;;  %v5675_v3 = vpop.f32.mrb[23].mxu1 }
 0x712   :  { %6251 = shalt.err (!%p6248_p8)
}
 0x713   :  { %s6252_s7 = scalar_lea.hbm %s6642_s11, 128 }
 0x714   :  { %p6253_p9 = scmp.ne.s32.totalorder %s6642_s11, %s6252_s7  ;;  %p6256_p10 = scmp.lt.u32.totalorder %s6252_s7, %s6642_s11 }
 0x716   :  { %p6258_p11 = pnand %p6256_p10, %p6253_p9 }
 0x718   :  { %6261 = shalt.err (!%p6258_p11)
}
 0x719   :  { %4967 = dma.vmem_to_hbm [thread:$0]  %s4965_s20, 128, %s6642_s11, [#allocation4]  }
 0x71a   :  { %6274 = dma.done.wait [#allocation4], 128  }
 0x71b   :  { %6275 = vsyncadd [#allocation4], 4294967168 }
 0x71c   :  { %4971 = vsyncpa [#allocation3], 1 }
 0x71d   :  { %4972 = vsyncpa [#allocation6], 1 }
 0x71e   :  { %4973 = vsyncpa [#allocation9], 1 }
 0x71f   :  { %4974 = vsyncpa [#allocation12], 1 }
 0x720   :  { %4975 = vsyncpa [#allocation15], 1 }
 0x721   :  { %4976 = vsyncpa [#allocation18], 1 }
 0x722   :  { %4977 = vsyncpa [#allocation4], 1 }

</bundles_post_ra>
